<compile_context>
chip_gen: v5e
topology: v5e:2x2
jax: 0.10.0
libtpu: 0.0.40
codegen_flags: <defaults>
</compile_context>

<pallas_src>
import functools

import jax
import jax.numpy as jnp
from jax.experimental import pallas as pl
from jax.experimental.pallas import tpu as pltpu

LANE = 128
SUBLANE = 8


def _round_up(x, m):
    return ((x + m - 1) // m) * m


def _pick_tile(n):
    # Prefer 512 / 256 multiples (amortize per-step overhead, feed v6e/v7x's
    # 2x256 MXU at full depth); fall back to 128, else the full extent.
    for cand in (512, 256, 128):
        if n % cand == 0:
            return cand
    return n


# ----------------------------------------------------------------------------
# GCN layer:  relu( D^-1/2 (A+I) D^-1/2 X W + b )   (masked to active nodes)
#   X is pre-scaled by dm = mask*D^-1/2 in the wrapper (f32 math, bf16 cast),
#   so the contraction is pure MXU; the row factor is applied at finalize.
# ----------------------------------------------------------------------------
def gcn_kernel(a_ref, dmr_ref, xs_ref, w_ref, b_ref, o_ref, acc_ref):
    k = pl.program_id(1)

    @pl.when(k == 0)
    def _():
        acc_ref[...] = jnp.zeros_like(acc_ref)

    # Pure MXU accumulate: raw (A+I) tile @ (already D^-1/2-scaled) X tile.
    acc_ref[...] += jnp.dot(a_ref[...], xs_ref[...],
                            preferred_element_type=jnp.float32)

    @pl.when(k == pl.num_programs(1) - 1)
    def _():
        # Row normalization in f32, then the W matmul (bf16 in, f32 acc).
        h = jnp.dot((dmr_ref[...] * acc_ref[...]).astype(jnp.bfloat16),
                    w_ref[...], preferred_element_type=jnp.float32) + b_ref[...]
        o_ref[...] = jnp.maximum(h, 0.0).astype(o_ref.dtype)


def gcn_relu(a_bf, dm, x_bf, w, b):
    """a_bf: (N,N) bf16 raw A+I; dm: (N,) f32 = mask*D^-1/2; x_bf: (N,F) bf16."""
    n = a_bf.shape[0]
    f = x_bf.shape[1]
    hdim = w.shape[1]
    tm = _pick_tile(n)
    tk = _pick_tile(n)
    # Pre-scale X rows in f32 (column D^-1/2 factor), cast to bf16 for the MXU.
    xs = (x_bf.astype(jnp.float32) * dm[:, None]).astype(jnp.bfloat16)
    dmr = dm.reshape(n, 1)                       # f32 row factor
    b2 = b.reshape(1, hdim).astype(jnp.float32)
    return pl.pallas_call(
        gcn_kernel,
        out_shape=jax.ShapeDtypeStruct((n, hdim), jnp.bfloat16),
        grid_spec=pltpu.PrefetchScalarGridSpec(
            num_scalar_prefetch=0,
            grid=(n // tm, n // tk),
            in_specs=[
                pl.BlockSpec((tm, tk), lambda i, k: (i, k)),   # A tile
                pl.BlockSpec((tm, 1), lambda i, k: (i, 0)),    # row D^-1/2 (f32)
                pl.BlockSpec((tk, f), lambda i, k: (k, 0)),    # scaled X tile
                pl.BlockSpec((f, hdim), lambda i, k: (0, 0)),  # W
                pl.BlockSpec((1, hdim), lambda i, k: (0, 0)),  # bias
            ],
            out_specs=pl.BlockSpec((tm, hdim), lambda i, k: (i, 0)),
            scratch_shapes=[pltpu.VMEM((tm, f), jnp.float32)],
        ),
        compiler_params=pltpu.CompilerParams(
            dimension_semantics=("parallel", "arbitrary"),
            vmem_limit_bytes=48 * 1024 * 1024,
        ),
    )(a_bf, dmr, xs, w, b2)


# ----------------------------------------------------------------------------
# Readout: per-graph [global_max_pool | global_mean_pool]
#   Masked reduce over the LEADING (node) axis: (tk, B_pad, H_pad) -> (B_pad, H_pad)
#   Counts are hoisted to the wrapper (inv_cnt input).  x must be >= 0
#   (ReLU outputs / sigmoid-gated) for the 0-baseline masked max to be exact.
# ----------------------------------------------------------------------------
def readout_kernel(selt_ref, invc_ref, x_ref, o_ref, mx_ref, sm_ref):
    k = pl.program_id(0)
    hpad = x_ref.shape[1]

    @pl.when(k == 0)
    def _():
        mx_ref[...] = jnp.zeros_like(mx_ref)
        sm_ref[...] = jnp.zeros_like(sm_ref)

    selt = selt_ref[...]                         # (tk, B_pad) f32 {0,1}
    xf = x_ref[...].astype(jnp.float32)          # (tk, H_pad), >= 0

    # Broadcast/mask to (tk, B_pad, H_pad); both reductions over axis 0 are
    # VPU chains (no cross-sublane XLU work, no sel/selt duplicate DMA).
    masked = jnp.where(selt[:, :, None] > 0, xf[:, None, :], 0.0)
    sm_ref[...] += jnp.sum(masked, axis=0)
    mx_ref[...] = jnp.maximum(mx_ref[...], jnp.max(masked, axis=0))

    @pl.when(k == pl.num_programs(0) - 1)
    def _():
        o_ref[:, :hpad] = mx_ref[...]                      # gmp
        o_ref[:, hpad:] = sm_ref[...] * invc_ref[...]      # gap


def readout(selt, inv_cnt, x):
    n, bpad = selt.shape
    hdim = x.shape[1]
    tk = _pick_tile(n)
    return pl.pallas_call(
        readout_kernel,
        out_shape=jax.ShapeDtypeStruct((bpad, 2 * hdim), jnp.float32),
        grid_spec=pltpu.PrefetchScalarGridSpec(
            num_scalar_prefetch=0,
            grid=(n // tk,),
            in_specs=[
                pl.BlockSpec((tk, bpad), lambda k: (k, 0)),   # selector^T
                pl.BlockSpec((bpad, 1), lambda k: (0, 0)),    # 1/count (hoisted)
                pl.BlockSpec((tk, hdim), lambda k: (k, 0)),   # x tile
            ],
            out_specs=pl.BlockSpec((bpad, 2 * hdim), lambda k: (0, 0)),
            scratch_shapes=[
                pltpu.VMEM((bpad, hdim), jnp.float32),   # running max
                pltpu.VMEM((bpad, hdim), jnp.float32),   # running sum
            ],
        ),
        compiler_params=pltpu.CompilerParams(
            dimension_semantics=("arbitrary",)),
    )(selt, inv_cnt, x)


# ----------------------------------------------------------------------------
# Fused tail: conv3 + relu + readout3 + relu-merge + lin1/lin2/lin3 + log_softmax
#   conv3's node features never hit HBM; readout3 runs on the in-VMEM finalize
#   of each row tile; the MLP head runs once at the last grid step.
# ----------------------------------------------------------------------------
def conv3_tail_kernel(ncls, a_ref, dmr_ref, xs_ref, wc_ref, bc_ref,
                      selt_ref, invc_ref, x1_ref, x2_ref,
                      w1_ref, b1_ref, w2_ref, b2_ref, w3_ref, b3_ref,
                      o_ref, acc_ref, mx_ref, sm_ref):
    i = pl.program_id(0)
    k = pl.program_id(1)
    last_i = pl.num_programs(0) - 1
    last_k = pl.num_programs(1) - 1

    @pl.when((i == 0) & (k == 0))
    def _():
        mx_ref[...] = jnp.zeros_like(mx_ref)
        sm_ref[...] = jnp.zeros_like(sm_ref)

    @pl.when(k == 0)
    def _():
        acc_ref[...] = jnp.zeros_like(acc_ref)

    # conv3 contraction: pure MXU (X already pre-scaled by mask*D^-1/2).
    acc_ref[...] += jnp.dot(a_ref[...], xs_ref[...],
                            preferred_element_type=jnp.float32)

    @pl.when(k == last_k)
    def _():
        # conv3 finalize for row tile i (f32 row scaling) + readout3 update.
        h = jnp.dot((dmr_ref[...] * acc_ref[...]).astype(jnp.bfloat16),
                    wc_ref[...], preferred_element_type=jnp.float32) + bc_ref[...]
        h = jnp.maximum(h, 0.0)                              # (tm, H) >= 0
        selt = selt_ref[...]                                 # (tm, B_pad)
        masked = jnp.where(selt[:, :, None] > 0, h[:, None, :], 0.0)
        sm_ref[...] += jnp.sum(masked, axis=0)
        mx_ref[...] = jnp.maximum(mx_ref[...], jnp.max(masked, axis=0))

    @pl.when((i == last_i) & (k == last_k))
    def _():
        hpad = mx_ref.shape[1]
        gmp3 = mx_ref[...]
        gap3 = sm_ref[...] * invc_ref[...]
        x1 = x1_ref[...]
        x2 = x2_ref[...]
        # relu-merge (gmp3/gap3 are already >= 0); gmp/gap halves kept split so
        # no lane concat is needed (w1 is sliced at the 128-lane boundary).
        xm = jnp.maximum(x1[:, :hpad], 0.0) + jnp.maximum(x2[:, :hpad], 0.0) + gmp3
        xa = jnp.maximum(x1[:, hpad:], 0.0) + jnp.maximum(x2[:, hpad:], 0.0) + gap3
        z = (jnp.dot(xm.astype(jnp.bfloat16), w1_ref[:hpad, :],
                     preferred_element_type=jnp.float32)
             + jnp.dot(xa.astype(jnp.bfloat16), w1_ref[hpad:, :],
                       preferred_element_type=jnp.float32)
             + b1_ref[...])
        z = jnp.maximum(z, 0.0)
        # F.dropout: eval-mode identity.
        z = jnp.dot(z.astype(jnp.bfloat16), w2_ref[...],
                    preferred_element_type=jnp.float32) + b2_ref[...]
        z = jnp.maximum(z, 0.0)
        z = jnp.dot(z.astype(jnp.bfloat16), w3_ref[...],
                    preferred_element_type=jnp.float32) + b3_ref[...]
        # log_softmax over the real class columns only (lane padding masked).
        col = jax.lax.broadcasted_iota(jnp.int32, z.shape, 1)
        valid = col < ncls
        z = jnp.where(valid, z, jnp.float32(-3.0e38))
        m = jnp.max(z, axis=-1, keepdims=True)
        e = jnp.where(valid, jnp.exp(z - m), 0.0)
        lse = jnp.log(jnp.sum(e, axis=-1, keepdims=True)) + m
        o_ref[...] = z - lse


def conv3_readout_head(a_bf, dm, x_bf, wc, bc, selt, inv_cnt, x1, x2,
                       w1, b1, w2, b2, w3, b3, num_classes):
    n = a_bf.shape[0]
    f = x_bf.shape[1]
    hdim = wc.shape[1]
    bpad = selt.shape[1]
    cpad = w3.shape[1]
    tm = _pick_tile(n)
    tk = _pick_tile(n)
    xs = (x_bf.astype(jnp.float32) * dm[:, None]).astype(jnp.bfloat16)
    dmr = dm.reshape(n, 1)
    args = (a_bf, dmr, xs, wc, bc.reshape(1, hdim).astype(jnp.float32),
            selt, inv_cnt, x1, x2,
            w1, b1.reshape(1, hdim), w2, b2.reshape(1, hdim),
            w3, b3.reshape(1, cpad))
    return pl.pallas_call(
        functools.partial(conv3_tail_kernel, num_classes),
        out_shape=jax.ShapeDtypeStruct((bpad, cpad), jnp.float32),
        grid_spec=pltpu.PrefetchScalarGridSpec(
            num_scalar_prefetch=0,
            grid=(n // tm, n // tk),
            in_specs=[
                pl.BlockSpec((tm, tk), lambda i, k: (i, k)),        # A tile
                pl.BlockSpec((tm, 1), lambda i, k: (i, 0)),         # row D^-1/2
                pl.BlockSpec((tk, f), lambda i, k: (k, 0)),         # scaled X
                pl.BlockSpec((f, hdim), lambda i, k: (0, 0)),       # conv3 W
                pl.BlockSpec((1, hdim), lambda i, k: (0, 0)),       # conv3 b
                pl.BlockSpec((tm, bpad), lambda i, k: (i, 0)),      # selector^T
                pl.BlockSpec((bpad, 1), lambda i, k: (0, 0)),       # 1/count
                pl.BlockSpec((bpad, 2 * hdim), lambda i, k: (0, 0)),  # x1
                pl.BlockSpec((bpad, 2 * hdim), lambda i, k: (0, 0)),  # x2
                pl.BlockSpec((2 * hdim, hdim), lambda i, k: (0, 0)),  # lin1 W
                pl.BlockSpec((1, hdim), lambda i, k: (0, 0)),         # lin1 b
                pl.BlockSpec((hdim, hdim), lambda i, k: (0, 0)),      # lin2 W
                pl.BlockSpec((1, hdim), lambda i, k: (0, 0)),         # lin2 b
                pl.BlockSpec((hdim, cpad), lambda i, k: (0, 0)),      # lin3 W
                pl.BlockSpec((1, cpad), lambda i, k: (0, 0)),         # lin3 b
            ],
            out_specs=pl.BlockSpec((bpad, cpad), lambda i, k: (0, 0)),
            scratch_shapes=[
                pltpu.VMEM((tm, f), jnp.float32),       # conv3 accumulator
                pltpu.VMEM((bpad, hdim), jnp.float32),  # readout3 running max
                pltpu.VMEM((bpad, hdim), jnp.float32),  # readout3 running sum
            ],
        ),
        compiler_params=pltpu.CompilerParams(
            dimension_semantics=("arbitrary", "arbitrary"),
            vmem_limit_bytes=48 * 1024 * 1024,
        ),
    )(*args)


# ----------------------------------------------------------------------------
# Plain-JAX glue (graph bookkeeping, GMI_Pool stand-in)
# ----------------------------------------------------------------------------
def build_raw_adj(edge_index, n_pad, n_real):
    """Raw symmetric A + I (self-loops on real nodes only), built ONCE in bf16."""
    src, dst = edge_index[0], edge_index[1]
    a = jnp.zeros((n_pad, n_pad), jnp.bfloat16)
    a = a.at[src, dst].set(1.0)
    a = a.at[dst, src].set(1.0)
    diag = jnp.arange(n_real)
    a = a.at[diag, diag].set(1.0)
    return a


def norm_dm(a_bf, mask):
    """Per-layer mask * D^-1/2 vector in f32 (folded into the GCN kernels)."""
    deg = jnp.dot(a_bf, mask.astype(jnp.bfloat16),
                  preferred_element_type=jnp.float32)
    dinv = jnp.where(deg > 0, jax.lax.rsqrt(deg), 0.0)
    return dinv * mask                          # f32


def topk_pool_mask(score, node_mask, batch, ratio, num_graphs_pad):
    """Per-graph top-ceil(ratio*n_g); rank via one (N,N) comparison, counts via
    segment-add (no extra (N,N) temporaries)."""
    # TODO(synk): move rank computation into a Pallas segment kernel at scale.
    n = score.shape[0]
    active = node_mask > 0
    s = jnp.where(active, score, -jnp.inf)
    idx = jnp.arange(n)
    cnt = jnp.zeros((num_graphs_pad + 1,), jnp.float32).at[batch].add(node_mask)
    n_g = cnt[batch]
    k_g = jnp.ceil(ratio * n_g).astype(jnp.int32)
    same = batch[:, None] == batch[None, :]
    better = ((s[None, :] > s[:, None])
              | ((s[None, :] == s[:, None]) & (idx[None, :] < idx[:, None])))
    rank = jnp.sum((same & better).astype(jnp.int32), axis=1)
    keep = active & (rank < k_g)
    return keep.astype(jnp.float32)


def gmi_pool(x_bf, score_w, node_mask, batch, ratio, num_graphs_pad):
    # Stand-in for GMI_Pool: linear score -> per-graph top-k -> sigmoid gate.
    # TODO(synk): MI estimation / neighbor sampling / sparse attention /
    # structure learning (neg_num, samp_bias1, samp_bias2) not reproduced.
    xf = x_bf.astype(jnp.float32)
    score = xf @ score_w
    new_mask = topk_pool_mask(score, node_mask, batch, ratio, num_graphs_pad)
    gate = jax.nn.sigmoid(score)
    x_new = (xf * gate[:, None] * new_mask[:, None]).astype(jnp.bfloat16)
    return x_new, new_mask


def selector_and_invcnt(batch, node_mask, num_graphs_pad):
    """(N, B_pad) one-hot selector (transposed) + per-graph 1/count (hoisted)."""
    selt = (batch[:, None] == jnp.arange(num_graphs_pad)[None, :]).astype(jnp.float32)
    selt = selt * node_mask[:, None]
    inv_cnt = 1.0 / jnp.maximum(jnp.sum(selt, axis=0), 1.0)
    return selt, inv_cnt.reshape(num_graphs_pad, 1)


# ----------------------------------------------------------------------------
# Model forward
# ----------------------------------------------------------------------------
def model_forward(params, x_pad, edge_index, batch, node_mask,
                  num_nodes, num_graphs, num_graphs_pad, num_classes,
                  pooling_ratio):
    n_pad = x_pad.shape[0]
    a_bf = build_raw_adj(edge_index, n_pad, num_nodes)   # built once, bf16
    mask = node_mask
    x = x_pad.astype(jnp.bfloat16)

    # conv1 + relu
    dm = norm_dm(a_bf, mask)
    x = gcn_relu(a_bf, dm, x, params["w_conv1"], params["b_conv1"])

    # pool1 + readout1
    x, mask = gmi_pool(x, params["w_pool1"], mask, batch, pooling_ratio,
                       num_graphs_pad)
    selt1, invc1 = selector_and_invcnt(batch, mask, num_graphs_pad)
    x1 = readout(selt1, invc1, x)

    # conv2 + relu (on pooled graph)
    dm = norm_dm(a_bf, mask)
    x = gcn_relu(a_bf, dm, x, params["w_conv2"], params["b_conv2"])

    # pool2 + readout2
    x, mask = gmi_pool(x, params["w_pool2"], mask, batch, pooling_ratio,
                       num_graphs_pad)
    selt2, invc2 = selector_and_invcnt(batch, mask, num_graphs_pad)
    x2 = readout(selt2, invc2, x)

    # fused conv3 + relu + readout3 (uses pool2's selector) + head + log_softmax
    dm = norm_dm(a_bf, mask)
    logp = conv3_readout_head(
        a_bf, dm, x, params["w_conv3"], params["b_conv3"],
        selt2, invc2, x1, x2,
        params["w_lin1"], params["b_lin1"],
        params["w_lin2"], params["b_lin2"],
        params["w_lin3"], params["b_lin3"],
        num_classes)
    return logp[:num_graphs, :num_classes]


# ----------------------------------------------------------------------------
# Main
# ----------------------------------------------------------------------------
if __name__ == "__main__":
    num_features, nhid, num_classes = 16, 32, 4
    pooling_ratio = 0.5

    F_pad = _round_up(num_features, LANE)
    H_pad = _round_up(nhid, LANE)
    C_pad = _round_up(num_classes, LANE)

    key = jax.random.PRNGKey(0)
    ks = jax.random.split(key, 16)

    def init(k, shape, scale=0.1):
        return (scale * jax.random.normal(k, shape)).astype(jnp.float32)

    def pad2(a, r, c):
        return jnp.zeros((r, c), a.dtype).at[:a.shape[0], :a.shape[1]].set(a)

    def pad1(a, n):
        return jnp.zeros((n,), a.dtype).at[:a.shape[0]].set(a)

    raw = {
        "w_conv1": init(ks[0], (num_features, nhid)),
        "b_conv1": jnp.zeros((nhid,), jnp.float32),
        "w_conv2": init(ks[1], (nhid, nhid)),
        "b_conv2": jnp.zeros((nhid,), jnp.float32),
        "w_conv3": init(ks[2], (nhid, nhid)),
        "b_conv3": jnp.zeros((nhid,), jnp.float32),
        "w_pool1": init(ks[3], (nhid,)),
        "w_pool2": init(ks[4], (nhid,)),
        "w_lin1": init(ks[5], (2 * nhid, nhid)),
        "b_lin1": jnp.zeros((nhid,), jnp.float32),
        "w_lin2": init(ks[6], (nhid, nhid // 2)),
        "b_lin2": jnp.zeros((nhid // 2,), jnp.float32),
        "w_lin3": init(ks[7], (nhid // 2, num_classes)),
        "b_lin3": jnp.zeros((num_classes,), jnp.float32),
    }

    # Lane-pad all feature dims to 128; matmul weights stored in bf16.
    # lin1 consumes [gmp | gap], each half lane-padded -> split row mapping.
    w1p = jnp.zeros((2 * H_pad, H_pad), jnp.float32)
    w1p = w1p.at[:nhid, :nhid].set(raw["w_lin1"][:nhid])
    w1p = w1p.at[H_pad:H_pad + nhid, :nhid].set(raw["w_lin1"][nhid:])

    params = {
        "w_conv1": pad2(raw["w_conv1"], F_pad, H_pad).astype(jnp.bfloat16),
        "b_conv1": pad1(raw["b_conv1"], H_pad),
        "w_conv2": pad2(raw["w_conv2"], H_pad, H_pad).astype(jnp.bfloat16),
        "b_conv2": pad1(raw["b_conv2"], H_pad),
        "w_conv3": pad2(raw["w_conv3"], H_pad, H_pad).astype(jnp.bfloat16),
        "b_conv3": pad1(raw["b_conv3"], H_pad),
        "w_pool1": pad1(raw["w_pool1"], H_pad),
        "w_pool2": pad1(raw["w_pool2"], H_pad),
        "w_lin1": w1p.astype(jnp.bfloat16),
        "b_lin1": pad1(raw["b_lin1"], H_pad),
        "w_lin2": pad2(raw["w_lin2"], H_pad, H_pad).astype(jnp.bfloat16),
        "b_lin2": pad1(raw["b_lin2"], H_pad),
        "w_lin3": pad2(raw["w_lin3"], H_pad, C_pad).astype(jnp.bfloat16),
        "b_lin3": pad1(raw["b_lin3"], C_pad),
    }

    # Small graph batch: 2 ring graphs x 4 nodes; padded to N_pad nodes / B_pad graphs.
    num_nodes, num_graphs = 8, 2
    N_pad = _round_up(max(num_nodes, SUBLANE), LANE)
    B_pad = _round_up(max(num_graphs, SUBLANE), SUBLANE)

    x_raw = jax.random.normal(ks[8], (num_nodes, num_features)).astype(jnp.float32)
    x_pad = pad2(x_raw, N_pad, F_pad)
    edge_index = jnp.array([[0, 1, 2, 3, 4, 5, 6, 7],
                            [1, 2, 3, 0, 5, 6, 7, 4]], dtype=jnp.int32)
    batch = jnp.full((N_pad,), num_graphs, dtype=jnp.int32).at[:num_nodes].set(
        jnp.array([0, 0, 0, 0, 1, 1, 1, 1], dtype=jnp.int32))
    node_mask = (jnp.arange(N_pad) < num_nodes).astype(jnp.float32)

    fwd = jax.jit(functools.partial(
        model_forward,
        num_nodes=num_nodes,
        num_graphs=num_graphs,
        num_graphs_pad=B_pad,
        num_classes=num_classes,
        pooling_ratio=pooling_ratio))

    out = jax.block_until_ready(fwd(params, x_pad, edge_index, batch, node_mask))

    assert out.shape == (num_graphs, num_classes)
    assert bool(jnp.all(jnp.isfinite(out)))
    # rows of log_softmax must sum (in prob space) to ~1
    assert bool(jnp.allclose(jnp.sum(jnp.exp(out), axis=-1), 1.0, atol=1e-3))
    print("KERNEL_OK")
</pallas_src>

<mosaic_0001>
module attributes {stable_mosaic.version = 11 : i64} {
  func.func @gcn_kernel(%arg0: i32, %arg1: i32, %arg2: memref<128x128xbf16, #tpu.memory_space<vmem>>, %arg3: memref<128x1xf32, #tpu.memory_space<vmem>>, %arg4: memref<128x128xbf16, #tpu.memory_space<vmem>>, %arg5: memref<128x128xbf16, #tpu.memory_space<vmem>>, %arg6: memref<1x128xf32, #tpu.memory_space<vmem>>, %arg7: memref<128x128xbf16, #tpu.memory_space<vmem>>, %arg8: memref<128x128xf32, #tpu.memory_space<vmem>>) attributes {dimension_semantics = [#tpu.dimension_semantics<parallel>, #tpu.dimension_semantics<arbitrary>], iteration_bounds = array<i64: 1, 1>, scalar_prefetch = 0 : i64, scratch_operands = 1 : i64, tpu.core_type = #tpu.core_type<tc>, window_params = [{transform_indices = @transform_0, window_bounds = array<i64: 128, 128>}, {transform_indices = @transform_1, window_bounds = array<i64: 128, 1>}, {transform_indices = @transform_2, window_bounds = array<i64: 128, 128>}, {pipeline_mode = #tpu.pipeline_mode<synchronous>, transform_indices = @transform_3, window_bounds = array<i64: 128, 128>}, {pipeline_mode = #tpu.pipeline_mode<synchronous>, transform_indices = @transform_4, window_bounds = array<i64: 1, 128>}, {transform_indices = @transform_5, window_bounds = array<i64: 128, 128>}]} {
    %c0_i32 = arith.constant 0 : i32
    %0 = arith.cmpi eq, %arg1, %c0_i32 : i32
    %1 = arith.extui %0 : i1 to i32
    %c0_i32_0 = arith.constant 0 : i32
    %2 = arith.cmpi ne, %1, %c0_i32_0 : i32
    scf.if %2 {
      %cst_10 = arith.constant 0.000000e+00 : f32
      %12 = vector.broadcast %cst_10 : f32 to vector<128x128xf32>
      %c0_11 = arith.constant 0 : index
      %c0_12 = arith.constant 0 : index
      %13 = vector.load %arg8[%c0_11, %c0_12] : memref<128x128xf32, #tpu.memory_space<vmem>>, vector<128x128xf32>
      tpu.vector_store %arg8[%c0_11, %c0_12], %12 {strides = array<i32>} : memref<128x128xf32, #tpu.memory_space<vmem>>, vector<128x128xf32>,
    } else {
    }
    %c0 = arith.constant 0 : index
    %c0_1 = arith.constant 0 : index
    %3 = vector.load %arg8[%c0, %c0_1] : memref<128x128xf32, #tpu.memory_space<vmem>>, vector<128x128xf32>
    %c0_2 = arith.constant 0 : index
    %c0_3 = arith.constant 0 : index
    %4 = vector.load %arg2[%c0_2, %c0_3] : memref<128x128xbf16, #tpu.memory_space<vmem>>, vector<128x128xbf16>
    %c0_4 = arith.constant 0 : index
    %c0_5 = arith.constant 0 : index
    %5 = vector.load %arg4[%c0_4, %c0_5] : memref<128x128xbf16, #tpu.memory_space<vmem>>, vector<128x128xbf16>
    %cst = arith.constant dense<0.000000e+00> : vector<128x128xf32>
    %6 = tpu.matmul %4, %5, %cst {dimension_numbers = #tpu.dot_dimension_numbers<[1], [0], [0], [1], [0, 0, 1, 1], [], []>} : vector<128x128xbf16>, vector<128x128xbf16>, vector<128x128xf32> -> vector<128x128xf32>
    %7 = arith.addf %3, %6 : vector<128x128xf32>
    %c0_6 = arith.constant 0 : index
    %c0_7 = arith.constant 0 : index
    %8 = vector.load %arg8[%c0_6, %c0_7] : memref<128x128xf32, #tpu.memory_space<vmem>>, vector<128x128xf32>
    tpu.vector_store %arg8[%c0_6, %c0_7], %7 {strides = array<i32>} : memref<128x128xf32, #tpu.memory_space<vmem>>, vector<128x128xf32>,
    %c0_i32_8 = arith.constant 0 : i32
    %9 = arith.cmpi eq, %arg1, %c0_i32_8 : i32
    %10 = arith.extui %9 : i1 to i32
    %c0_i32_9 = arith.constant 0 : i32
    %11 = arith.cmpi ne, %10, %c0_i32_9 : i32
    scf.if %11 {
      %c0_10 = arith.constant 0 : index
      %c0_11 = arith.constant 0 : index
      %12 = vector.load %arg3[%c0_10, %c0_11] : memref<128x1xf32, #tpu.memory_space<vmem>>, vector<128x1xf32>
      %c0_12 = arith.constant 0 : index
      %c0_13 = arith.constant 0 : index
      %13 = vector.load %arg8[%c0_12, %c0_13] : memref<128x128xf32, #tpu.memory_space<vmem>>, vector<128x128xf32>
      %14 = vector.broadcast %12 : vector<128x1xf32> to vector<128x128xf32>
      %15 = arith.mulf %14, %13 : vector<128x128xf32>
      %16 = arith.truncf %15 : vector<128x128xf32> to vector<128x128xbf16>
      %c0_14 = arith.constant 0 : index
      %c0_15 = arith.constant 0 : index
      %17 = vector.load %arg5[%c0_14, %c0_15] : memref<128x128xbf16, #tpu.memory_space<vmem>>, vector<128x128xbf16>
      %cst_16 = arith.constant dense<0.000000e+00> : vector<128x128xf32>
      %18 = tpu.matmul %16, %17, %cst_16 {dimension_numbers = #tpu.dot_dimension_numbers<[1], [0], [0], [1], [0, 0, 1, 1], [], []>} : vector<128x128xbf16>, vector<128x128xbf16>, vector<128x128xf32> -> vector<128x128xf32>
      %c0_17 = arith.constant 0 : index
      %c0_18 = arith.constant 0 : index
      %19 = vector.load %arg6[%c0_17, %c0_18] : memref<1x128xf32, #tpu.memory_space<vmem>>, vector<1x128xf32>
      %20 = vector.broadcast %19 : vector<1x128xf32> to vector<128x128xf32>
      %21 = arith.addf %18, %20 : vector<128x128xf32>
      %cst_19 = arith.constant 0.000000e+00 : f32
      %22 = vector.broadcast %cst_19 : f32 to vector<128x128xf32>
      %23 = arith.maximumf %21, %22 : vector<128x128xf32>
      %24 = arith.truncf %23 : vector<128x128xf32> to vector<128x128xbf16>
      %c0_20 = arith.constant 0 : index
      %c0_21 = arith.constant 0 : index
      %25 = vector.load %arg7[%c0_20, %c0_21] : memref<128x128xbf16, #tpu.memory_space<vmem>>, vector<128x128xbf16>
      tpu.vector_store %arg7[%c0_20, %c0_21], %24 {strides = array<i32>} : memref<128x128xbf16, #tpu.memory_space<vmem>>, vector<128x128xbf16>,
    } else {
    }
    return
  }
  func.func @transform_0(%arg0: i32, %arg1: i32) -> (i32, i32) {
    %c0_i32 = arith.constant 0 : i32
    return %arg0, %arg1 : i32, i32
  }
  func.func @transform_1(%arg0: i32, %arg1: i32) -> (i32, i32) {
    %c0_i32 = arith.constant 0 : i32
    %c0_i32_0 = arith.constant 0 : i32
    return %arg0, %c0_i32 : i32, i32
  }
  func.func @transform_2(%arg0: i32, %arg1: i32) -> (i32, i32) {
    %c0_i32 = arith.constant 0 : i32
    %c0_i32_0 = arith.constant 0 : i32
    return %arg1, %c0_i32 : i32, i32
  }
  func.func @transform_3(%arg0: i32, %arg1: i32) -> (i32, i32) {
    %c0_i32 = arith.constant 0 : i32
    %c0_i32_0 = arith.constant 0 : i32
    %c0_i32_1 = arith.constant 0 : i32
    return %c0_i32, %c0_i32_0 : i32, i32
  }
  func.func @transform_4(%arg0: i32, %arg1: i32) -> (i32, i32) {
    %c0_i32 = arith.constant 0 : i32
    %c0_i32_0 = arith.constant 0 : i32
    %c0_i32_1 = arith.constant 0 : i32
    return %c0_i32, %c0_i32_0 : i32, i32
  }
  func.func @transform_5(%arg0: i32, %arg1: i32) -> (i32, i32) {
    %c0_i32 = arith.constant 0 : i32
    %c0_i32_0 = arith.constant 0 : i32
    return %arg0, %c0_i32 : i32, i32
  }
}

module attributes {stable_mosaic.version = 11 : i64} {
  func.func @readout_kernel(%arg0: i32, %arg1: memref<128x8xf32, #tpu.memory_space<vmem>>, %arg2: memref<8x1xf32, #tpu.memory_space<vmem>>, %arg3: memref<128x128xbf16, #tpu.memory_space<vmem>>, %arg4: memref<8x256xf32, #tpu.memory_space<vmem>>, %arg5: memref<8x128xf32, #tpu.memory_space<vmem>>, %arg6: memref<8x128xf32, #tpu.memory_space<vmem>>) attributes {dimension_semantics = [#tpu.dimension_semantics<arbitrary>], iteration_bounds = array<i64: 1>, scalar_prefetch = 0 : i64, scratch_operands = 2 : i64, tpu.core_type = #tpu.core_type<tc>, window_params = [{transform_indices = @transform_0, window_bounds = array<i64: 128, 8>}, {pipeline_mode = #tpu.pipeline_mode<synchronous>, transform_indices = @transform_1, window_bounds = array<i64: 8, 1>}, {transform_indices = @transform_2, window_bounds = array<i64: 128, 128>}, {pipeline_mode = #tpu.pipeline_mode<synchronous>, transform_indices = @transform_3, window_bounds = array<i64: 8, 256>}]} {
    %c0_i32 = arith.constant 0 : i32
    %0 = arith.cmpi eq, %arg0, %c0_i32 : i32
    %1 = arith.extui %0 : i1 to i32
    %c0_i32_0 = arith.constant 0 : i32
    %2 = arith.cmpi ne, %1, %c0_i32_0 : i32
    scf.if %2 {
      %cst_17 = arith.constant 0.000000e+00 : f32
      %27 = vector.broadcast %cst_17 : f32 to vector<8x128xf32>
      %c0_18 = arith.constant 0 : index
      %c0_19 = arith.constant 0 : index
      %28 = vector.load %arg5[%c0_18, %c0_19] : memref<8x128xf32, #tpu.memory_space<vmem>>, vector<8x128xf32>
      tpu.vector_store %arg5[%c0_18, %c0_19], %27 {strides = array<i32>} : memref<8x128xf32, #tpu.memory_space<vmem>>, vector<8x128xf32>,
      %cst_20 = arith.constant 0.000000e+00 : f32
      %29 = vector.broadcast %cst_20 : f32 to vector<8x128xf32>
      %c0_21 = arith.constant 0 : index
      %c0_22 = arith.constant 0 : index
      %30 = vector.load %arg6[%c0_21, %c0_22] : memref<8x128xf32, #tpu.memory_space<vmem>>, vector<8x128xf32>
      tpu.vector_store %arg6[%c0_21, %c0_22], %29 {strides = array<i32>} : memref<8x128xf32, #tpu.memory_space<vmem>>, vector<8x128xf32>,
    } else {
    }
    %c0 = arith.constant 0 : index
    %c0_1 = arith.constant 0 : index
    %3 = vector.load %arg1[%c0, %c0_1] : memref<128x8xf32, #tpu.memory_space<vmem>>, vector<128x8xf32>
    %c0_2 = arith.constant 0 : index
    %c0_3 = arith.constant 0 : index
    %4 = vector.load %arg3[%c0_2, %c0_3] : memref<128x128xbf16, #tpu.memory_space<vmem>>, vector<128x128xbf16>
    %5 = arith.extf %4 : vector<128x128xbf16> to vector<128x128xf32>
    %6 = vector.shape_cast %3 : vector<128x8xf32> to vector<128x8x1xf32>
    %cst = arith.constant 0.000000e+00 : f32
    %7 = vector.broadcast %cst : f32 to vector<128x8x1xf32>
    %8 = arith.cmpf ogt, %6, %7 : vector<128x8x1xf32>
    %9 = vector.shape_cast %5 : vector<128x128xf32> to vector<128x1x128xf32>
    %cst_4 = arith.constant 0.000000e+00 : f32
    %10 = vector.shape_cast %8 : vector<128x8x1xi1> to vector<128x8x1xi1>
    %11 = vector.broadcast %10 : vector<128x8x1xi1> to vector<128x8x128xi1>
    %12 = vector.shape_cast %9 : vector<128x1x128xf32> to vector<128x1x128xf32>
    %13 = vector.broadcast %12 : vector<128x1x128xf32> to vector<128x8x128xf32>
    %14 = vector.broadcast %cst_4 : f32 to vector<128x8x128xf32>
    %15 = arith.select %11, %13, %14 : vector<128x8x128xi1>, vector<128x8x128xf32>
    %c0_5 = arith.constant 0 : index
    %c0_6 = arith.constant 0 : index
    %16 = vector.load %arg6[%c0_5, %c0_6] : memref<8x128xf32, #tpu.memory_space<vmem>>, vector<8x128xf32>
    %cst_7 = arith.constant dense<0.000000e+00> : vector<8x128xf32>
    %17 = vector.multi_reduction <add>, %15, %cst_7 [0] : vector<128x8x128xf32> to vector<8x128xf32>
    %18 = arith.addf %16, %17 : vector<8x128xf32>
    %c0_8 = arith.constant 0 : index
    %c0_9 = arith.constant 0 : index
    %19 = vector.load %arg6[%c0_8, %c0_9] : memref<8x128xf32, #tpu.memory_space<vmem>>, vector<8x128xf32>
    tpu.vector_store %arg6[%c0_8, %c0_9], %18 {strides = array<i32>} : memref<8x128xf32, #tpu.memory_space<vmem>>, vector<8x128xf32>,
    %c0_10 = arith.constant 0 : index
    %c0_11 = arith.constant 0 : index
    %20 = vector.load %arg5[%c0_10, %c0_11] : memref<8x128xf32, #tpu.memory_space<vmem>>, vector<8x128xf32>
    %cst_12 = arith.constant dense<0xFF800000> : vector<8x128xf32>
    %21 = vector.multi_reduction <maximumf>, %15, %cst_12 [0] : vector<128x8x128xf32> to vector<8x128xf32>
    %22 = arith.maximumf %20, %21 : vector<8x128xf32>
    %c0_13 = arith.constant 0 : index
    %c0_14 = arith.constant 0 : index
    %23 = vector.load %arg5[%c0_13, %c0_14] : memref<8x128xf32, #tpu.memory_space<vmem>>, vector<8x128xf32>
    tpu.vector_store %arg5[%c0_13, %c0_14], %22 {strides = array<i32>} : memref<8x128xf32, #tpu.memory_space<vmem>>, vector<8x128xf32>,
    %c0_i32_15 = arith.constant 0 : i32
    %24 = arith.cmpi eq, %arg0, %c0_i32_15 : i32
    %25 = arith.extui %24 : i1 to i32
    %c0_i32_16 = arith.constant 0 : i32
    %26 = arith.cmpi ne, %25, %c0_i32_16 : i32
    scf.if %26 {
      %c0_17 = arith.constant 0 : index
      %c0_18 = arith.constant 0 : index
      %27 = vector.load %arg5[%c0_17, %c0_18] : memref<8x128xf32, #tpu.memory_space<vmem>>, vector<8x128xf32>
      %c0_19 = arith.constant 0 : index
      %c0_20 = arith.constant 0 : index
      %28 = vector.load %arg4[%c0_19, %c0_20] : memref<8x256xf32, #tpu.memory_space<vmem>>, vector<8x128xf32>
      tpu.vector_store %arg4[%c0_19, %c0_20], %27 {strides = array<i32>} : memref<8x256xf32, #tpu.memory_space<vmem>>, vector<8x128xf32>,
      %c0_21 = arith.constant 0 : index
      %c0_22 = arith.constant 0 : index
      %29 = vector.load %arg6[%c0_21, %c0_22] : memref<8x128xf32, #tpu.memory_space<vmem>>, vector<8x128xf32>
      %c0_23 = arith.constant 0 : index
      %c0_24 = arith.constant 0 : index
      %30 = vector.load %arg2[%c0_23, %c0_24] : memref<8x1xf32, #tpu.memory_space<vmem>>, vector<8x1xf32>
      %31 = vector.broadcast %30 : vector<8x1xf32> to vector<8x128xf32>
      %32 = arith.mulf %29, %31 : vector<8x128xf32>
      %c0_25 = arith.constant 0 : index
      %c128 = arith.constant 128 : index
      %33 = vector.load %arg4[%c0_25, %c128] : memref<8x256xf32, #tpu.memory_space<vmem>>, vector<8x128xf32>
      tpu.vector_store %arg4[%c0_25, %c128], %32 {strides = array<i32>} : memref<8x256xf32, #tpu.memory_space<vmem>>, vector<8x128xf32>,
    } else {
    }
    return
  }
  func.func @transform_0(%arg0: i32) -> (i32, i32) {
    %c0_i32 = arith.constant 0 : i32
    %c0_i32_0 = arith.constant 0 : i32
    return %arg0, %c0_i32 : i32, i32
  }
  func.func @transform_1(%arg0: i32) -> (i32, i32) {
    %c0_i32 = arith.constant 0 : i32
    %c0_i32_0 = arith.constant 0 : i32
    %c0_i32_1 = arith.constant 0 : i32
    return %c0_i32, %c0_i32_0 : i32, i32
  }
  func.func @transform_2(%arg0: i32) -> (i32, i32) {
    %c0_i32 = arith.constant 0 : i32
    %c0_i32_0 = arith.constant 0 : i32
    return %arg0, %c0_i32 : i32, i32
  }
  func.func @transform_3(%arg0: i32) -> (i32, i32) {
    %c0_i32 = arith.constant 0 : i32
    %c0_i32_0 = arith.constant 0 : i32
    %c0_i32_1 = arith.constant 0 : i32
    return %c0_i32, %c0_i32_0 : i32, i32
  }
}

module attributes {stable_mosaic.version = 11 : i64} {
  func.func @conv3_tail_kernel(%arg0: i32, %arg1: i32, %arg2: memref<128x128xbf16, #tpu.memory_space<vmem>>, %arg3: memref<128x1xf32, #tpu.memory_space<vmem>>, %arg4: memref<128x128xbf16, #tpu.memory_space<vmem>>, %arg5: memref<128x128xbf16, #tpu.memory_space<vmem>>, %arg6: memref<1x128xf32, #tpu.memory_space<vmem>>, %arg7: memref<128x8xf32, #tpu.memory_space<vmem>>, %arg8: memref<8x1xf32, #tpu.memory_space<vmem>>, %arg9: memref<8x256xf32, #tpu.memory_space<vmem>>, %arg10: memref<8x256xf32, #tpu.memory_space<vmem>>, %arg11: memref<256x128xbf16, #tpu.memory_space<vmem>>, %arg12: memref<1x128xf32, #tpu.memory_space<vmem>>, %arg13: memref<128x128xbf16, #tpu.memory_space<vmem>>, %arg14: memref<1x128xf32, #tpu.memory_space<vmem>>, %arg15: memref<128x128xbf16, #tpu.memory_space<vmem>>, %arg16: memref<1x128xf32, #tpu.memory_space<vmem>>, %arg17: memref<8x128xf32, #tpu.memory_space<vmem>>, %arg18: memref<128x128xf32, #tpu.memory_space<vmem>>, %arg19: memref<8x128xf32, #tpu.memory_space<vmem>>, %arg20: memref<8x128xf32, #tpu.memory_space<vmem>>) attributes {dimension_semantics = [#tpu.dimension_semantics<arbitrary>, #tpu.dimension_semantics<arbitrary>], iteration_bounds = array<i64: 1, 1>, scalar_prefetch = 0 : i64, scratch_operands = 3 : i64, tpu.core_type = #tpu.core_type<tc>, window_params = [{transform_indices = @transform_0, window_bounds = array<i64: 128, 128>}, {transform_indices = @transform_1, window_bounds = array<i64: 128, 1>}, {transform_indices = @transform_2, window_bounds = array<i64: 128, 128>}, {pipeline_mode = #tpu.pipeline_mode<synchronous>, transform_indices = @transform_3, window_bounds = array<i64: 128, 128>}, {pipeline_mode = #tpu.pipeline_mode<synchronous>, transform_indices = @transform_4, window_bounds = array<i64: 1, 128>}, {transform_indices = @transform_5, window_bounds = array<i64: 128, 8>}, {pipeline_mode = #tpu.pipeline_mode<synchronous>, transform_indices = @transform_6, window_bounds = array<i64: 8, 1>}, {pipeline_mode = #tpu.pipeline_mode<synchronous>, transform_indices = @transform_7, window_bounds = array<i64: 8, 256>}, {pipeline_mode = #tpu.pipeline_mode<synchronous>, transform_indices = @transform_8, window_bounds = array<i64: 8, 256>}, {pipeline_mode = #tpu.pipeline_mode<synchronous>, transform_indices = @transform_9, window_bounds = array<i64: 256, 128>}, {pipeline_mode = #tpu.pipeline_mode<synchronous>, transform_indices = @transform_10, window_bounds = array<i64: 1, 128>}, {pipeline_mode = #tpu.pipeline_mode<synchronous>, transform_indices = @transform_11, window_bounds = array<i64: 128, 128>}, {pipeline_mode = #tpu.pipeline_mode<synchronous>, transform_indices = @transform_12, window_bounds = array<i64: 1, 128>}, {pipeline_mode = #tpu.pipeline_mode<synchronous>, transform_indices = @transform_13, window_bounds = array<i64: 128, 128>}, {pipeline_mode = #tpu.pipeline_mode<synchronous>, transform_indices = @transform_14, window_bounds = array<i64: 1, 128>}, {pipeline_mode = #tpu.pipeline_mode<synchronous>, transform_indices = @transform_15, window_bounds = array<i64: 8, 128>}]} {
    %c0_i32 = arith.constant 0 : i32
    %0 = arith.cmpi eq, %arg0, %c0_i32 : i32
    %c0_i32_0 = arith.constant 0 : i32
    %1 = arith.cmpi eq, %arg1, %c0_i32_0 : i32
    %2 = arith.andi %0, %1 : i1
    %3 = arith.extui %2 : i1 to i32
    %c0_i32_1 = arith.constant 0 : i32
    %4 = arith.cmpi ne, %3, %c0_i32_1 : i32
    scf.if %4 {
      %cst_16 = arith.constant 0.000000e+00 : f32
      %22 = vector.broadcast %cst_16 : f32 to vector<8x128xf32>
      %c0_17 = arith.constant 0 : index
      %c0_18 = arith.constant 0 : index
      %23 = vector.load %arg19[%c0_17, %c0_18] : memref<8x128xf32, #tpu.memory_space<vmem>>, vector<8x128xf32>
      tpu.vector_store %arg19[%c0_17, %c0_18], %22 {strides = array<i32>} : memref<8x128xf32, #tpu.memory_space<vmem>>, vector<8x128xf32>,
      %cst_19 = arith.constant 0.000000e+00 : f32
      %24 = vector.broadcast %cst_19 : f32 to vector<8x128xf32>
      %c0_20 = arith.constant 0 : index
      %c0_21 = arith.constant 0 : index
      %25 = vector.load %arg20[%c0_20, %c0_21] : memref<8x128xf32, #tpu.memory_space<vmem>>, vector<8x128xf32>
      tpu.vector_store %arg20[%c0_20, %c0_21], %24 {strides = array<i32>} : memref<8x128xf32, #tpu.memory_space<vmem>>, vector<8x128xf32>,
    } else {
    }
    %c0_i32_2 = arith.constant 0 : i32
    %5 = arith.cmpi eq, %arg1, %c0_i32_2 : i32
    %6 = arith.extui %5 : i1 to i32
    %c0_i32_3 = arith.constant 0 : i32
    %7 = arith.cmpi ne, %6, %c0_i32_3 : i32
    scf.if %7 {
      %cst_16 = arith.constant 0.000000e+00 : f32
      %22 = vector.broadcast %cst_16 : f32 to vector<128x128xf32>
      %c0_17 = arith.constant 0 : index
      %c0_18 = arith.constant 0 : index
      %23 = vector.load %arg18[%c0_17, %c0_18] : memref<128x128xf32, #tpu.memory_space<vmem>>, vector<128x128xf32>
      tpu.vector_store %arg18[%c0_17, %c0_18], %22 {strides = array<i32>} : memref<128x128xf32, #tpu.memory_space<vmem>>, vector<128x128xf32>,
    } else {
    }
    %c0 = arith.constant 0 : index
    %c0_4 = arith.constant 0 : index
    %8 = vector.load %arg18[%c0, %c0_4] : memref<128x128xf32, #tpu.memory_space<vmem>>, vector<128x128xf32>
    %c0_5 = arith.constant 0 : index
    %c0_6 = arith.constant 0 : index
    %9 = vector.load %arg2[%c0_5, %c0_6] : memref<128x128xbf16, #tpu.memory_space<vmem>>, vector<128x128xbf16>
    %c0_7 = arith.constant 0 : index
    %c0_8 = arith.constant 0 : index
    %10 = vector.load %arg4[%c0_7, %c0_8] : memref<128x128xbf16, #tpu.memory_space<vmem>>, vector<128x128xbf16>
    %cst = arith.constant dense<0.000000e+00> : vector<128x128xf32>
    %11 = tpu.matmul %9, %10, %cst {dimension_numbers = #tpu.dot_dimension_numbers<[1], [0], [0], [1], [0, 0, 1, 1], [], []>} : vector<128x128xbf16>, vector<128x128xbf16>, vector<128x128xf32> -> vector<128x128xf32>
    %12 = arith.addf %8, %11 : vector<128x128xf32>
    %c0_9 = arith.constant 0 : index
    %c0_10 = arith.constant 0 : index
    %13 = vector.load %arg18[%c0_9, %c0_10] : memref<128x128xf32, #tpu.memory_space<vmem>>, vector<128x128xf32>
    tpu.vector_store %arg18[%c0_9, %c0_10], %12 {strides = array<i32>} : memref<128x128xf32, #tpu.memory_space<vmem>>, vector<128x128xf32>,
    %c0_i32_11 = arith.constant 0 : i32
    %14 = arith.cmpi eq, %arg1, %c0_i32_11 : i32
    %15 = arith.extui %14 : i1 to i32
    %c0_i32_12 = arith.constant 0 : i32
    %16 = arith.cmpi ne, %15, %c0_i32_12 : i32
    scf.if %16 {
      %c0_16 = arith.constant 0 : index
      %c0_17 = arith.constant 0 : index
      %22 = vector.load %arg3[%c0_16, %c0_17] : memref<128x1xf32, #tpu.memory_space<vmem>>, vector<128x1xf32>
      %c0_18 = arith.constant 0 : index
      %c0_19 = arith.constant 0 : index
      %23 = vector.load %arg18[%c0_18, %c0_19] : memref<128x128xf32, #tpu.memory_space<vmem>>, vector<128x128xf32>
      %24 = vector.broadcast %22 : vector<128x1xf32> to vector<128x128xf32>
      %25 = arith.mulf %24, %23 : vector<128x128xf32>
      %26 = arith.truncf %25 : vector<128x128xf32> to vector<128x128xbf16>
      %c0_20 = arith.constant 0 : index
      %c0_21 = arith.constant 0 : index
      %27 = vector.load %arg5[%c0_20, %c0_21] : memref<128x128xbf16, #tpu.memory_space<vmem>>, vector<128x128xbf16>
      %cst_22 = arith.constant dense<0.000000e+00> : vector<128x128xf32>
      %28 = tpu.matmul %26, %27, %cst_22 {dimension_numbers = #tpu.dot_dimension_numbers<[1], [0], [0], [1], [0, 0, 1, 1], [], []>} : vector<128x128xbf16>, vector<128x128xbf16>, vector<128x128xf32> -> vector<128x128xf32>
      %c0_23 = arith.constant 0 : index
      %c0_24 = arith.constant 0 : index
      %29 = vector.load %arg6[%c0_23, %c0_24] : memref<1x128xf32, #tpu.memory_space<vmem>>, vector<1x128xf32>
      %30 = vector.broadcast %29 : vector<1x128xf32> to vector<128x128xf32>
      %31 = arith.addf %28, %30 : vector<128x128xf32>
      %cst_25 = arith.constant 0.000000e+00 : f32
      %32 = vector.broadcast %cst_25 : f32 to vector<128x128xf32>
      %33 = arith.maximumf %31, %32 : vector<128x128xf32>
      %c0_26 = arith.constant 0 : index
      %c0_27 = arith.constant 0 : index
      %34 = vector.load %arg7[%c0_26, %c0_27] : memref<128x8xf32, #tpu.memory_space<vmem>>, vector<128x8xf32>
      %35 = vector.shape_cast %34 : vector<128x8xf32> to vector<128x8x1xf32>
      %cst_28 = arith.constant 0.000000e+00 : f32
      %36 = vector.broadcast %cst_28 : f32 to vector<128x8x1xf32>
      %37 = arith.cmpf ogt, %35, %36 : vector<128x8x1xf32>
      %38 = vector.shape_cast %33 : vector<128x128xf32> to vector<128x1x128xf32>
      %cst_29 = arith.constant 0.000000e+00 : f32
      %39 = vector.shape_cast %37 : vector<128x8x1xi1> to vector<128x8x1xi1>
      %40 = vector.broadcast %39 : vector<128x8x1xi1> to vector<128x8x128xi1>
      %41 = vector.shape_cast %38 : vector<128x1x128xf32> to vector<128x1x128xf32>
      %42 = vector.broadcast %41 : vector<128x1x128xf32> to vector<128x8x128xf32>
      %43 = vector.broadcast %cst_29 : f32 to vector<128x8x128xf32>
      %44 = arith.select %40, %42, %43 : vector<128x8x128xi1>, vector<128x8x128xf32>
      %c0_30 = arith.constant 0 : index
      %c0_31 = arith.constant 0 : index
      %45 = vector.load %arg20[%c0_30, %c0_31] : memref<8x128xf32, #tpu.memory_space<vmem>>, vector<8x128xf32>
      %cst_32 = arith.constant dense<0.000000e+00> : vector<8x128xf32>
      %46 = vector.multi_reduction <add>, %44, %cst_32 [0] : vector<128x8x128xf32> to vector<8x128xf32>
      %47 = arith.addf %45, %46 : vector<8x128xf32>
      %c0_33 = arith.constant 0 : index
      %c0_34 = arith.constant 0 : index
      %48 = vector.load %arg20[%c0_33, %c0_34] : memref<8x128xf32, #tpu.memory_space<vmem>>, vector<8x128xf32>
      tpu.vector_store %arg20[%c0_33, %c0_34], %47 {strides = array<i32>} : memref<8x128xf32, #tpu.memory_space<vmem>>, vector<8x128xf32>,
      %c0_35 = arith.constant 0 : index
      %c0_36 = arith.constant 0 : index
      %49 = vector.load %arg19[%c0_35, %c0_36] : memref<8x128xf32, #tpu.memory_space<vmem>>, vector<8x128xf32>
      %cst_37 = arith.constant dense<0xFF800000> : vector<8x128xf32>
      %50 = vector.multi_reduction <maximumf>, %44, %cst_37 [0] : vector<128x8x128xf32> to vector<8x128xf32>
      %51 = arith.maximumf %49, %50 : vector<8x128xf32>
      %c0_38 = arith.constant 0 : index
      %c0_39 = arith.constant 0 : index
      %52 = vector.load %arg19[%c0_38, %c0_39] : memref<8x128xf32, #tpu.memory_space<vmem>>, vector<8x128xf32>
      tpu.vector_store %arg19[%c0_38, %c0_39], %51 {strides = array<i32>} : memref<8x128xf32, #tpu.memory_space<vmem>>, vector<8x128xf32>,
    } else {
    }
    %c0_i32_13 = arith.constant 0 : i32
    %17 = arith.cmpi eq, %arg0, %c0_i32_13 : i32
    %c0_i32_14 = arith.constant 0 : i32
    %18 = arith.cmpi eq, %arg1, %c0_i32_14 : i32
    %19 = arith.andi %17, %18 : i1
    %20 = arith.extui %19 : i1 to i32
    %c0_i32_15 = arith.constant 0 : i32
    %21 = arith.cmpi ne, %20, %c0_i32_15 : i32
    scf.if %21 {
      %c0_16 = arith.constant 0 : index
      %c0_17 = arith.constant 0 : index
      %22 = vector.load %arg19[%c0_16, %c0_17] : memref<8x128xf32, #tpu.memory_space<vmem>>, vector<8x128xf32>
      %c0_18 = arith.constant 0 : index
      %c0_19 = arith.constant 0 : index
      %23 = vector.load %arg20[%c0_18, %c0_19] : memref<8x128xf32, #tpu.memory_space<vmem>>, vector<8x128xf32>
      %c0_20 = arith.constant 0 : index
      %c0_21 = arith.constant 0 : index
      %24 = vector.load %arg8[%c0_20, %c0_21] : memref<8x1xf32, #tpu.memory_space<vmem>>, vector<8x1xf32>
      %25 = vector.broadcast %24 : vector<8x1xf32> to vector<8x128xf32>
      %26 = arith.mulf %23, %25 : vector<8x128xf32>
      %c0_22 = arith.constant 0 : index
      %c0_23 = arith.constant 0 : index
      %27 = vector.load %arg9[%c0_22, %c0_23] : memref<8x256xf32, #tpu.memory_space<vmem>>, vector<8x256xf32>
      %c0_24 = arith.constant 0 : index
      %c0_25 = arith.constant 0 : index
      %28 = vector.load %arg10[%c0_24, %c0_25] : memref<8x256xf32, #tpu.memory_space<vmem>>, vector<8x256xf32>
      %29 = vector.extract_strided_slice %27 {offsets = [0, 0], sizes = [8, 128], strides = [1, 1]} : vector<8x256xf32> to vector<8x128xf32>
      %cst_26 = arith.constant 0.000000e+00 : f32
      %30 = vector.broadcast %cst_26 : f32 to vector<8x128xf32>
      %31 = arith.maximumf %29, %30 : vector<8x128xf32>
      %32 = vector.extract_strided_slice %28 {offsets = [0, 0], sizes = [8, 128], strides = [1, 1]} : vector<8x256xf32> to vector<8x128xf32>
      %cst_27 = arith.constant 0.000000e+00 : f32
      %33 = vector.broadcast %cst_27 : f32 to vector<8x128xf32>
      %34 = arith.maximumf %32, %33 : vector<8x128xf32>
      %35 = arith.addf %31, %34 : vector<8x128xf32>
      %36 = arith.addf %35, %22 : vector<8x128xf32>
      %37 = vector.extract_strided_slice %27 {offsets = [0, 128], sizes = [8, 128], strides = [1, 1]} : vector<8x256xf32> to vector<8x128xf32>
      %cst_28 = arith.constant 0.000000e+00 : f32
      %38 = vector.broadcast %cst_28 : f32 to vector<8x128xf32>
      %39 = arith.maximumf %37, %38 : vector<8x128xf32>
      %40 = vector.extract_strided_slice %28 {offsets = [0, 128], sizes = [8, 128], strides = [1, 1]} : vector<8x256xf32> to vector<8x128xf32>
      %cst_29 = arith.constant 0.000000e+00 : f32
      %41 = vector.broadcast %cst_29 : f32 to vector<8x128xf32>
      %42 = arith.maximumf %40, %41 : vector<8x128xf32>
      %43 = arith.addf %39, %42 : vector<8x128xf32>
      %44 = arith.addf %43, %26 : vector<8x128xf32>
      %45 = arith.truncf %36 : vector<8x128xf32> to vector<8x128xbf16>
      %c0_30 = arith.constant 0 : index
      %c0_31 = arith.constant 0 : index
      %46 = vector.load %arg11[%c0_30, %c0_31] : memref<256x128xbf16, #tpu.memory_space<vmem>>, vector<128x128xbf16>
      %cst_32 = arith.constant dense<0.000000e+00> : vector<8x128xf32>
      %47 = tpu.matmul %45, %46, %cst_32 {dimension_numbers = #tpu.dot_dimension_numbers<[1], [0], [0], [1], [0, 0, 1, 1], [], []>} : vector<8x128xbf16>, vector<128x128xbf16>, vector<8x128xf32> -> vector<8x128xf32>
      %48 = arith.truncf %44 : vector<8x128xf32> to vector<8x128xbf16>
      %c128 = arith.constant 128 : index
      %c0_33 = arith.constant 0 : index
      %49 = vector.load %arg11[%c128, %c0_33] : memref<256x128xbf16, #tpu.memory_space<vmem>>, vector<128x128xbf16>
      %cst_34 = arith.constant dense<0.000000e+00> : vector<8x128xf32>
      %50 = tpu.matmul %48, %49, %cst_34 {dimension_numbers = #tpu.dot_dimension_numbers<[1], [0], [0], [1], [0, 0, 1, 1], [], []>} : vector<8x128xbf16>, vector<128x128xbf16>, vector<8x128xf32> -> vector<8x128xf32>
      %51 = arith.addf %47, %50 : vector<8x128xf32>
      %c0_35 = arith.constant 0 : index
      %c0_36 = arith.constant 0 : index
      %52 = vector.load %arg12[%c0_35, %c0_36] : memref<1x128xf32, #tpu.memory_space<vmem>>, vector<1x128xf32>
      %53 = vector.broadcast %52 : vector<1x128xf32> to vector<8x128xf32>
      %54 = arith.addf %51, %53 : vector<8x128xf32>
      %cst_37 = arith.constant 0.000000e+00 : f32
      %55 = vector.broadcast %cst_37 : f32 to vector<8x128xf32>
      %56 = arith.maximumf %54, %55 : vector<8x128xf32>
      %57 = arith.truncf %56 : vector<8x128xf32> to vector<8x128xbf16>
      %c0_38 = arith.constant 0 : index
      %c0_39 = arith.constant 0 : index
      %58 = vector.load %arg13[%c0_38, %c0_39] : memref<128x128xbf16, #tpu.memory_space<vmem>>, vector<128x128xbf16>
      %cst_40 = arith.constant dense<0.000000e+00> : vector<8x128xf32>
      %59 = tpu.matmul %57, %58, %cst_40 {dimension_numbers = #tpu.dot_dimension_numbers<[1], [0], [0], [1], [0, 0, 1, 1], [], []>} : vector<8x128xbf16>, vector<128x128xbf16>, vector<8x128xf32> -> vector<8x128xf32>
      %c0_41 = arith.constant 0 : index
      %c0_42 = arith.constant 0 : index
      %60 = vector.load %arg14[%c0_41, %c0_42] : memref<1x128xf32, #tpu.memory_space<vmem>>, vector<1x128xf32>
      %61 = vector.broadcast %60 : vector<1x128xf32> to vector<8x128xf32>
      %62 = arith.addf %59, %61 : vector<8x128xf32>
      %cst_43 = arith.constant 0.000000e+00 : f32
      %63 = vector.broadcast %cst_43 : f32 to vector<8x128xf32>
      %64 = arith.maximumf %62, %63 : vector<8x128xf32>
      %65 = arith.truncf %64 : vector<8x128xf32> to vector<8x128xbf16>
      %c0_44 = arith.constant 0 : index
      %c0_45 = arith.constant 0 : index
      %66 = vector.load %arg15[%c0_44, %c0_45] : memref<128x128xbf16, #tpu.memory_space<vmem>>, vector<128x128xbf16>
      %cst_46 = arith.constant dense<0.000000e+00> : vector<8x128xf32>
      %67 = tpu.matmul %65, %66, %cst_46 {dimension_numbers = #tpu.dot_dimension_numbers<[1], [0], [0], [1], [0, 0, 1, 1], [], []>} : vector<8x128xbf16>, vector<128x128xbf16>, vector<8x128xf32> -> vector<8x128xf32>
      %c0_47 = arith.constant 0 : index
      %c0_48 = arith.constant 0 : index
      %68 = vector.load %arg16[%c0_47, %c0_48] : memref<1x128xf32, #tpu.memory_space<vmem>>, vector<1x128xf32>
      %69 = vector.broadcast %68 : vector<1x128xf32> to vector<8x128xf32>
      %70 = arith.addf %67, %69 : vector<8x128xf32>
      %71 = tpu.iota {dimensions = array<i32: 1>} : vector<8x128xi32>
      %c4_i32 = arith.constant 4 : i32
      %72 = vector.broadcast %c4_i32 : i32 to vector<8x128xi32>
      %73 = arith.cmpi slt, %71, %72 : vector<8x128xi32>
      %cst_49 = arith.constant -3.000000e+38 : f32
      %74 = vector.broadcast %cst_49 : f32 to vector<8x128xf32>
      %75 = arith.select %73, %70, %74 : vector<8x128xi1>, vector<8x128xf32>
      %cst_50 = arith.constant dense<0xFF800000> : vector<8xf32>
      %76 = vector.multi_reduction <maximumf>, %75, %cst_50 [1] : vector<8x128xf32> to vector<8xf32>
      %77 = vector.shape_cast %76 : vector<8xf32> to vector<8x1xf32>
      %78 = vector.broadcast %77 : vector<8x1xf32> to vector<8x128xf32>
      %79 = arith.subf %75, %78 : vector<8x128xf32>
      %80 = math.exp %79 : vector<8x128xf32>
      %cst_51 = arith.constant 0.000000e+00 : f32
      %81 = vector.broadcast %cst_51 : f32 to vector<8x128xf32>
      %82 = arith.select %73, %80, %81 : vector<8x128xi1>, vector<8x128xf32>
      %cst_52 = arith.constant dense<0.000000e+00> : vector<8xf32>
      %83 = vector.multi_reduction <add>, %82, %cst_52 [1] : vector<8x128xf32> to vector<8xf32>
      %84 = vector.shape_cast %83 : vector<8xf32> to vector<8x1xf32>
      %85 = math.log %84 : vector<8x1xf32>
      %86 = arith.addf %85, %77 : vector<8x1xf32>
      %87 = vector.broadcast %86 : vector<8x1xf32> to vector<8x128xf32>
      %88 = arith.subf %75, %87 : vector<8x128xf32>
      %c0_53 = arith.constant 0 : index
      %c0_54 = arith.constant 0 : index
      %89 = vector.load %arg17[%c0_53, %c0_54] : memref<8x128xf32, #tpu.memory_space<vmem>>, vector<8x128xf32>
      tpu.vector_store %arg17[%c0_53, %c0_54], %88 {strides = array<i32>} : memref<8x128xf32, #tpu.memory_space<vmem>>, vector<8x128xf32>,
    } else {
    }
    return
  }
  func.func @transform_0(%arg0: i32, %arg1: i32) -> (i32, i32) {
    %c0_i32 = arith.constant 0 : i32
    return %arg0, %arg1 : i32, i32
  }
  func.func @transform_1(%arg0: i32, %arg1: i32) -> (i32, i32) {
    %c0_i32 = arith.constant 0 : i32
    %c0_i32_0 = arith.constant 0 : i32
    return %arg0, %c0_i32 : i32, i32
  }
  func.func @transform_2(%arg0: i32, %arg1: i32) -> (i32, i32) {
    %c0_i32 = arith.constant 0 : i32
    %c0_i32_0 = arith.constant 0 : i32
    return %arg1, %c0_i32 : i32, i32
  }
  func.func @transform_3(%arg0: i32, %arg1: i32) -> (i32, i32) {
    %c0_i32 = arith.constant 0 : i32
    %c0_i32_0 = arith.constant 0 : i32
    %c0_i32_1 = arith.constant 0 : i32
    return %c0_i32, %c0_i32_0 : i32, i32
  }
  func.func @transform_4(%arg0: i32, %arg1: i32) -> (i32, i32) {
    %c0_i32 = arith.constant 0 : i32
    %c0_i32_0 = arith.constant 0 : i32
    %c0_i32_1 = arith.constant 0 : i32
    return %c0_i32, %c0_i32_0 : i32, i32
  }
  func.func @transform_5(%arg0: i32, %arg1: i32) -> (i32, i32) {
    %c0_i32 = arith.constant 0 : i32
    %c0_i32_0 = arith.constant 0 : i32
    return %arg0, %c0_i32 : i32, i32
  }
  func.func @transform_6(%arg0: i32, %arg1: i32) -> (i32, i32) {
    %c0_i32 = arith.constant 0 : i32
    %c0_i32_0 = arith.constant 0 : i32
    %c0_i32_1 = arith.constant 0 : i32
    return %c0_i32, %c0_i32_0 : i32, i32
  }
  func.func @transform_7(%arg0: i32, %arg1: i32) -> (i32, i32) {
    %c0_i32 = arith.constant 0 : i32
    %c0_i32_0 = arith.constant 0 : i32
    %c0_i32_1 = arith.constant 0 : i32
    return %c0_i32, %c0_i32_0 : i32, i32
  }
  func.func @transform_8(%arg0: i32, %arg1: i32) -> (i32, i32) {
    %c0_i32 = arith.constant 0 : i32
    %c0_i32_0 = arith.constant 0 : i32
    %c0_i32_1 = arith.constant 0 : i32
    return %c0_i32, %c0_i32_0 : i32, i32
  }
  func.func @transform_9(%arg0: i32, %arg1: i32) -> (i32, i32) {
    %c0_i32 = arith.constant 0 : i32
    %c0_i32_0 = arith.constant 0 : i32
    %c0_i32_1 = arith.constant 0 : i32
    return %c0_i32, %c0_i32_0 : i32, i32
  }
  func.func @transform_10(%arg0: i32, %arg1: i32) -> (i32, i32) {
    %c0_i32 = arith.constant 0 : i32
    %c0_i32_0 = arith.constant 0 : i32
    %c0_i32_1 = arith.constant 0 : i32
    return %c0_i32, %c0_i32_0 : i32, i32
  }
  func.func @transform_11(%arg0: i32, %arg1: i32) -> (i32, i32) {
    %c0_i32 = arith.constant 0 : i32
    %c0_i32_0 = arith.constant 0 : i32
    %c0_i32_1 = arith.constant 0 : i32
    return %c0_i32, %c0_i32_0 : i32, i32
  }
  func.func @transform_12(%arg0: i32, %arg1: i32) -> (i32, i32) {
    %c0_i32 = arith.constant 0 : i32
    %c0_i32_0 = arith.constant 0 : i32
    %c0_i32_1 = arith.constant 0 : i32
    return %c0_i32, %c0_i32_0 : i32, i32
  }
  func.func @transform_13(%arg0: i32, %arg1: i32) -> (i32, i32) {
    %c0_i32 = arith.constant 0 : i32
    %c0_i32_0 = arith.constant 0 : i32
    %c0_i32_1 = arith.constant 0 : i32
    return %c0_i32, %c0_i32_0 : i32, i32
  }
  func.func @transform_14(%arg0: i32, %arg1: i32) -> (i32, i32) {
    %c0_i32 = arith.constant 0 : i32
    %c0_i32_0 = arith.constant 0 : i32
    %c0_i32_1 = arith.constant 0 : i32
    return %c0_i32, %c0_i32_0 : i32, i32
  }
  func.func @transform_15(%arg0: i32, %arg1: i32) -> (i32, i32) {
    %c0_i32 = arith.constant 0 : i32
    %c0_i32_0 = arith.constant 0 : i32
    %c0_i32_1 = arith.constant 0 : i32
    return %c0_i32, %c0_i32_0 : i32, i32
  }
}

</mosaic_0001>

<bundles_post_ra>
// kernel: model_forward.5
= control target key start
LH: loop header
LB: loop body
LE: loop exit
PB: predicated region body
PF: predicated region fallthrough
CT: control target
= control target key end

     0   :  { %v761_v1 = vmov 0   ;;  %s939_s2 = inlined_call_operand.vmem [shape: bf16[128,128], index: 2, kind: input, shape index: {}]   ;;  %s940_s1 = inlined_call_operand.vmem [shape: f32[128,1], index: 1, kind: input, shape index: {}]   ;;  %s941_s0 = inlined_call_operand.vmem [shape: bf16[128,128], index: 0, kind: input, shape index: {}]   ;;  %s942_s3 = inlined_call_operand.vmem [shape: bf16[128,128], index: 3, kind: input, shape index: {}]   ;;  %s943_s4 = inlined_call_operand.vmem [shape: f32[1,128], index: 4, kind: input, shape index: {}]   ;;  %s944_s5 = inlined_call_operand.vmem [shape: bf16[128,128], index: 5, kind: output, shape index: {}]  }
   0x1   :  { %v684_v0 = vld [vmem:[%s939_s2 + $0x38] sm:$0xff]  ;;  %757 = vset.pattern.permute.xlu0 %v761_v1  ;;  %758 = vset.pattern.permute.xlu1 %v761_v1  ;;  %v276_v2 = vld [vmem:[%s940_s1 + $0x40] sm:$0xff]  ;;  %v683_v3 = vld [vmem:[%s939_s2 + $0x30] sm:$0xff] }
   0x2   :  { %759 = vset.pattern.permute.xlu2 %v761_v1  ;;  %184 = vmatpush.bf16.msra.mxu0 %v684_v0  ;;  %v268_v4 = vld [vmem:[%s940_s1] sm:$0xff]  ;;  %v682_v5 = vld [vmem:[%s939_s2 + $0x28] sm:$0xff]  ;;  %v680_v9 = vld [vmem:[%s939_s2 + $0x18] sm:$0xff] }
   0x3   :  { %740 = vmatpush.bf16.msra.mxu2 %v684_v0  ;;  %342 = vperm.xlu0 %757, %v276_v2   ;;  %v277_v6 = vld [vmem:[%s940_s1 + $0x48] sm:$0xff]  ;;  %v681_v8 = vld [vmem:[%s939_s2 + $0x20] sm:$0xff]  ;;  %v270_v10 = vld [vmem:[%s940_s1 + $0x10] sm:$0xff] }
   0x4   :  { %302 = vperm.xlu1 %758, %v268_v4   ;;  %v269_v7 = vld [vmem:[%s940_s1 + $0x8] sm:$0xff]  ;;  %v271_v11 = vld [vmem:[%s940_s1 + $0x18] sm:$0xff]  ;;  %v278_v12 = vld [vmem:[%s940_s1 + $0x50] sm:$0xff] }
   0x5   :  { %v679_v13 = vld [vmem:[%s939_s2 + $0x10] sm:$0xff]  ;;  %352 = vperm.xlu2 %759, %v278_v12   ;;  %v678_v14 = vld [vmem:[%s939_s2 + $0x8] sm:$0xff]  ;;  %v272_v16 = vld [vmem:[%s940_s1 + $0x20] sm:$0xff] }
   0x6   :  { %185 = vmatpush.bf16.msra.mxu0 %v683_v3  ;;  %v281_v15 = vld [vmem:[%s940_s1 + $0x68] sm:$0xff]  ;;  %v677_v17 = vld [vmem:[%s939_s2] sm:$0xff]  ;;  %v282_v20 = vld [vmem:[%s940_s1 + $0x70] sm:$0xff] }
   0x7   :  { %741 = vmatpush.bf16.msra.mxu2 %v683_v3  ;;  %v669_v18 = vld [vmem:[%s941_s0] sm:$0xff]  ;;  %v283_v21 = vld [vmem:[%s940_s1 + $0x78] sm:$0xff]  ;;  %v670_v25 = vld [vmem:[%s941_s0 + $0x8] sm:$0xff] }
   0x8   :  { %v673_v19 = vld [vmem:[%s941_s0 + $0x20] sm:$0xff]  ;;  %v279_v22 = vld [vmem:[%s940_s1 + $0x58] sm:$0xff]  ;;  %v674_v26 = vld [vmem:[%s941_s0 + $0x28] sm:$0xff] }
   0x9   :  { %v280_v23 = vld [vmem:[%s940_s1 + $0x60] sm:$0xff]  ;;  %v275_v24 = vld [vmem:[%s940_s1 + $0x38] sm:$0xff]  ;;  %v273_v27 = vld [vmem:[%s940_s1 + $0x28] sm:$0xff] }
   0xa   :  { %186 = vmatpush.bf16.msra.mxu0 %v682_v5  ;;  %v274_v28 = vld [vmem:[%s940_s1 + $0x30] sm:$0xff]  ;;  %v672_v31 = vld [vmem:[%s941_s0 + $0x18] sm:$0xff]  ;;  %v690_v35 = vld [vmem:[%s942_s3 + $0x28] sm:$0xff] }
   0xb   :  { %742 = vmatpush.bf16.msra.mxu2 %v682_v5  ;;  %347 = vperm.xlu0 %757, %v277_v6   ;;  %v671_v29 = vld [vmem:[%s941_s0 + $0x10] sm:$0xff]  ;;  %v676_v32 = vld [vmem:[%s941_s0 + $0x38] sm:$0xff]  ;;  %v689_v36 = vld [vmem:[%s942_s3 + $0x20] sm:$0xff] }
   0xc   :  { %307 = vperm.xlu1 %758, %v269_v7   ;;  %v675_v30 = vld [vmem:[%s941_s0 + $0x30] sm:$0xff]  ;;  %v692_v33 = vld [vmem:[%s942_s3 + $0x38] sm:$0xff]  ;;  %v686_v39 = vld [vmem:[%s942_s3 + $0x8] sm:$0xff] }
   0xd   :  { %357 = vperm.xlu2 %759, %v279_v22   ;;  %472 = vmatpush.bf16.msra.mxu1 %v692_v33  ;;  %v691_v34 = vld [vmem:[%s942_s3 + $0x30] sm:$0xff]  ;;  %v688_v37 = vld [vmem:[%s942_s3 + $0x18] sm:$0xff]  ;;  %v685_v40 = vld [vmem:[%s942_s3] sm:$0xff] }
   0xe   :  { %187 = vmatpush.bf16.msra.mxu0 %v681_v8  ;;  %748 = vmatpush.bf16.msra.mxu3 %v692_v33  ;;  %v687_v38 = vld [vmem:[%s942_s3 + $0x10] sm:$0xff] }
   0xf   :  { %743 = vmatpush.bf16.msra.mxu2 %v681_v8 }
  0x11   :  { %473 = vmatpush.bf16.msra.mxu1 %v691_v34 }
  0x12   :  { %188 = vmatpush.bf16.msra.mxu0 %v680_v9  ;;  %749 = vmatpush.bf16.msra.mxu3 %v691_v34  ;;  %v760_v34 = vld [vmem:[%s943_s4] ss:$0 sm:$0xff] }
  0x13   :  { %744 = vmatpush.bf16.msra.mxu2 %v680_v9  ;;  %312 = vperm.xlu0 %757, %v270_v10  }
  0x14   :  { %317 = vperm.xlu1 %758, %v271_v11  }
  0x15   :  { %362 = vperm.xlu2 %759, %v280_v23   ;;  %474 = vmatpush.bf16.msra.mxu1 %v690_v35 }
  0x16   :  { %189 = vmatpush.bf16.msra.mxu0 %v679_v13  ;;  %750 = vmatpush.bf16.msra.mxu3 %v690_v35 }
  0x17   :  { %745 = vmatpush.bf16.msra.mxu2 %v679_v13 }
  0x19   :  { %475 = vmatpush.bf16.msra.mxu1 %v689_v36 }
  0x1a   :  { %190 = vmatpush.bf16.msra.mxu0 %v678_v14  ;;  %751 = vmatpush.bf16.msra.mxu3 %v689_v36 }
  0x1b   :  { %746 = vmatpush.bf16.msra.mxu2 %v678_v14  ;;  %367 = vperm.xlu0 %757, %v281_v15  }
  0x1c   :  { %322 = vperm.xlu1 %758, %v272_v16  }
  0x1d   :  { %327 = vperm.xlu2 %759, %v273_v27   ;;  %476 = vmatpush.bf16.msra.mxu1 %v688_v37 }
  0x1e   :  { %191 = vmatpush.bf16.msra.mxu0 %v677_v17  ;;  %752 = vmatpush.bf16.msra.mxu3 %v688_v37 }
  0x1f   :  { %747 = vmatpush.bf16.msra.mxu2 %v677_v17 }
  0x21   :  { %192 = vmatmul.bf16.vlgmr.msra.gmra.mxu0 %v669_v18  ;;  %477 = vmatpush.bf16.msra.mxu1 %v687_v38 }
  0x22   :  { %212 = vmatmul.bf16.vlgmr.msra.gmra.mxu2 %v673_v19  ;;  %753 = vmatpush.bf16.msra.mxu3 %v687_v38 }
  0x23   :  { %372 = vperm.xlu0 %757, %v282_v20  }
  0x24   :  { %377 = vperm.xlu1 %758, %v283_v21  }
  0x25   :  { %332 = vperm.xlu2 %759, %v274_v28   ;;  %478 = vmatpush.bf16.msra.mxu1 %v686_v39 }
  0x26   :  { %754 = vmatpush.bf16.msra.mxu3 %v686_v39 }
  0x29   :  { %479 = vmatpush.bf16.msra.mxu1 %v685_v40 }
  0x2a   :  { %755 = vmatpush.bf16.msra.mxu3 %v685_v40 }
  0x2b   :  { %337 = vperm.xlu0 %757, %v275_v24  }
  0x31   :  { %197 = vmatmul.bf16.gmra.mxu0 %v670_v25 }
  0x32   :  { %217 = vmatmul.bf16.gmra.mxu2 %v674_v26 }
  0x41   :  { %202 = vmatmul.bf16.gmra.mxu0 %v671_v29 }
  0x42   :  { %222 = vmatmul.bf16.gmra.mxu2 %v675_v30 }
  0x51   :  { %207 = vmatmul.bf16.gmra.mxu0 %v672_v31 }
  0x52   :  { %227 = vmatmul.bf16.gmra.mxu2 %v676_v32 }
  0x5f   :  { %v353_v48 = vpop.permute.xlu2 %352 }
  0x67   :  { %v358_v57 = vpop.permute.xlu2 %357 }
  0x6f   :  { %v363_v1 = vpop.permute.xlu2 %362 }
  0x75   :  { %v343_v43 = vpop.permute.xlu0 %342 }
  0x76   :  { %v303_v41 = vpop.permute.xlu1 %302 }
  0x77   :  { %v328_v9 = vpop.permute.xlu2 %327 }
  0x7d   :  { %v348_v51 = vpop.permute.xlu0 %347 }
  0x7e   :  { %v308_v46 = vpop.permute.xlu1 %307 }
  0x7f   :  { %v333_v22 = vpop.permute.xlu2 %332 }
  0x85   :  { %v313_v59 = vpop.permute.xlu0 %312 }
  0x86   :  { %v318_v60 = vpop.permute.xlu1 %317 }
  0x8d   :  { %v368_v7 = vpop.permute.xlu0 %367 }
  0x8e   :  { %v323_v10 = vpop.permute.xlu1 %322 }
  0x95   :  { %v373_v15 = vpop.permute.xlu0 %372 }
  0x96   :  { %v378_v28 = vpop.permute.xlu1 %377 }
  0x9d   :  { %v338_v23 = vpop.permute.xlu0 %337 }
  0x9e   :  { %v193_v42 = vpop.f32.mrf.mxu0 }
  0x9f   :  { %v380_v45 = vmul.f32 %v303_v41, %v193_v42 }
  0xa5   :  { %v213_v44 = vpop.f32.mrf.mxu2 }
  0xa6   :  { %v195_v47 = vpop.f32.mrf.mxu0  ;;  %v388_v53 = vmul.f32 %v343_v43, %v213_v44 }
  0xa7   :  { %v381_v49 = vmul.f32 %v308_v46, %v195_v47 }
  0xa9   :  { %v396_v50 = vpack.c.bf16 %v381_v49, %v380_v45 }
  0xab   :  { %480 = vmatmul.bf16.vlgmr.msra.gmra.mxu1 %v396_v50 }
  0xad   :  { %v215_v52 = vpop.f32.mrf.mxu2 }
  0xae   :  { %v389_v54 = vmul.f32 %v348_v51, %v215_v52  ;;  %v198_v55 = vpop.f32.mrf.mxu0 }
  0xaf   :  { %v382_v62 = vmul.f32 %v313_v59, %v198_v55 }
  0xb0   :  { %v400_v56 = vpack.c.bf16 %v389_v54, %v388_v53 }
  0xb2   :  { %500 = vmatmul.bf16.vlgmr.msra.gmra.mxu3 %v400_v56 }
  0xb5   :  { %v218_v58 = vpop.f32.mrf.mxu2 }
  0xb6   :  { %v200_v61 = vpop.f32.mrf.mxu0  ;;  %v390_v3 = vmul.f32 %v353_v48, %v218_v58 }
  0xb7   :  { %v383_v63 = vmul.f32 %v318_v60, %v200_v61 }
  0xb9   :  { %v397_v0 = vpack.c.bf16 %v383_v63, %v382_v62 }
  0xbb   :  { %485 = vmatmul.bf16.gmra.mxu1 %v397_v0 }
  0xbd   :  { %v220_v2 = vpop.f32.mrf.mxu2 }
  0xbe   :  { %v391_v4 = vmul.f32 %v358_v57, %v220_v2  ;;  %v203_v5 = vpop.f32.mrf.mxu0 }
  0xbf   :  { %v384_v12 = vmul.f32 %v323_v10, %v203_v5 }
  0xc0   :  { %v401_v6 = vpack.c.bf16 %v391_v4, %v390_v3 }
  0xc2   :  { %505 = vmatmul.bf16.gmra.mxu3 %v401_v6 }
  0xc5   :  { %v223_v8 = vpop.f32.mrf.mxu2 }
  0xc6   :  { %v205_v11 = vpop.f32.mrf.mxu0  ;;  %v392_v17 = vmul.f32 %v363_v1, %v223_v8 }
  0xc7   :  { %v385_v13 = vmul.f32 %v328_v9, %v205_v11 }
  0xc9   :  { %v398_v14 = vpack.c.bf16 %v385_v13, %v384_v12 }
  0xcb   :  { %490 = vmatmul.bf16.gmra.mxu1 %v398_v14 }
  0xcd   :  { %v225_v16 = vpop.f32.mrf.mxu2 }
  0xce   :  { %v393_v18 = vmul.f32 %v368_v7, %v225_v16  ;;  %v208_v19 = vpop.f32.mrf.mxu0 }
  0xcf   :  { %v386_v25 = vmul.f32 %v333_v22, %v208_v19 }
  0xd0   :  { %v402_v20 = vpack.c.bf16 %v393_v18, %v392_v17 }
  0xd2   :  { %510 = vmatmul.bf16.gmra.mxu3 %v402_v20 }
  0xd5   :  { %v228_v21 = vpop.f32.mrf.mxu2 }
  0xd6   :  { %v210_v24 = vpop.f32.mrf.mxu0  ;;  %v394_v30 = vmul.f32 %v373_v15, %v228_v21 }
  0xd7   :  { %v387_v26 = vmul.f32 %v338_v23, %v210_v24 }
  0xd9   :  { %v399_v27 = vpack.c.bf16 %v387_v26, %v386_v25 }
  0xdb   :  { %495 = vmatmul.bf16.gmra.mxu1 %v399_v27 }
  0xdd   :  { %v230_v29 = vpop.f32.mrf.mxu2 }
  0xde   :  { %v395_v31 = vmul.f32 %v378_v28, %v230_v29 }
  0xe0   :  { %v403_v32 = vpack.c.bf16 %v395_v31, %v394_v30 }
  0xe2   :  { %515 = vmatmul.bf16.gmra.mxu3 %v403_v32 }
 0x128   :  { %v481_v33 = vpop.f32.mrf.mxu1 }
 0x129   :  { %v482_v35 = vadd.f32 %v760_v34, %v481_v33 }
 0x12b   :  { %v521_v38 = vmax.f32 %v482_v35, 0.0 }
 0x130   :  { %v483_v36 = vpop.f32.mrf.mxu1 }
 0x131   :  { %v484_v37 = vadd.f32 %v760_v34, %v483_v36 }
 0x133   :  { %v522_v39 = vmax.f32 %v484_v37, 0.0 }
 0x135   :  { %v501_v40 = vpop.f32.mrf.mxu3  ;;  %v696_v41 = vpack.c.bf16 %v522_v39, %v521_v38 }
 0x136   :  { %v502_v43 = vadd.f32 %v760_v34, %v501_v40 }
 0x137   :  { %697 = vst [vmem:[%s944_s5] sm:$0xff] %v696_v41  }
 0x138   :  { %v486_v42 = vpop.f32.mrf.mxu1  ;;  %v529_v46 = vmax.f32 %v502_v43, 0.0 }
 0x139   :  { %v487_v47 = vadd.f32 %v760_v34, %v486_v42 }
 0x13b   :  { %v523_v52 = vmax.f32 %v487_v47, 0.0 }
 0x13d   :  { %v503_v44 = vpop.f32.mrf.mxu3 }
 0x13e   :  { %v504_v45 = vadd.f32 %v760_v34, %v503_v44 }
 0x140   :  { %v530_v48 = vmax.f32 %v504_v45, 0.0  ;;  %v488_v49 = vpop.f32.mrf.mxu1 }
 0x141   :  { %v489_v51 = vadd.f32 %v760_v34, %v488_v49 }
 0x142   :  { %v716_v50 = vpack.c.bf16 %v530_v48, %v529_v46 }
 0x143   :  { %v524_v53 = vmax.f32 %v489_v51, 0.0 }
 0x144   :  { %736 = vst [vmem:[%s944_s5 + $0x20] sm:$0xff] %v716_v50  }
 0x145   :  { %v506_v54 = vpop.f32.mrf.mxu3  ;;  %v701_v55 = vpack.c.bf16 %v524_v53, %v523_v52 }
 0x146   :  { %v507_v57 = vadd.f32 %v760_v34, %v506_v54 }
 0x147   :  { %733 = vst [vmem:[%s944_s5 + $0x8] sm:$0xff] %v701_v55  }
 0x148   :  { %v491_v56 = vpop.f32.mrf.mxu1  ;;  %v531_v60 = vmax.f32 %v507_v57, 0.0 }
 0x149   :  { %v492_v61 = vadd.f32 %v760_v34, %v491_v56 }
 0x14b   :  { %v525_v2 = vmax.f32 %v492_v61, 0.0 }
 0x14d   :  { %v508_v58 = vpop.f32.mrf.mxu3 }
 0x14e   :  { %v509_v59 = vadd.f32 %v760_v34, %v508_v58 }
 0x150   :  { %v532_v62 = vmax.f32 %v509_v59, 0.0  ;;  %v493_v63 = vpop.f32.mrf.mxu1 }
 0x151   :  { %v494_v1 = vadd.f32 %v760_v34, %v493_v63 }
 0x152   :  { %v721_v0 = vpack.c.bf16 %v532_v62, %v531_v60 }
 0x153   :  { %v526_v3 = vmax.f32 %v494_v1, 0.0 }
 0x154   :  { %737 = vst [vmem:[%s944_s5 + $0x28] sm:$0xff] %v721_v0  }
 0x155   :  { %v511_v4 = vpop.f32.mrf.mxu3  ;;  %v706_v5 = vpack.c.bf16 %v526_v3, %v525_v2 }
 0x156   :  { %v512_v7 = vadd.f32 %v760_v34, %v511_v4 }
 0x157   :  { %734 = vst [vmem:[%s944_s5 + $0x10] sm:$0xff] %v706_v5  }
 0x158   :  { %v496_v6 = vpop.f32.mrf.mxu1  ;;  %v533_v10 = vmax.f32 %v512_v7, 0.0 }
 0x159   :  { %v497_v11 = vadd.f32 %v760_v34, %v496_v6 }
 0x15b   :  { %v527_v16 = vmax.f32 %v497_v11, 0.0 }
 0x15d   :  { %v513_v8 = vpop.f32.mrf.mxu3 }
 0x15e   :  { %v514_v9 = vadd.f32 %v760_v34, %v513_v8 }
 0x160   :  { %v534_v12 = vmax.f32 %v514_v9, 0.0  ;;  %v498_v13 = vpop.f32.mrf.mxu1 }
 0x161   :  { %v499_v15 = vadd.f32 %v760_v34, %v498_v13 }
 0x162   :  { %v726_v14 = vpack.c.bf16 %v534_v12, %v533_v10 }
 0x163   :  { %v528_v17 = vmax.f32 %v499_v15, 0.0 }
 0x164   :  { %738 = vst [vmem:[%s944_s5 + $0x30] sm:$0xff] %v726_v14  }
 0x165   :  { %v516_v18 = vpop.f32.mrf.mxu3  ;;  %v711_v19 = vpack.c.bf16 %v528_v17, %v527_v16 }
 0x166   :  { %v517_v20 = vadd.f32 %v760_v34, %v516_v18 }
 0x167   :  { %735 = vst [vmem:[%s944_s5 + $0x18] sm:$0xff] %v711_v19  }
 0x168   :  { %v535_v23 = vmax.f32 %v517_v20, 0.0 }
 0x16d   :  { %v518_v21 = vpop.f32.mrf.mxu3 }
 0x16e   :  { %v519_v22 = vadd.f32 %v760_v34, %v518_v21 }
 0x170   :  { %v536_v24 = vmax.f32 %v519_v22, 0.0 }
 0x172   :  { %v731_v25 = vpack.c.bf16 %v536_v24, %v535_v23 }
 0x174   :  { %739 = vst [vmem:[%s944_s5 + $0x38] sm:$0xff] %v731_v25  }

// kernel: model_forward.8
= control target key start
LH: loop header
LB: loop body
LE: loop exit
PB: predicated region body
PF: predicated region fallthrough
CT: control target
= control target key end

     0   :  { %v69_v0 = vlaneseq  ;;  %s2951_s0 = inlined_call_operand.vmem [shape: f32[128,8], index: 0, kind: input, shape index: {}]   ;;  %s2952_s2 = inlined_call_operand.vmem [shape: bf16[128,128], index: 2, kind: input, shape index: {}]   ;;  %s2953_s1 = inlined_call_operand.vmem [shape: f32[8,1], index: 1, kind: input, shape index: {}]   ;;  %s2954_s3 = inlined_call_operand.vmem [shape: f32[8,256], index: 3, kind: output, shape index: {}]  }
   0x1   :  { %v20_v2 = vld [vmem:[%s2951_s0] sm:$0xff]  ;;  %v21_v9 = vld [vmem:[%s2951_s0 + $0x8] sm:$0xff]  ;;  %v22_v19 = vld [vmem:[%s2951_s0 + $0x10] sm:$0xff] }
   0x2   :  { %v70_v1 = vshrl.u32 %v69_v0, 7  ;;  %v96_v3 = vperm.slane %v20_v2, 4  ;;  %v82_v4 = vperm.slane %v20_v2, 2  ;;  %v68_v5 = vperm.slane %v20_v2, 0  ;;  %v23_v29 = vld [vmem:[%s2951_s0 + $0x18] sm:$0xff]  ;;  %v24_v36 = vld [vmem:[%s2951_s0 + $0x20] sm:$0xff] }
   0x3   :  { %v103_v6 = vperm.slane %v20_v2, 5  ;;  %v89_v7 = vperm.slane %v20_v2, 3  ;;  %v75_v8 = vperm.slane %v20_v2, 1  ;;  %v124_v10 = vperm.slane %v21_v9, 0  ;;  %v25_v47 = vld [vmem:[%s2951_s0 + $0x28] sm:$0xff]  ;;  %v2139_v49 = vld [vmem:[%s2952_s2] sm:$0xff]  }
   0x4   :  { %2180 = vset.pattern.permute.xlu2 %v70_v1  ;;  %2179 = vset.pattern.permute.xlu1 %v70_v1  ;;  %v117_v11 = vperm.slane %v20_v2, 7  ;;  %v110_v12 = vperm.slane %v20_v2, 6  ;;  %v145_v13 = vperm.slane %v21_v9, 3  ;;  %v138_v14 = vperm.slane %v21_v9, 2 }
   0x5   :  { %2178 = vset.pattern.permute.xlu0 %v70_v1  ;;  %v131_v15 = vperm.slane %v21_v9, 1  ;;  %v166_v16 = vperm.slane %v21_v9, 6  ;;  %v159_v17 = vperm.slane %v21_v9, 5  ;;  %v152_v18 = vperm.slane %v21_v9, 4 }
   0x6   :  { %v187_v20 = vperm.slane %v22_v19, 1  ;;  %v180_v21 = vperm.slane %v22_v19, 0  ;;  %v173_v22 = vperm.slane %v21_v9, 7  ;;  %v208_v23 = vperm.slane %v22_v19, 4 }
   0x7   :  { %v201_v24 = vperm.slane %v22_v19, 3  ;;  %v194_v25 = vperm.slane %v22_v19, 2  ;;  %v229_v26 = vperm.slane %v22_v19, 7  ;;  %v222_v27 = vperm.slane %v22_v19, 6 }
   0x8   :  { %v215_v28 = vperm.slane %v22_v19, 5  ;;  %v250_v30 = vperm.slane %v23_v29, 2  ;;  %v243_v31 = vperm.slane %v23_v29, 1  ;;  %v236_v32 = vperm.slane %v23_v29, 0 }
   0x9   :  { %v271_v33 = vperm.slane %v23_v29, 5  ;;  %v264_v34 = vperm.slane %v23_v29, 4  ;;  %v257_v35 = vperm.slane %v23_v29, 3  ;;  %v292_v37 = vperm.slane %v24_v36, 0 }
   0xa   :  { %v285_v38 = vperm.slane %v23_v29, 7  ;;  %v278_v39 = vperm.slane %v23_v29, 6  ;;  %v313_v40 = vperm.slane %v24_v36, 3  ;;  %v306_v41 = vperm.slane %v24_v36, 2 }
   0xb   :  { %v299_v42 = vperm.slane %v24_v36, 1  ;;  %v334_v44 = vperm.slane %v24_v36, 6  ;;  %v327_v45 = vperm.slane %v24_v36, 5  ;;  %v320_v46 = vperm.slane %v24_v36, 4 }
   0xc   :  { %101 = vperm.xlu2 %2180, %v96_v3   ;;  %87 = vperm.xlu1 %2179, %v82_v4   ;;  %v355_v50 = vperm.slane %v25_v47, 1  ;;  %v348_v51 = vperm.slane %v25_v47, 0  ;;  %v341_v52 = vperm.slane %v24_v36, 7  ;;  %v2225_v53 = vunpack.c.l.bf16 %v2139_v49 }
   0xd   :  { %73 = vperm.xlu0 %2178, %v68_v5   ;;  %v376_v56 = vperm.slane %v25_v47, 4  ;;  %v369_v57 = vperm.slane %v25_v47, 3  ;;  %v2228_v58 = vunpack.c.h.bf16 %v2139_v49  ;;  %v362_v59 = vperm.slane %v25_v47, 2 }
   0xe   :  { %v1111_v55 = vrot.slane %v2225_v53, 4  ;;  %v1476_v62 = vperm.slane %v2225_v53, 0  ;;  %v1112_v2 = vrot.slane %v2225_v53, 5  ;;  %v397_v4 = vperm.slane %v25_v47, 7 }
   0xf   :  { %v1484_v61 = vperm.slane %v2228_v58, 0  ;;  %v390_v5 = vperm.slane %v25_v47, 6  ;;  %v1108_v9 = vrot.slane %v2225_v53, 1  ;;  %v1117_v29 = vrot.slane %v2228_v58, 3 }
  0x10   :  { %v1480_v60 = vperm.slane %v1111_v55, 0  ;;  %v2276_v55 = vld [vmem:[%s2952_s2 + $0x8] sm:$0xff]  }
  0x14   :  { %108 = vperm.xlu2 %2180, %v103_v6   ;;  %94 = vperm.xlu1 %2179, %v89_v7  }
  0x15   :  { %80 = vperm.xlu0 %2178, %v75_v8   ;;  %v383_v8 = vperm.slane %v25_v47, 5 }
  0x1c   :  { %129 = vperm.xlu2 %2180, %v124_v10   ;;  %122 = vperm.xlu1 %2179, %v117_v11   ;;  %v1481_v11 = vperm.slane %v1112_v2, 0 }
  0x1d   :  { %115 = vperm.xlu0 %2178, %v110_v12   ;;  %v1109_v12 = vrot.slane %v2225_v53, 2 }
  0x24   :  { %150 = vperm.xlu2 %2180, %v145_v13   ;;  %143 = vperm.xlu1 %2179, %v138_v14   ;;  %v2242_v13 = vld [vmem:[%s2951_s0 + $0x30] sm:$0xff] }
  0x25   :  { %136 = vperm.xlu0 %2178, %v131_v15   ;;  %v1110_v15 = vrot.slane %v2225_v53, 3  ;;  %v425_v49 = vperm.slane %v2242_v13, 3 }
  0x2c   :  { %171 = vperm.xlu2 %2180, %v166_v16   ;;  %164 = vperm.xlu1 %2179, %v159_v17   ;;  %v1477_v16 = vperm.slane %v1108_v9, 0  ;;  %v1119_v9 = vrot.slane %v2228_v58, 5 }
  0x2d   :  { %157 = vperm.xlu0 %2178, %v152_v18  }
  0x34   :  { %192 = vperm.xlu2 %2180, %v187_v20   ;;  %185 = vperm.xlu1 %2179, %v180_v21   ;;  %v1478_v20 = vperm.slane %v1109_v12, 0  ;;  %v446_v12 = vperm.slane %v2242_v13, 6 }
  0x35   :  { %178 = vperm.xlu0 %2178, %v173_v22   ;;  %v418_v22 = vperm.slane %v2242_v13, 2 }
  0x3c   :  { %213 = vperm.xlu2 %2180, %v208_v23   ;;  %206 = vperm.xlu1 %2179, %v201_v24   ;;  %v411_v23 = vperm.slane %v2242_v13, 1  ;;  %v1114_v24 = vrot.slane %v2225_v53, 7 }
  0x3d   :  { %199 = vperm.xlu0 %2178, %v194_v25   ;;  %v1479_v25 = vperm.slane %v1110_v15, 0  ;;  %v1118_v15 = vrot.slane %v2228_v58, 4 }
  0x44   :  { %234 = vperm.xlu2 %2180, %v229_v26   ;;  %227 = vperm.xlu1 %2179, %v222_v27   ;;  %v404_v27 = vperm.slane %v2242_v13, 0 }
  0x45   :  { %220 = vperm.xlu0 %2178, %v215_v28   ;;  %v1113_v28 = vrot.slane %v2225_v53, 6 }
  0x47   :  { %v1482_v36 = vperm.slane %v1113_v28, 0 }
  0x4c   :  { %255 = vperm.xlu2 %2180, %v250_v30   ;;  %248 = vperm.xlu1 %2179, %v243_v31  }
  0x4d   :  { %241 = vperm.xlu0 %2178, %v236_v32  }
  0x54   :  { %276 = vperm.xlu2 %2180, %v271_v33   ;;  %269 = vperm.xlu1 %2179, %v264_v34   ;;  %v1483_v34 = vperm.slane %v1114_v24, 0 }
  0x55   :  { %262 = vperm.xlu0 %2178, %v257_v35  }
  0x5c   :  { %297 = vperm.xlu2 %2180, %v292_v37   ;;  %290 = vperm.xlu1 %2179, %v285_v38   ;;  %v1487_v37 = vperm.slane %v1117_v29, 0 }
  0x5d   :  { %283 = vperm.xlu0 %2178, %v278_v39  }
  0x64   :  { %318 = vperm.xlu2 %2180, %v313_v40   ;;  %311 = vperm.xlu1 %2179, %v306_v41  }
  0x65   :  { %304 = vperm.xlu0 %2178, %v299_v42   ;;  %v439_v42 = vperm.slane %v2242_v13, 5 }
  0x66   :  { %v102_v43 = vpop.permute.xlu2 %101 }
  0x67   :  { %vm968_vm0 = vcmp.gt.f32.partialorder %v102_v43, 0.0  ;;  %v432_v43 = vperm.slane %v2242_v13, 4 }
  0x68   :  { %v1736_v1 = vsel %vm968_vm0, %v1480_v60, 0.0  ;;  %v2283_v60 = vld [vmem:[%s2951_s0 + $0x38] sm:$0xff] }
  0x69   :  { %v481_v28 = vperm.slane %v2283_v60, 3  ;;  %v474_v29 = vperm.slane %v2283_v60, 2 }
  0x6c   :  { %339 = vperm.xlu2 %2180, %v334_v44   ;;  %332 = vperm.xlu1 %2179, %v327_v45  }
  0x6d   :  { %325 = vperm.xlu0 %2178, %v320_v46   ;;  %v1116_v46 = vrot.slane %v2228_v58, 2 }
  0x6e   :  { %v109_v48 = vpop.permute.xlu2 %108 }
  0x6f   :  { %vm969_vm3 = vcmp.gt.f32.partialorder %v109_v48, 0.0 }
  0x70   :  { %v2250_v19 = vsel %vm969_vm3, %v1481_v11, 0.0 }
  0x74   :  { %360 = vperm.xlu2 %2180, %v355_v50   ;;  %353 = vperm.xlu1 %2179, %v348_v51   ;;  %v1115_v50 = vrot.slane %v2228_v58, 1 }
  0x75   :  { %346 = vperm.xlu0 %2178, %v341_v52   ;;  %v1120_v52 = vrot.slane %v2228_v58, 6 }
  0x76   :  { %v130_v54 = vpop.permute.xlu2 %129 }
  0x77   :  { %vm972_vm1 = vcmp.gt.f32.partialorder %v130_v54, 0.0 }
  0x78   :  { %v2235_v6 = vsel %vm972_vm1, %v1484_v61, 0.0  ;;  %v1485_v61 = vperm.slane %v1115_v50, 0 }
  0x7c   :  { %381 = vperm.xlu2 %2180, %v376_v56   ;;  %374 = vperm.xlu1 %2179, %v369_v57  }
  0x7d   :  { %367 = vperm.xlu0 %2178, %v362_v59   ;;  %v1486_v59 = vperm.slane %v1116_v46, 0 }
  0x7e   :  { %v2232_v63 = vpop.permute.xlu2 %150  ;;  %v88_v0 = vpop.permute.xlu1 %87 }
  0x7f   :  { %v74_v3 = vpop.permute.xlu0 %73  ;;  %vm966_vm4 = vcmp.gt.f32.partialorder %v88_v0, 0.0  ;;  %vm975_vm7 = vcmp.gt.f32.partialorder %v2232_v63, 0.0  ;;  %v2286_v63 = vunpack.c.l.bf16 %v2276_v55 }
  0x80   :  { %vm964_vm2 = vcmp.gt.f32.partialorder %v74_v3, 0.0  ;;  %v1734_v32 = vsel %vm966_vm4, %v1478_v20, 0.0  ;;  %v1743_v51 = vsel %vm975_vm7, %v1487_v37, 0.0 }
  0x81   :  { %v1732_v7 = vsel %vm964_vm2, %v1476_v62, 0.0  ;;  %v1490_v62 = vperm.slane %v1120_v52, 0  ;;  %v1123_v52 = vrot.slane %v2286_v63, 2 }
  0x82   :  { %v1991_v10 = vmax.f32 %v1732_v7, %v1736_v1 }
  0x84   :  { %402 = vperm.xlu2 %2180, %v397_v4   ;;  %395 = vperm.xlu1 %2179, %v390_v5   ;;  %v2245_v14 = vmax.f32 %v1991_v10, %v2235_v6  ;;  %v460_v4 = vperm.slane %v2283_v60, 0  ;;  %v453_v5 = vperm.slane %v2242_v13, 7 }
  0x85   :  { %388 = vperm.xlu0 %2178, %v383_v8  }
  0x86   :  { %v2248_v17 = vpop.permute.xlu2 %171  ;;  %v95_v18 = vpop.permute.xlu1 %94 }
  0x87   :  { %v81_v21 = vpop.permute.xlu0 %80  ;;  %vm967_vm6 = vcmp.gt.f32.partialorder %v95_v18, 0.0  ;;  %vm978_vm10 = vcmp.gt.f32.partialorder %v2248_v17, 0.0  ;;  %v1122_v17 = vrot.slane %v2286_v63, 1 }
  0x88   :  { %vm965_vm5 = vcmp.gt.f32.partialorder %v81_v21, 0.0  ;;  %v1735_v35 = vsel %vm967_vm6, %v1479_v25, 0.0  ;;  %v1489_v21 = vperm.slane %v1119_v9, 0 }
  0x89   :  { %v2255_v26 = vsel %vm965_vm5, %v1477_v16, 0.0  ;;  %v2299_v16 = vsel %vm978_vm10, %v1490_v62, 0.0 }
  0x8a   :  { %v1861_v30 = vadd.f32 %v2255_v26, %v1732_v7  ;;  %v1992_v31 = vmax.f32 %v2255_v26, %v2250_v19 }
  0x8c   :  { %v1862_v33 = vadd.f32 %v1861_v30, %v1734_v32  ;;  %423 = vperm.xlu2 %2180, %v418_v22   ;;  %416 = vperm.xlu1 %2179, %v411_v23   ;;  %v1488_v22 = vperm.slane %v1118_v15, 0  ;;  %v1493_v23 = vperm.slane %v1122_v17, 0  ;;  %v1127_v15 = vrot.slane %v2286_v63, 6 }
  0x8d   :  { %409 = vperm.xlu0 %2178, %v404_v27  }
  0x8e   :  { %v1863_v38 = vadd.f32 %v1862_v33, %v1735_v35  ;;  %v2263_v39 = vpop.permute.xlu2 %192  ;;  %v123_v40 = vpop.permute.xlu1 %122  ;;  %v1121_v33 = vrot.slane %v2228_v58, 7 }
  0x8f   :  { %vm971_vm8 = vcmp.gt.f32.partialorder %v123_v40, 0.0  ;;  %v116_v41 = vpop.permute.xlu0 %115  ;;  %vm981_vm13 = vcmp.gt.f32.partialorder %v2263_v39, 0.0  ;;  %v1492_v40 = vperm.slane %v2286_v63, 0 }
  0x90   :  { %v1864_v44 = vadd.f32 %v1863_v38, %v1736_v1  ;;  %v1739_v45 = vsel %vm971_vm8, %v1483_v34, 0.0  ;;  %vm970_vm9 = vcmp.gt.f32.partialorder %v116_v41, 0.0  ;;  %v1749_v34 = vsel %vm981_vm13, %v1493_v23, 0.0 }
  0x91   :  { %v1994_v47 = vmax.f32 %v1735_v35, %v1739_v45  ;;  %v1738_v48 = vsel %vm970_vm9, %v1482_v36, 0.0  ;;  %v1125_v35 = vrot.slane %v2286_v63, 4  ;;  %v1491_v41 = vperm.slane %v1121_v33, 0 }
  0x92   :  { %v1865_v53 = vadd.f32 %v1864_v44, %v2250_v19  ;;  %v1993_v54 = vmax.f32 %v1734_v32, %v1738_v48  ;;  %v467_v32 = vperm.slane %v2283_v60, 1 }
  0x93   :  { %v2278_v56 = vmax.f32 %v1994_v47, %v1743_v51  ;;  %v495_v47 = vperm.slane %v2283_v60, 5 }
  0x94   :  { %v1866_v57 = vadd.f32 %v1865_v53, %v1738_v48  ;;  %444 = vperm.xlu2 %2180, %v439_v42   ;;  %437 = vperm.xlu1 %2179, %v432_v43   ;;  %v1496_v42 = vperm.slane %v1125_v35, 0  ;;  %v1124_v48 = vrot.slane %v2286_v63, 3 }
  0x95   :  { %430 = vperm.xlu0 %2178, %v425_v49  }
  0x96   :  { %v1867_v0 = vadd.f32 %v1866_v57, %v1739_v45  ;;  %v2288_v1 = vpop.permute.xlu2 %213  ;;  %v144_v2 = vpop.permute.xlu1 %143 }
  0x97   :  { %vm974_vm11 = vcmp.gt.f32.partialorder %v144_v2, 0.0  ;;  %v137_v3 = vpop.permute.xlu0 %136  ;;  %vm984_vm0 = vcmp.gt.f32.partialorder %v2288_v1, 0.0  ;;  %v2336_v1 = vld [vmem:[%s2951_s0 + $0x40] sm:$0xff]  ;;  %v1494_v2 = vperm.slane %v1123_v52, 0 }
  0x98   :  { %v1868_v7 = vadd.f32 %v1867_v0, %v2235_v6  ;;  %v1742_v8 = vsel %vm974_vm11, %v1486_v59, 0.0  ;;  %vm973_vm12 = vcmp.gt.f32.partialorder %v137_v3, 0.0  ;;  %v2327_v53 = vsel %vm984_vm0, %v1496_v42, 0.0 }
  0x99   :  { %v2295_v10 = vmax.f32 %v1993_v54, %v1742_v8  ;;  %v1741_v11 = vsel %vm973_vm12, %v1485_v61, 0.0  ;;  %v1128_v54 = vrot.slane %v2286_v63, 7  ;;  %v1495_v0 = vperm.slane %v1124_v48, 0 }
  0x9a   :  { %v1869_v18 = vadd.f32 %v1868_v7, %v1741_v11  ;;  %v1996_v19 = vmax.f32 %v1992_v31, %v1741_v11  ;;  %v523_v9 = vperm.slane %v2336_v1, 1  ;;  %v530_v33 = vperm.slane %v2336_v1, 2 }
  0x9b   :  { %v2001_v6 = vmax.f32 %v2295_v10, %v2299_v16  ;;  %v1499_v3 = vperm.slane %v1128_v54, 0  ;;  %v558_v48 = vperm.slane %v2336_v1, 6  ;;  %v551_v54 = vperm.slane %v2336_v1, 5 }
  0x9c   :  { %v1870_v20 = vadd.f32 %v1869_v18, %v1742_v8  ;;  %465 = vperm.xlu2 %2180, %v460_v4   ;;  %458 = vperm.xlu1 %2179, %v453_v5   ;;  %v2339_v4 = vunpack.c.h.bf16 %v2276_v55  ;;  %v509_v18 = vperm.slane %v2283_v60, 7 }
  0x9d   :  { %451 = vperm.xlu0 %2178, %v446_v12   ;;  %v516_v12 = vperm.slane %v2336_v1, 0 }
  0x9e   :  { %v1871_v24 = vadd.f32 %v1870_v20, %v1743_v51  ;;  %v2304_v13 = vpop.permute.xlu2 %234  ;;  %v165_v25 = vpop.permute.xlu1 %164  ;;  %v488_v51 = vperm.slane %v2283_v60, 4  ;;  %v1133_v35 = vrot.slane %v2339_v4, 5  ;;  %v1500_v42 = vperm.slane %v2339_v4, 0 }
  0x9f   :  { %vm977_vm14 = vcmp.gt.f32.partialorder %v165_v25, 0.0  ;;  %v158_v26 = vpop.permute.xlu0 %157  ;;  %vm987_vm3 = vcmp.gt.f32.partialorder %v2304_v13, 0.0  ;;  %v1498_v25 = vperm.slane %v1127_v15, 0 }
  0xa0   :  { %v1745_v27 = vsel %vm977_vm14, %v1489_v21, 0.0  ;;  %vm976_vm15 = vcmp.gt.f32.partialorder %v158_v26, 0.0  ;;  %v2351_v20 = vsel %vm987_vm3, %v1499_v3, 0.0  ;;  %v1130_v21 = vrot.slane %v2339_v4, 2 }
  0xa1   :  { %v2000_v30 = vmax.f32 %v1996_v19, %v1745_v27  ;;  %v1744_v31 = vsel %vm976_vm15, %v1488_v22, 0.0  ;;  %v1126_v19 = vrot.slane %v2286_v63, 5 }
  0xa2   :  { %v1872_v36 = vadd.f32 %v1871_v24, %v1744_v31  ;;  %v1999_v37 = vmax.f32 %v2245_v14, %v1744_v31  ;;  %v502_v14 = vperm.slane %v2283_v60, 6  ;;  %v1502_v26 = vperm.slane %v1130_v21, 0 }
  0xa3   :  { %v2313_v38 = vmax.f32 %v2000_v30, %v1749_v34  ;;  %v1497_v60 = vperm.slane %v1126_v19, 0  ;;  %v1129_v30 = vrot.slane %v2339_v4, 1 }
  0xa4   :  { %v1873_v39 = vadd.f32 %v1872_v36, %v1745_v27  ;;  %486 = vperm.xlu2 %2180, %v481_v28   ;;  %479 = vperm.xlu1 %2179, %v474_v29   ;;  %v537_v29 = vperm.slane %v2336_v1, 3 }
  0xa5   :  { %472 = vperm.xlu0 %2178, %v467_v32  }
  0xa6   :  { %v1874_v43 = vadd.f32 %v1873_v39, %v2299_v16  ;;  %v2317_v44 = vpop.permute.xlu2 %255  ;;  %v186_v58 = vpop.permute.xlu1 %185  ;;  %v544_v16 = vperm.slane %v2336_v1, 4 }
  0xa7   :  { %vm980_vm1 = vcmp.gt.f32.partialorder %v186_v58, 0.0  ;;  %v179_v45 = vpop.permute.xlu0 %178  ;;  %vm990_vm6 = vcmp.gt.f32.partialorder %v2317_v44, 0.0 }
  0xa8   :  { %v1748_v46 = vsel %vm980_vm1, %v1492_v40, 0.0  ;;  %vm979_vm2 = vcmp.gt.f32.partialorder %v179_v45, 0.0 }
  0xa9   :  { %v2323_v49 = vmax.f32 %v1999_v37, %v1748_v46  ;;  %v1747_v50 = vsel %vm979_vm2, %v1491_v41, 0.0  ;;  %v1501_v41 = vperm.slane %v1129_v30, 0 }
  0xaa   :  { %v1875_v57 = vadd.f32 %v1874_v43, %v1747_v50  ;;  %v2002_v59 = vmax.f32 %v2278_v56, %v1747_v50  ;;  %v1505_v43 = vperm.slane %v1133_v35, 0  ;;  %v1132_v50 = vrot.slane %v2339_v4, 4 }
  0xab   :  { %v2007_v61 = vmax.f32 %v2323_v49, %v2327_v53 }
  0xac   :  { %v1876_v62 = vadd.f32 %v1875_v57, %v1748_v46  ;;  %507 = vperm.xlu2 %2180, %v502_v14   ;;  %500 = vperm.xlu1 %2179, %v495_v47   ;;  %v565_v46 = vperm.slane %v2336_v1, 7  ;;  %v1131_v57 = vrot.slane %v2339_v4, 3  ;;  %v2401_v1 = vld [vmem:[%s2951_s0 + $0x48] sm:$0xff] }
  0xad   :  { %493 = vperm.xlu0 %2178, %v488_v51   ;;  %v579_v15 = vperm.slane %v2401_v1, 1  ;;  %v572_v21 = vperm.slane %v2401_v1, 0 }
  0xae   :  { %v1877_v5 = vadd.f32 %v1876_v62, %v1749_v34  ;;  %v2341_v56 = vpop.permute.xlu2 %276  ;;  %v207_v7 = vpop.permute.xlu1 %206  ;;  %v1758_v34 = vsel %vm990_vm6, %v1502_v26, 0.0 }
  0xaf   :  { %vm983_vm4 = vcmp.gt.f32.partialorder %v207_v7, 0.0  ;;  %v200_v8 = vpop.permute.xlu0 %199  ;;  %vm993_vm9 = vcmp.gt.f32.partialorder %v2341_v56, 0.0  ;;  %v1504_v56 = vperm.slane %v1132_v50, 0  ;;  %v1503_v7 = vperm.slane %v1131_v57, 0 }
  0xb0   :  { %v1751_v11 = vsel %vm983_vm4, %v1495_v0, 0.0  ;;  %vm982_vm5 = vcmp.gt.f32.partialorder %v200_v8, 0.0  ;;  %v621_v50 = vperm.slane %v2401_v1, 7 }
  0xb1   :  { %v2347_v17 = vmax.f32 %v2002_v59, %v1751_v11  ;;  %v1750_v55 = vsel %vm982_vm5, %v1494_v2, 0.0  ;;  %v2388_v59 = vsel %vm993_vm9, %v1505_v43, 0.0 }
  0xb2   :  { %v1878_v22 = vadd.f32 %v1877_v5, %v1750_v55  ;;  %v2005_v23 = vmax.f32 %v2001_v6, %v1750_v55  ;;  %v1135_v55 = vrot.slane %v2339_v4, 7 }
  0xb3   :  { %v2010_v24 = vmax.f32 %v2347_v17, %v2351_v20  ;;  %v607_v17 = vperm.slane %v2401_v1, 5 }
  0xb4   :  { %v1879_v13 = vadd.f32 %v1878_v22, %v1751_v11  ;;  %528 = vperm.xlu2 %2180, %v523_v9   ;;  %521 = vperm.xlu1 %2179, %v516_v12   ;;  %v1134_v22 = vrot.slane %v2339_v4, 6 }
  0xb5   :  { %514 = vperm.xlu0 %2178, %v509_v18  }
  0xb6   :  { %v1880_v63 = vadd.f32 %v1879_v13, %v2327_v53  ;;  %v2360_v27 = vpop.permute.xlu2 %297  ;;  %v228_v28 = vpop.permute.xlu1 %227 }
  0xb7   :  { %vm986_vm7 = vcmp.gt.f32.partialorder %v228_v28, 0.0  ;;  %v221_v10 = vpop.permute.xlu0 %220  ;;  %vm996_vm12 = vcmp.gt.f32.partialorder %v2360_v27, 0.0  ;;  %v1507_v27 = vperm.slane %v1135_v55, 0  ;;  %v1506_v28 = vperm.slane %v1134_v22, 0 }
  0xb8   :  { %v1754_v6 = vsel %vm986_vm7, %v1498_v25, 0.0  ;;  %vm985_vm8 = vcmp.gt.f32.partialorder %v221_v10, 0.0 }
  0xb9   :  { %v2009_v31 = vmax.f32 %v2005_v23, %v1754_v6  ;;  %v1753_v32 = vsel %vm985_vm8, %v1497_v60, 0.0 }
  0xba   :  { %v1881_v36 = vadd.f32 %v1880_v63, %v1753_v32  ;;  %v2008_v37 = vmax.f32 %v2313_v38, %v1753_v32  ;;  %v2379_v38 = vld [vmem:[%s2952_s2 + $0x10] sm:$0xff]  }
  0xbb   :  { %v2369_v39 = vmax.f32 %v2009_v31, %v1758_v34  ;;  %v2391_v62 = vunpack.c.l.bf16 %v2379_v38 }
  0xbc   :  { %v1882_v40 = vadd.f32 %v1881_v36, %v1754_v6  ;;  %549 = vperm.xlu2 %2180, %v544_v16   ;;  %542 = vperm.xlu1 %2179, %v537_v29  }
  0xbd   :  { %535 = vperm.xlu0 %2178, %v530_v33   ;;  %v1508_v8 = vperm.slane %v2391_v62, 0  ;;  %v1138_v13 = vrot.slane %v2391_v62, 3  ;;  %v1137_v30 = vrot.slane %v2391_v62, 2  ;;  %v593_v33 = vperm.slane %v2401_v1, 3 }
  0xbe   :  { %v1883_v44 = vadd.f32 %v1882_v40, %v2351_v20  ;;  %v2373_v58 = vpop.permute.xlu2 %318  ;;  %v249_v45 = vpop.permute.xlu1 %248  ;;  %v1141_v36 = vrot.slane %v2391_v62, 6  ;;  %v1140_v57 = vrot.slane %v2391_v62, 5 }
  0xbf   :  { %vm989_vm10 = vcmp.gt.f32.partialorder %v249_v45, 0.0  ;;  %v242_v14 = vpop.permute.xlu0 %241  ;;  %v1764_v23 = vsel %vm996_vm12, %v1508_v8, 0.0  ;;  %v1511_v10 = vperm.slane %v1138_v13, 0  ;;  %vm999_vm15 = vcmp.gt.f32.partialorder %v2373_v58, 0.0 }
  0xc0   :  { %v1757_v47 = vsel %vm989_vm10, %v1501_v41, 0.0  ;;  %vm988_vm11 = vcmp.gt.f32.partialorder %v242_v14, 0.0  ;;  %v1510_v43 = vperm.slane %v1137_v30, 0  ;;  %v1514_v45 = vperm.slane %v1141_v36, 0 }
  0xc1   :  { %v2384_v51 = vmax.f32 %v2008_v37, %v1757_v47  ;;  %v1756_v52 = vsel %vm988_vm11, %v1500_v42, 0.0  ;;  %v1767_v35 = vsel %vm999_vm15, %v1511_v10, 0.0  ;;  %v2437_v14 = vunpack.c.h.bf16 %v2379_v38 }
  0xc2   :  { %v1884_v0 = vadd.f32 %v1883_v44, %v1756_v52  ;;  %v2011_v2 = vmax.f32 %v2007_v61, %v1756_v52  ;;  %v586_v61 = vperm.slane %v2401_v1, 2  ;;  %v2434_v44 = vld [vmem:[%s2951_s0 + $0x50] sm:$0xff] }
  0xc3   :  { %v2016_v3 = vmax.f32 %v2384_v51, %v2388_v59  ;;  %v649_v51 = vperm.slane %v2434_v44, 3  ;;  %v635_v22 = vperm.slane %v2434_v44, 1  ;;  %v1516_v10 = vperm.slane %v2437_v14, 0 }
  0xc4   :  { %v1885_v5 = vadd.f32 %v1884_v0, %v1757_v47  ;;  %570 = vperm.xlu2 %2180, %v565_v46   ;;  %563 = vperm.xlu1 %2179, %v558_v48   ;;  %v628_v48 = vperm.slane %v2434_v44, 0  ;;  %v1145_v30 = vrot.slane %v2437_v14, 3  ;;  %v1149_v36 = vrot.slane %v2437_v14, 7 }
  0xc5   :  { %556 = vperm.xlu0 %2178, %v551_v54  }
  0xc6   :  { %v1886_v9 = vadd.f32 %v1885_v5, %v1758_v34  ;;  %v2404_v11 = vpop.permute.xlu2 %339  ;;  %v270_v49 = vpop.permute.xlu1 %269  ;;  %v1136_v34 = vrot.slane %v2391_v62, 1  ;;  %v1139_v5 = vrot.slane %v2391_v62, 4 }
  0xc7   :  { %vm992_vm13 = vcmp.gt.f32.partialorder %v270_v49, 0.0  ;;  %v263_v53 = vpop.permute.xlu0 %262  ;;  %vm1002_vm2 = vcmp.gt.f32.partialorder %v2404_v11, 0.0 }
  0xc8   :  { %v1760_v12 = vsel %vm992_vm13, %v1504_v56, 0.0  ;;  %vm991_vm14 = vcmp.gt.f32.partialorder %v263_v53, 0.0  ;;  %v1509_v58 = vperm.slane %v1136_v34, 0  ;;  %v2449_v56 = vsel %vm1002_vm2, %v1514_v45, 0.0 }
  0xc9   :  { %v2015_v18 = vmax.f32 %v2011_v2, %v1760_v12  ;;  %v1759_v19 = vsel %vm991_vm14, %v1503_v7, 0.0  ;;  %v614_v2 = vperm.slane %v2401_v1, 6  ;;  %v1143_v7 = vrot.slane %v2437_v14, 1 }
  0xca   :  { %v1887_v25 = vadd.f32 %v1886_v9, %v1759_v19  ;;  %v2014_v60 = vmax.f32 %v2010_v24, %v1759_v19  ;;  %v600_v24 = vperm.slane %v2401_v1, 4  ;;  %v1513_v53 = vperm.slane %v1140_v57, 0 }
  0xcb   :  { %v2416_v26 = vmax.f32 %v2015_v18, %v1764_v23  ;;  %v1512_v1 = vperm.slane %v1139_v5, 0  ;;  %v642_v18 = vperm.slane %v2434_v44, 2  ;;  %v1144_v34 = vrot.slane %v2437_v14, 2 }
  0xcc   :  { %v1888_v63 = vadd.f32 %v1887_v25, %v1760_v12  ;;  %591 = vperm.xlu2 %2180, %v586_v61   ;;  %584 = vperm.xlu1 %2179, %v579_v15   ;;  %v1517_v61 = vperm.slane %v1143_v7, 0  ;;  %v1146_v25 = vrot.slane %v2437_v14, 4  ;;  %v1519_v45 = vperm.slane %v1145_v30, 0 }
  0xcd   :  { %577 = vperm.xlu0 %2178, %v572_v21   ;;  %v1148_v5 = vrot.slane %v2437_v14, 6 }
  0xce   :  { %v1889_v16 = vadd.f32 %v1888_v63, %v2388_v59  ;;  %v2419_v4 = vpop.permute.xlu2 %360  ;;  %v291_v6 = vpop.permute.xlu1 %290 }
  0xcf   :  { %vm995_vm0 = vcmp.gt.f32.partialorder %v291_v6, 0.0  ;;  %v284_v29 = vpop.permute.xlu0 %283  ;;  %vm1005_vm5 = vcmp.gt.f32.partialorder %v2419_v4, 0.0  ;;  %v1520_v4 = vperm.slane %v1146_v25, 0 }
  0xd0   :  { %v1763_v20 = vsel %vm995_vm0, %v1507_v27, 0.0  ;;  %vm994_vm1 = vcmp.gt.f32.partialorder %v284_v29, 0.0  ;;  %v1773_v13 = vsel %vm1005_vm5, %v1517_v61, 0.0 }
  0xd1   :  { %v2018_v31 = vmax.f32 %v2014_v60, %v1763_v20  ;;  %v1762_v32 = vsel %vm994_vm1, %v1506_v28, 0.0 }
  0xd2   :  { %v1890_v37 = vadd.f32 %v1889_v16, %v1762_v32  ;;  %v2017_v40 = vmax.f32 %v2369_v39, %v1762_v32 }
  0xd3   :  { %v2429_v41 = vmax.f32 %v2018_v31, %v1767_v35 }
  0xd4   :  { %v1891_v42 = vadd.f32 %v1890_v37, %v1763_v20  ;;  %612 = vperm.xlu2 %2180, %v607_v17   ;;  %605 = vperm.xlu1 %2179, %v600_v24   ;;  %v670_v17 = vperm.slane %v2434_v44, 6 }
  0xd5   :  { %598 = vperm.xlu0 %2178, %v593_v33   ;;  %v656_v33 = vperm.slane %v2434_v44, 4 }
  0xd6   :  { %v2439_v46 = vpop.permute.xlu2 %381  ;;  %v312_v39 = vpop.permute.xlu1 %311  ;;  %v1892_v52 = vadd.f32 %v1891_v42, %v1764_v23  ;;  %v1142_v23 = vrot.slane %v2391_v62, 7  ;;  %v2487_v42 = vld [vmem:[%s2952_s2 + $0x18] sm:$0xff]  }
  0xd7   :  { %vm998_vm3 = vcmp.gt.f32.partialorder %v312_v39, 0.0  ;;  %v305_v47 = vpop.permute.xlu0 %304  ;;  %vm1008_vm8 = vcmp.gt.f32.partialorder %v2439_v46, 0.0  ;;  %v2494_v46 = vld [vmem:[%s2951_s0 + $0x58] sm:$0xff]  ;;  %v1518_v39 = vperm.slane %v1144_v34, 0 }
  0xd8   :  { %v1766_v54 = vsel %vm998_vm3, %v1510_v43, 0.0  ;;  %vm997_vm4 = vcmp.gt.f32.partialorder %v305_v47, 0.0  ;;  %v1515_v16 = vperm.slane %v1142_v23, 0  ;;  %v2497_v47 = vunpack.c.l.bf16 %v2487_v42 }
  0xd9   :  { %v2445_v0 = vmax.f32 %v2017_v40, %v1766_v54  ;;  %v1765_v38 = vsel %vm997_vm4, %v1509_v58, 0.0  ;;  %v684_v57 = vperm.slane %v2494_v46, 0 }
  0xda   :  { %v1893_v8 = vadd.f32 %v1892_v52, %v1765_v38  ;;  %v2020_v9 = vmax.f32 %v2016_v3, %v1765_v38 }
  0xdb   :  { %v2025_v11 = vmax.f32 %v2445_v0, %v2449_v56  ;;  %v712_v0 = vperm.slane %v2494_v46, 4 }
  0xdc   :  { %v1894_v49 = vadd.f32 %v1893_v8, %v1766_v54  ;;  %633 = vperm.xlu2 %2180, %v628_v48   ;;  %626 = vperm.xlu1 %2179, %v621_v50   ;;  %v691_v54 = vperm.slane %v2494_v46, 1 }
  0xdd   :  { %619 = vperm.xlu0 %2178, %v614_v2  }
  0xde   :  { %v2457_v12 = vpop.permute.xlu2 %402  ;;  %v333_v15 = vpop.permute.xlu1 %332  ;;  %v1895_v59 = vadd.f32 %v1894_v49, %v1767_v35  ;;  %v2480_v35 = vsel %vm1008_vm8, %v1520_v4, 0.0  ;;  %v1147_v49 = vrot.slane %v2437_v14, 5 }
  0xdf   :  { %vm1001_vm6 = vcmp.gt.f32.partialorder %v333_v15, 0.0  ;;  %v326_v55 = vpop.permute.xlu0 %325  ;;  %vm1011_vm11 = vcmp.gt.f32.partialorder %v2457_v12, 0.0 }
  0xe0   :  { %v1769_v3 = vsel %vm1001_vm6, %v1513_v53, 0.0  ;;  %vm1000_vm7 = vcmp.gt.f32.partialorder %v326_v55, 0.0 }
  0xe1   :  { %v2024_v19 = vmax.f32 %v2020_v9, %v1769_v3  ;;  %v1768_v21 = vsel %vm1000_vm7, %v1512_v1, 0.0  ;;  %v677_v9 = vperm.slane %v2434_v44, 7  ;;  %v1151_v1 = vrot.slane %v2497_v47, 2 }
  0xe2   :  { %v1896_v60 = vadd.f32 %v1895_v59, %v1768_v21  ;;  %v2023_v63 = vmax.f32 %v2416_v26, %v1768_v21  ;;  %v663_v26 = vperm.slane %v2434_v44, 5  ;;  %v1521_v44 = vperm.slane %v1147_v49, 0 }
  0xe3   :  { %v2466_v27 = vmax.f32 %v2024_v19, %v1773_v13  ;;  %v1526_v59 = vperm.slane %v1151_v1, 0  ;;  %v1150_v21 = vrot.slane %v2497_v47, 1  ;;  %v1155_v1 = vrot.slane %v2497_v47, 6 }
  0xe4   :  { %v1897_v28 = vadd.f32 %v1896_v60, %v1769_v3  ;;  %654 = vperm.xlu2 %2180, %v649_v51   ;;  %647 = vperm.xlu1 %2179, %v642_v18   ;;  %v1522_v51 = vperm.slane %v1148_v5, 0  ;;  %v1154_v60 = vrot.slane %v2497_v47, 5  ;;  %v1156_v5 = vrot.slane %v2497_v47, 7 }
  0xe5   :  { %640 = vperm.xlu0 %2178, %v635_v22   ;;  %v1525_v4 = vperm.slane %v1150_v21, 0 }
  0xe6   :  { %v2469_v6 = vpop.permute.xlu2 %423  ;;  %v354_v29 = vpop.permute.xlu1 %353  ;;  %v1898_v20 = vadd.f32 %v1897_v28, %v2449_v56  ;;  %v705_v56 = vperm.slane %v2494_v46, 3 }
  0xe7   :  { %vm1004_vm9 = vcmp.gt.f32.partialorder %v354_v29, 0.0  ;;  %v347_v62 = vpop.permute.xlu0 %346  ;;  %vm1014_vm14 = vcmp.gt.f32.partialorder %v2469_v6, 0.0  ;;  %v1524_v6 = vperm.slane %v2497_v47, 0  ;;  %v1529_v29 = vperm.slane %v1154_v60, 0 }
  0xe8   :  { %v1772_v24 = vsel %vm1004_vm9, %v1516_v10, 0.0  ;;  %vm1003_vm10 = vcmp.gt.f32.partialorder %v347_v62, 0.0  ;;  %v1782_v25 = vsel %vm1014_vm14, %v1526_v59, 0.0 }
  0xe9   :  { %v2476_v31 = vmax.f32 %v2023_v63, %v1772_v24  ;;  %v1771_v32 = vsel %vm1003_vm10, %v1515_v16, 0.0 }
  0xea   :  { %v1899_v37 = vadd.f32 %v1898_v20, %v1771_v32  ;;  %v2026_v40 = vmax.f32 %v2429_v41, %v1771_v32  ;;  %v1523_v41 = vperm.slane %v1149_v36, 0  ;;  %v733_v20 = vperm.slane %v2494_v46, 7 }
  0xeb   :  { %v2031_v43 = vmax.f32 %v2476_v31, %v2480_v35  ;;  %v1153_v32 = vrot.slane %v2497_v47, 4  ;;  %v719_v36 = vperm.slane %v2494_v46, 5 }
  0xec   :  { %v1900_v58 = vadd.f32 %v1899_v37, %v1772_v24  ;;  %675 = vperm.xlu2 %2180, %v670_v17   ;;  %668 = vperm.xlu1 %2179, %v663_v26   ;;  %v2509_v53 = vsel %vm1011_vm11, %v1523_v41, 0.0  ;;  %v1152_v37 = vrot.slane %v2497_v47, 3 }
  0xed   :  { %661 = vperm.xlu0 %2178, %v656_v33  }
  0xee   :  { %v2499_v48 = vpop.permute.xlu2 %444  ;;  %v375_v50 = vpop.permute.xlu1 %374  ;;  %v1901_v2 = vadd.f32 %v1900_v58, %v1773_v13  ;;  %v698_v13 = vperm.slane %v2494_v46, 2  ;;  %v2544_v58 = vunpack.c.h.bf16 %v2487_v42  ;;  %v1527_v42 = vperm.slane %v1152_v37, 0 }
  0xef   :  { %vm1007_vm12 = vcmp.gt.f32.partialorder %v375_v50, 0.0  ;;  %v368_v52 = vpop.permute.xlu0 %367  ;;  %vm1017_vm1 = vcmp.gt.f32.partialorder %v2499_v48, 0.0  ;;  %v1528_v50 = vperm.slane %v1153_v32, 0 }
  0xf0   :  { %v1775_v38 = vsel %vm1007_vm12, %v1519_v45, 0.0  ;;  %vm1006_vm13 = vcmp.gt.f32.partialorder %v368_v52, 0.0  ;;  %v1532_v52 = vperm.slane %v2544_v58, 0  ;;  %v1162_v60 = vrot.slane %v2544_v58, 6 }
  0xf1   :  { %v2505_v7 = vmax.f32 %v2026_v40, %v1775_v38  ;;  %v1774_v8 = vsel %vm1006_vm13, %v1518_v39, 0.0  ;;  %v2541_v40 = vsel %vm1017_vm1, %v1529_v29, 0.0  ;;  %v1161_v37 = vrot.slane %v2544_v58, 5 }
  0xf2   :  { %v1902_v61 = vadd.f32 %v1901_v2, %v1774_v8  ;;  %v2029_v12 = vmax.f32 %v2025_v11, %v1774_v8 }
  0xf3   :  { %v2034_v15 = vmax.f32 %v2505_v7, %v2509_v53 }
  0xf4   :  { %v1903_v55 = vadd.f32 %v1902_v61, %v1775_v38  ;;  %696 = vperm.xlu2 %2180, %v691_v54   ;;  %689 = vperm.xlu1 %2179, %v684_v57  }
  0xf5   :  { %682 = vperm.xlu0 %2178, %v677_v9  }
  0xf6   :  { %v2517_v14 = vpop.permute.xlu2 %465  ;;  %v396_v3 = vpop.permute.xlu1 %395  ;;  %v1904_v19 = vadd.f32 %v1903_v55, %v2480_v35 }
  0xf7   :  { %vm1010_vm15 = vcmp.gt.f32.partialorder %v396_v3, 0.0  ;;  %v389_v18 = vpop.permute.xlu0 %388  ;;  %vm1020_vm4 = vcmp.gt.f32.partialorder %v2517_v14, 0.0  ;;  %v1531_v14 = vperm.slane %v1156_v5, 0  ;;  %v1530_v3 = vperm.slane %v1155_v1, 0 }
  0xf8   :  { %v1778_v11 = vsel %vm1010_vm15, %v1522_v51, 0.0  ;;  %vm1009_vm0 = vcmp.gt.f32.partialorder %v389_v18, 0.0  ;;  %v1788_v61 = vsel %vm1020_vm4, %v1532_v52, 0.0 }
  0xf9   :  { %v2033_v22 = vmax.f32 %v2029_v12, %v1778_v11  ;;  %v1777_v23 = vsel %vm1009_vm0, %v1521_v44, 0.0  ;;  %v1159_v12 = vrot.slane %v2544_v58, 3 }
  0xfa   :  { %v1905_v63 = vadd.f32 %v1904_v19, %v1777_v23  ;;  %v2032_v28 = vmax.f32 %v2466_v27, %v1777_v23  ;;  %v726_v27 = vperm.slane %v2494_v46, 6  ;;  %v2554_v46 = vld [vmem:[%s2951_s0 + $0x60] sm:$0xff]  ;;  %v1158_v19 = vrot.slane %v2544_v58, 2 }
  0xfb   :  { %v2527_v10 = vmax.f32 %v2033_v22, %v1782_v25  ;;  %v747_v57 = vperm.slane %v2554_v46, 1  ;;  %v740_v49 = vperm.slane %v2554_v46, 0  ;;  %v1535_v18 = vperm.slane %v1159_v12, 0 }
  0xfc   :  { %v1906_v16 = vadd.f32 %v1905_v63, %v1778_v11  ;;  %717 = vperm.xlu2 %2180, %v712_v0   ;;  %710 = vperm.xlu1 %2179, %v705_v56   ;;  %v775_v11 = vperm.slane %v2554_v46, 5  ;;  %v768_v7 = vperm.slane %v2554_v46, 4  ;;  %v761_v23 = vperm.slane %v2554_v46, 3 }
  0xfd   :  { %703 = vperm.xlu0 %2178, %v698_v13   ;;  %v1157_v13 = vrot.slane %v2544_v58, 1  ;;  %v1534_v29 = vperm.slane %v1158_v19, 0  ;;  %v789_v32 = vperm.slane %v2554_v46, 7  ;;  %v1163_v12 = vrot.slane %v2544_v58, 7 }
  0xfe   :  { %v2530_v62 = vpop.permute.xlu2 %486  ;;  %v417_v17 = vpop.permute.xlu1 %416  ;;  %v1907_v30 = vadd.f32 %v1906_v16, %v2509_v53  ;;  %v2585_v16 = vld [vmem:[%s2952_s2 + $0x20] sm:$0xff]  }
  0xff   :  { %vm1013_vm2 = vcmp.gt.f32.partialorder %v417_v17, 0.0  ;;  %v410_v26 = vpop.permute.xlu0 %409  ;;  %vm1023_vm7 = vcmp.gt.f32.partialorder %v2530_v62, 0.0  ;;  %v2592_v62 = vld [vmem:[%s2951_s0 + $0x68] sm:$0xff]  ;;  %v1533_v17 = vperm.slane %v1157_v13, 0 }
 0x100   :  { %v1781_v24 = vsel %vm1013_vm2, %v1525_v4, 0.0  ;;  %vm1012_vm3 = vcmp.gt.f32.partialorder %v410_v26, 0.0  ;;  %v1538_v26 = vperm.slane %v1162_v60, 0  ;;  %v824_v13 = vperm.slane %v2592_v62, 4 }
 0x101   :  { %v2537_v33 = vmax.f32 %v2032_v28, %v1781_v24  ;;  %v1780_v34 = vsel %vm1012_vm3, %v1524_v6, 0.0 }
 0x102   :  { %v1908_v45 = vadd.f32 %v1907_v30, %v1780_v34  ;;  %v2035_v39 = vmax.f32 %v2031_v43, %v1780_v34  ;;  %v754_v43 = vperm.slane %v2554_v46, 2  ;;  %v796_v30 = vperm.slane %v2592_v62, 0 }
 0x103   :  { %v2040_v41 = vmax.f32 %v2537_v33, %v2541_v40  ;;  %v817_v33 = vperm.slane %v2592_v62, 3 }
 0x104   :  { %v1909_v48 = vadd.f32 %v1908_v45, %v1781_v24  ;;  %738 = vperm.xlu2 %2180, %v733_v20   ;;  %731 = vperm.xlu1 %2179, %v726_v27  }
 0x105   :  { %724 = vperm.xlu0 %2178, %v719_v36  }
 0x106   :  { %v2557_v54 = vpop.permute.xlu2 %507  ;;  %v438_v31 = vpop.permute.xlu1 %437  ;;  %v1910_v2 = vadd.f32 %v1909_v48, %v1782_v25  ;;  %v1791_v25 = vsel %vm1023_vm7, %v1535_v18, 0.0  ;;  %v782_v48 = vperm.slane %v2554_v46, 6 }
 0x107   :  { %vm1016_vm5 = vcmp.gt.f32.partialorder %v438_v31, 0.0  ;;  %v431_v35 = vpop.permute.xlu0 %430  ;;  %vm1026_vm10 = vcmp.gt.f32.partialorder %v2557_v54, 0.0 }
 0x108   :  { %v1784_v38 = vsel %vm1016_vm5, %v1528_v50, 0.0  ;;  %vm1015_vm6 = vcmp.gt.f32.partialorder %v431_v35, 0.0  ;;  %v1160_v50 = vrot.slane %v2544_v58, 4 }
 0x109   :  { %v2039_v8 = vmax.f32 %v2035_v39, %v1784_v38  ;;  %v1783_v9 = vsel %vm1015_vm6, %v1527_v42, 0.0  ;;  %v2607_v42 = vsel %vm1026_vm10, %v1538_v26, 0.0 }
 0x10a   :  { %v1911_v55 = vadd.f32 %v1910_v2, %v1783_v9  ;;  %v2038_v51 = vmax.f32 %v2034_v15, %v1783_v9  ;;  %v1536_v46 = vperm.slane %v1160_v50, 0  ;;  %v810_v9 = vperm.slane %v2592_v62, 2 }
 0x10b   :  { %v2569_v44 = vmax.f32 %v2039_v8, %v1788_v61 }
 0x10c   :  { %v1912_v59 = vadd.f32 %v1911_v55, %v1784_v38  ;;  %759 = vperm.xlu2 %2180, %v754_v43   ;;  %752 = vperm.xlu1 %2179, %v747_v57   ;;  %v1537_v57 = vperm.slane %v1161_v37, 0 }
 0x10d   :  { %745 = vperm.xlu0 %2178, %v740_v49  }
 0x10e   :  { %v2571_v0 = vpop.permute.xlu2 %528  ;;  %v459_v47 = vpop.permute.xlu1 %458  ;;  %v1913_v15 = vadd.f32 %v1912_v59, %v2541_v40 }
 0x10f   :  { %vm1019_vm8 = vcmp.gt.f32.partialorder %v459_v47, 0.0  ;;  %v452_v56 = vpop.permute.xlu0 %451  ;;  %vm1029_vm13 = vcmp.gt.f32.partialorder %v2571_v0, 0.0  ;;  %v1539_v47 = vperm.slane %v1163_v12, 0 }
 0x110   :  { %v1787_v53 = vsel %vm1019_vm8, %v1531_v14, 0.0  ;;  %vm1018_vm9 = vcmp.gt.f32.partialorder %v452_v56, 0.0 }
 0x111   :  { %v2042_v21 = vmax.f32 %v2038_v51, %v1787_v53  ;;  %v1786_v22 = vsel %vm1018_vm9, %v1530_v3, 0.0 }
 0x112   :  { %v1914_v63 = vadd.f32 %v1913_v15, %v1786_v22  ;;  %v2041_v28 = vmax.f32 %v2527_v10, %v1786_v22  ;;  %v2595_v10 = vunpack.c.l.bf16 %v2585_v16 }
 0x113   :  { %v2587_v4 = vmax.f32 %v2042_v21, %v1791_v25 }
 0x114   :  { %v1915_v6 = vadd.f32 %v1914_v63, %v1787_v53  ;;  %780 = vperm.xlu2 %2180, %v775_v11   ;;  %773 = vperm.xlu1 %2179, %v768_v7   ;;  %v1164_v52 = vrot.slane %v2595_v10, 1  ;;  %v1167_v51 = vrot.slane %v2595_v10, 4  ;;  %v1540_v0 = vperm.slane %v2595_v10, 0 }
 0x115   :  { %766 = vperm.xlu0 %2178, %v761_v23   ;;  %v838_v53 = vperm.slane %v2592_v62, 6  ;;  %v1166_v21 = vrot.slane %v2595_v10, 3  ;;  %v1170_v63 = vrot.slane %v2595_v10, 7  ;;  %v1169_v50 = vrot.slane %v2595_v10, 6 }
 0x116   :  { %v2597_v20 = vpop.permute.xlu2 %549  ;;  %v480_v27 = vpop.permute.xlu1 %479  ;;  %v1916_v36 = vadd.f32 %v1915_v6, %v1788_v61  ;;  %v1541_v38 = vperm.slane %v1164_v52, 0  ;;  %v803_v61 = vperm.slane %v2592_v62, 1  ;;  %v1544_v56 = vperm.slane %v1167_v51, 0 }
 0x117   :  { %vm1022_vm11 = vcmp.gt.f32.partialorder %v480_v27, 0.0  ;;  %v473_v24 = vpop.permute.xlu0 %472  ;;  %vm1032_vm0 = vcmp.gt.f32.partialorder %v2597_v20, 0.0  ;;  %v1543_v26 = vperm.slane %v1166_v21, 0  ;;  %v2647_v20 = vld [vmem:[%s2951_s0 + $0x70] sm:$0xff] }
 0x118   :  { %v1790_v34 = vsel %vm1022_vm11, %v1534_v29, 0.0  ;;  %vm1021_vm12 = vcmp.gt.f32.partialorder %v473_v24, 0.0  ;;  %v1797_v55 = vsel %vm1029_vm13, %v1541_v38, 0.0  ;;  %v2638_v60 = vsel %vm1032_vm0, %v1544_v56, 0.0 }
 0x119   :  { %v2603_v45 = vmax.f32 %v2041_v28, %v1790_v34  ;;  %v1789_v39 = vsel %vm1021_vm12, %v1533_v17, 0.0  ;;  %v1547_v24 = vperm.slane %v1170_v63, 0  ;;  %v852_v37 = vperm.slane %v2647_v20, 0 }
 0x11a   :  { %v1917_v54 = vadd.f32 %v1916_v36, %v1789_v39  ;;  %v2044_v31 = vmax.f32 %v2040_v41, %v1789_v39  ;;  %v859_v36 = vperm.slane %v2647_v20, 1  ;;  %v866_v12 = vperm.slane %v2647_v20, 2 }
 0x11b   :  { %v2049_v35 = vmax.f32 %v2603_v45, %v2607_v42  ;;  %v880_v45 = vperm.slane %v2647_v20, 4  ;;  %v887_v63 = vperm.slane %v2647_v20, 5 }
 0x11c   :  { %v1918_v43 = vadd.f32 %v1917_v54, %v1790_v34  ;;  %801 = vperm.xlu2 %2180, %v796_v30   ;;  %794 = vperm.xlu1 %2179, %v789_v32   ;;  %v2650_v30 = vunpack.c.h.bf16 %v2585_v16  ;;  %v845_v54 = vperm.slane %v2592_v62, 7 }
 0x11d   :  { %787 = vperm.xlu0 %2178, %v782_v48  }
 0x11e   :  { %v2615_v2 = vpop.permute.xlu2 %570  ;;  %v501_v5 = vpop.permute.xlu1 %500  ;;  %v1919_v41 = vadd.f32 %v1918_v43, %v1791_v25  ;;  %v1165_v25 = vrot.slane %v2595_v10, 2  ;;  %v1175_v51 = vrot.slane %v2650_v30, 5  ;;  %v1548_v56 = vperm.slane %v2650_v30, 0 }
 0x11f   :  { %vm1025_vm14 = vcmp.gt.f32.partialorder %v501_v5, 0.0  ;;  %v494_v8 = vpop.permute.xlu0 %493  ;;  %vm1035_vm3 = vcmp.gt.f32.partialorder %v2615_v2, 0.0 }
 0x120   :  { %v1793_v40 = vsel %vm1025_vm14, %v1537_v57, 0.0  ;;  %vm1024_vm15 = vcmp.gt.f32.partialorder %v494_v8, 0.0  ;;  %v1542_v27 = vperm.slane %v1165_v25, 0  ;;  %v2662_v43 = vsel %vm1035_vm3, %v1547_v24, 0.0 }
 0x121   :  { %v2048_v49 = vmax.f32 %v2044_v31, %v1793_v40  ;;  %v1792_v1 = vsel %vm1024_vm15, %v1536_v46, 0.0  ;;  %v1168_v31 = vrot.slane %v2595_v10, 5  ;;  %v1172_v57 = vrot.slane %v2650_v30, 2 }
 0x122   :  { %v1920_v59 = vadd.f32 %v1919_v41, %v1792_v1  ;;  %v2047_v14 = vmax.f32 %v2569_v44, %v1792_v1  ;;  %v831_v44 = vperm.slane %v2592_v62, 5  ;;  %v1546_v8 = vperm.slane %v1169_v50, 0 }
 0x123   :  { %v2624_v3 = vmax.f32 %v2048_v49, %v1797_v55  ;;  %v1545_v62 = vperm.slane %v1168_v31, 0  ;;  %v1171_v49 = vrot.slane %v2650_v30, 1 }
 0x124   :  { %v1921_v18 = vadd.f32 %v1920_v59, %v1793_v40  ;;  %822 = vperm.xlu2 %2180, %v817_v33   ;;  %815 = vperm.xlu1 %2179, %v810_v9   ;;  %v1550_v33 = vperm.slane %v1172_v57, 0 }
 0x125   :  { %808 = vperm.xlu0 %2178, %v803_v61  }
 0x126   :  { %v2627_v11 = vpop.permute.xlu2 %591  ;;  %v522_v7 = vpop.permute.xlu1 %521  ;;  %v1922_v19 = vadd.f32 %v1921_v18, %v2607_v42  ;;  %v873_v42 = vperm.slane %v2647_v20, 3 }
 0x127   :  { %vm1028_vm1 = vcmp.gt.f32.partialorder %v522_v7, 0.0  ;;  %v515_v58 = vpop.permute.xlu0 %514  ;;  %vm1038_vm6 = vcmp.gt.f32.partialorder %v2627_v11, 0.0  ;;  %v1553_v11 = vperm.slane %v1175_v51, 0 }
 0x128   :  { %v1796_v15 = vsel %vm1028_vm1, %v1540_v0, 0.0  ;;  %vm1027_vm2 = vcmp.gt.f32.partialorder %v515_v58, 0.0 }
 0x129   :  { %v2634_v22 = vmax.f32 %v2047_v14, %v1796_v15  ;;  %v1795_v23 = vsel %vm1027_vm2, %v1539_v47, 0.0  ;;  %v1549_v47 = vperm.slane %v1171_v49, 0 }
 0x12a   :  { %v1923_v28 = vadd.f32 %v1922_v19, %v1795_v23  ;;  %v2050_v6 = vmax.f32 %v2587_v4, %v1795_v23  ;;  %v1174_v23 = vrot.slane %v2650_v30, 4 }
 0x12b   :  { %v2055_v29 = vmax.f32 %v2634_v22, %v2638_v60 }
 0x12c   :  { %v1924_v17 = vadd.f32 %v1923_v28, %v1796_v15  ;;  %843 = vperm.xlu2 %2180, %v838_v53   ;;  %836 = vperm.xlu1 %2179, %v831_v44   ;;  %v2689_v53 = vld [vmem:[%s2952_s2 + $0x28] sm:$0xff]   ;;  %v901_v44 = vperm.slane %v2647_v20, 7  ;;  %v894_v15 = vperm.slane %v2647_v20, 6  ;;  %v1173_v28 = vrot.slane %v2650_v30, 3  ;;  %v2712_v20 = vld [vmem:[%s2951_s0 + $0x78] sm:$0xff] }
 0x12d   :  { %829 = vperm.xlu0 %2178, %v824_v13   ;;  %v908_v57 = vperm.slane %v2712_v20, 0 }
 0x12e   :  { %v2652_v32 = vpop.permute.xlu2 %612  ;;  %v543_v4 = vpop.permute.xlu1 %542  ;;  %v1925_v48 = vadd.f32 %v1924_v17, %v1797_v55  ;;  %v1806_v55 = vsel %vm1038_vm6, %v1550_v33, 0.0  ;;  %v2702_v17 = vunpack.c.l.bf16 %v2689_v53 }
 0x12f   :  { %vm1031_vm4 = vcmp.gt.f32.partialorder %v543_v4, 0.0  ;;  %v536_v34 = vpop.permute.xlu0 %535  ;;  %vm1041_vm9 = vcmp.gt.f32.partialorder %v2652_v32, 0.0  ;;  %v1552_v4 = vperm.slane %v1174_v23, 0 }
 0x130   :  { %v1799_v39 = vsel %vm1031_vm4, %v1543_v26, 0.0  ;;  %vm1030_vm5 = vcmp.gt.f32.partialorder %v536_v34, 0.0  ;;  %v1551_v34 = vperm.slane %v1173_v28, 0  ;;  %v1179_v49 = vrot.slane %v2702_v17, 2 }
 0x131   :  { %v2658_v52 = vmax.f32 %v2050_v6, %v1799_v39  ;;  %v1798_v16 = vsel %vm1030_vm5, %v1542_v27, 0.0  ;;  %v2699_v6 = vsel %vm1041_vm9, %v1553_v11, 0.0 }
 0x132   :  { %v1926_v46 = vadd.f32 %v1925_v48, %v1798_v16  ;;  %v2053_v38 = vmax.f32 %v2049_v35, %v1798_v16  ;;  %v1177_v16 = vrot.slane %v2650_v30, 7 }
 0x133   :  { %v2058_v2 = vmax.f32 %v2658_v52, %v2662_v43  ;;  %v936_v52 = vperm.slane %v2712_v20, 4 }
 0x134   :  { %v1927_v5 = vadd.f32 %v1926_v46, %v1799_v39  ;;  %864 = vperm.xlu2 %2180, %v859_v36   ;;  %857 = vperm.xlu1 %2179, %v852_v37   ;;  %v1556_v36 = vperm.slane %v2702_v17, 0  ;;  %v915_v39 = vperm.slane %v2712_v20, 1  ;;  %v1176_v46 = vrot.slane %v2650_v30, 6 }
 0x135   :  { %850 = vperm.xlu0 %2178, %v845_v54  }
 0x136   :  { %v2670_v10 = vpop.permute.xlu2 %633  ;;  %v564_v40 = vpop.permute.xlu1 %563  ;;  %v1928_v9 = vadd.f32 %v1927_v5, %v2638_v60  ;;  %v1180_v5 = vrot.slane %v2702_v17, 3 }
 0x137   :  { %vm1034_vm7 = vcmp.gt.f32.partialorder %v564_v40, 0.0  ;;  %v557_v41 = vpop.permute.xlu0 %556  ;;  %vm1044_vm12 = vcmp.gt.f32.partialorder %v2670_v10, 0.0  ;;  %v1555_v40 = vperm.slane %v1177_v16, 0  ;;  %v2161_v16 = vunpack.c.h.bf16 %v2689_v53 }
 0x138   :  { %v1802_v35 = vsel %vm1034_vm7, %v1546_v8, 0.0  ;;  %vm1033_vm8 = vcmp.gt.f32.partialorder %v557_v41, 0.0  ;;  %v1554_v41 = vperm.slane %v1176_v46, 0 }
 0x139   :  { %v2057_v1 = vmax.f32 %v2053_v38, %v1802_v35  ;;  %v1801_v61 = vsel %vm1033_vm8, %v1545_v62, 0.0  ;;  %v1812_v38 = vsel %vm1044_vm12, %v1556_v36, 0.0 }
 0x13a   :  { %v1929_v59 = vadd.f32 %v1928_v9, %v1801_v61  ;;  %v2056_v14 = vmax.f32 %v2624_v3, %v1801_v61  ;;  %v943_v9 = vperm.slane %v2712_v20, 5 }
 0x13b   :  { %v2680_v18 = vmax.f32 %v2057_v1, %v1806_v55 }
 0x13c   :  { %v1930_v0 = vadd.f32 %v1929_v59, %v1802_v35  ;;  %885 = vperm.xlu2 %2180, %v880_v45   ;;  %878 = vperm.xlu1 %2179, %v873_v42   ;;  %v1559_v45 = vperm.slane %v1180_v5, 0  ;;  %v1564_v5 = vperm.slane %v2161_v16, 0 }
 0x13d   :  { %871 = vperm.xlu0 %2178, %v866_v12   ;;  %v929_v12 = vperm.slane %v2712_v20, 3 }
 0x13e   :  { %v2683_v7 = vpop.permute.xlu2 %654  ;;  %v585_v58 = vpop.permute.xlu1 %584  ;;  %v1931_v21 = vadd.f32 %v1930_v0, %v2662_v43 }
 0x13f   :  { %vm1037_vm10 = vcmp.gt.f32.partialorder %v585_v58, 0.0  ;;  %v578_v3 = vpop.permute.xlu0 %577  ;;  %vm1047_vm15 = vcmp.gt.f32.partialorder %v2683_v7, 0.0 }
 0x140   :  { %v1805_v19 = vsel %vm1037_vm10, %v1549_v47, 0.0  ;;  %vm1036_vm11 = vcmp.gt.f32.partialorder %v578_v3, 0.0  ;;  %v1815_v51 = vsel %vm1047_vm15, %v1559_v45, 0.0 }
 0x141   :  { %v2695_v13 = vmax.f32 %v2056_v14, %v1805_v19  ;;  %v1804_v25 = vsel %vm1036_vm11, %v1548_v56, 0.0  ;;  %v1558_v56 = vperm.slane %v1179_v49, 0 }
 0x142   :  { %v1932_v26 = vadd.f32 %v1931_v21, %v1804_v25  ;;  %v2059_v27 = vmax.f32 %v2055_v29, %v1804_v25  ;;  %v922_v29 = vperm.slane %v2712_v20, 2  ;;  %v1181_v25 = vrot.slane %v2702_v17, 4 }
 0x143   :  { %v2064_v24 = vmax.f32 %v2695_v13, %v2699_v6  ;;  %v1183_v13 = vrot.slane %v2702_v17, 6 }
 0x144   :  { %v1933_v32 = vadd.f32 %v1932_v26, %v1805_v19  ;;  %906 = vperm.xlu2 %2180, %v901_v44   ;;  %899 = vperm.xlu1 %2179, %v894_v15   ;;  %v957_v44 = vperm.slane %v2712_v20, 7  ;;  %v2126_v26 = vld [vmem:[%s2953_s1] sm:$0xff] }
 0x145   :  { %892 = vperm.xlu0 %2178, %v887_v63  }
 0x146   :  { %v2715_v37 = vpop.permute.xlu2 %675  ;;  %v606_v22 = vpop.permute.xlu1 %605  ;;  %v1934_v50 = vadd.f32 %v1933_v32, %v1806_v55  ;;  %v1178_v55 = vrot.slane %v2702_v17, 1 }
 0x147   :  { %vm1040_vm13 = vcmp.gt.f32.partialorder %v606_v22, 0.0  ;;  %v599_v60 = vpop.permute.xlu0 %598  ;;  %vm1050_vm6 = vcmp.gt.f32.partialorder %v2715_v37, 0.0 }
 0x148   :  { %v1808_v48 = vsel %vm1040_vm13, %v1552_v4, 0.0  ;;  %vm1039_vm14 = vcmp.gt.f32.partialorder %v599_v60, 0.0  ;;  %v1557_v11 = vperm.slane %v1178_v55, 0  ;;  %v2183_v4 = vmov 0  }
 0x149   :  { %v2063_v54 = vmax.f32 %v2059_v27, %v1808_v48  ;;  %v1807_v31 = vsel %vm1039_vm14, %v1551_v34, 0.0  ;;  %v1182_v27 = vrot.slane %v2702_v17, 5  ;;  %v1189_v55 = vrot.slane %v2161_v16, 5 }
 0x14a   :  { %v1935_v8 = vadd.f32 %v1934_v50, %v1807_v31  ;;  %v2062_v62 = vmax.f32 %v2058_v2, %v1807_v31  ;;  %v1562_v50 = vperm.slane %v1183_v13, 0 }
 0x14b   :  { %v2727_v33 = vmax.f32 %v2063_v54, %v1812_v38 }
 0x14c   :  { %v1936_v10 = vadd.f32 %v1935_v8, %v1808_v48  ;;  %927 = vperm.xlu2 %2180, %v922_v29   ;;  %920 = vperm.xlu1 %2179, %v915_v39   ;;  %v1184_v29 = vrot.slane %v2702_v17, 7  ;;  %v1185_v17 = vrot.slane %v2161_v16, 1 }
 0x14d   :  { %913 = vperm.xlu0 %2178, %v908_v57  }
 0x14e   :  { %v2729_v42 = vpop.permute.xlu2 %696  ;;  %v627_v30 = vpop.permute.xlu1 %626  ;;  %v1937_v2 = vadd.f32 %v1936_v10, %v2699_v6  ;;  %v1561_v6 = vperm.slane %v1182_v27, 0  ;;  %v1563_v57 = vperm.slane %v1184_v29, 0 }
 0x14f   :  { %vm1043_vm0 = vcmp.gt.f32.partialorder %v627_v30, 0.0  ;;  %v620_v35 = vpop.permute.xlu0 %619  ;;  %v1187_v30 = vrot.slane %v2161_v16, 3  ;;  %vm1053_vm9 = vcmp.gt.f32.partialorder %v2729_v42, 0.0 }
 0x150   :  { %v1811_v43 = vsel %vm1043_vm0, %v1555_v40, 0.0  ;;  %vm1042_vm1 = vcmp.gt.f32.partialorder %v620_v35, 0.0  ;;  %v1186_v40 = vrot.slane %v2161_v16, 2 }
 0x151   :  { %v2066_v1 = vmax.f32 %v2062_v62, %v1811_v43  ;;  %v1810_v61 = vsel %vm1042_vm1, %v1554_v41, 0.0  ;;  %v1565_v41 = vperm.slane %v1185_v17, 0  ;;  %v1567_v49 = vperm.slane %v1187_v30, 0 }
 0x152   :  { %v1938_v59 = vadd.f32 %v1937_v2, %v1810_v61  ;;  %v2065_v14 = vmax.f32 %v2680_v18, %v1810_v61  ;;  %v950_v18 = vperm.slane %v2712_v20, 6  ;;  %v1560_v20 = vperm.slane %v1181_v25, 0 }
 0x153   :  { %v2739_v0 = vmax.f32 %v2066_v1, %v1815_v51  ;;  %v1188_v2 = vrot.slane %v2161_v16, 4 }
 0x154   :  { %v1939_v47 = vadd.f32 %v1938_v59, %v1811_v43  ;;  %948 = vperm.xlu2 %2180, %v943_v9   ;;  %941 = vperm.xlu1 %2179, %v936_v52   ;;  %v1566_v9 = vperm.slane %v1186_v40, 0  ;;  %v2783_v43 = vsel %vm1053_vm9, %v1565_v41, 0.0 }
 0x155   :  { %934 = vperm.xlu0 %2178, %v929_v12   ;;  %v1568_v59 = vperm.slane %v1188_v2, 0 }
 0x156   :  { %v2741_v7 = vpop.permute.xlu2 %717  ;;  %v648_v58 = vpop.permute.xlu1 %647  ;;  %v1940_v19 = vadd.f32 %v1939_v47, %v1812_v38  ;;  %v2771_v38 = vsel %vm1050_vm6, %v1562_v50, 0.0  ;;  %v1190_v47 = vrot.slane %v2161_v16, 6 }
 0x157   :  { %vm1046_vm2 = vcmp.gt.f32.partialorder %v648_v58, 0.0  ;;  %v641_v3 = vpop.permute.xlu0 %640  ;;  %vm1056_vm12 = vcmp.gt.f32.partialorder %v2741_v7, 0.0  ;;  %v2175_v58 = vld [vmem:[%s2952_s2 + $0x30] sm:$0xff]  }
 0x158   :  { %v1814_v15 = vsel %vm1046_vm2, %v1558_v56, 0.0  ;;  %vm1045_vm3 = vcmp.gt.f32.partialorder %v641_v3, 0.0  ;;  %v2164_v25 = vunpack.c.l.bf16 %v2175_v58 }
 0x159   :  { %v2745_v21 = vmax.f32 %v2065_v14, %v1814_v15  ;;  %v1813_v23 = vsel %vm1045_vm3, %v1557_v11, 0.0  ;;  %v1569_v11 = vperm.slane %v1189_v55, 0 }
 0x15a   :  { %v1941_v63 = vadd.f32 %v1940_v19, %v1813_v23  ;;  %v2751_v28 = vmax.f32 %v2064_v24, %v1813_v23  ;;  %v1570_v19 = vperm.slane %v1190_v47, 0  ;;  %v2165_v47 = vunpack.c.h.bf16 %v2175_v58 }
 0x15c   :  { %v1942_v32 = vadd.f32 %v1941_v63, %v1814_v15  ;;  %962 = vperm.xlu1 %2179, %v957_v44   ;;  %2181 = vset.pattern.permute.xlu2 %v2183_v4  ;;  %v2798_v44 = vsel %vm1056_vm12, %v1568_v59, 0.0  ;;  %v1191_v15 = vrot.slane %v2161_v16, 7  ;;  %v1194_v16 = vrot.slane %v2164_v25, 3 }
 0x15d   :  { %955 = vperm.xlu0 %2178, %v950_v18   ;;  %2129 = vperm.xlu2 %2181, %v2126_v26  }
 0x15e   :  { %v2757_v34 = vpop.permute.xlu2 %738  ;;  %v669_v36 = vpop.permute.xlu1 %668  ;;  %v1943_v22 = vadd.f32 %v1942_v32, %v1815_v51  ;;  %v1571_v26 = vperm.slane %v1191_v15, 0  ;;  %v1192_v32 = vrot.slane %v2164_v25, 1 }
 0x15f   :  { %v662_v24 = vpop.permute.xlu0 %661  ;;  %vm1049_vm4 = vcmp.gt.f32.partialorder %v669_v36, 0.0  ;;  %vm1059_vm15 = vcmp.gt.f32.partialorder %v2757_v34, 0.0  ;;  %v1572_v36 = vperm.slane %v2164_v25, 0 }
 0x160   :  { %vm1048_vm5 = vcmp.gt.f32.partialorder %v662_v24, 0.0  ;;  %v2767_v54 = vsel %vm1049_vm4, %v1561_v6, 0.0  ;;  %v2808_v6 = vsel %vm1059_vm15, %v1571_v26, 0.0  ;;  %v1193_v24 = vrot.slane %v2164_v25, 2 }
 0x161   :  { %v2760_v60 = vsel %vm1048_vm5, %v1560_v20, 0.0 }
 0x162   :  { %v1944_v39 = vadd.f32 %v1943_v22, %v2760_v60  ;;  %v2071_v48 = vmax.f32 %v2727_v33, %v2760_v60  ;;  %v1573_v22 = vperm.slane %v1192_v32, 0  ;;  %v1574_v34 = vperm.slane %v1193_v24, 0 }
 0x163   :  { %v2073_v33 = vmax.f32 %v2745_v21, %v2771_v38 }
 0x164   :  { %v1945_v31 = vadd.f32 %v1944_v39, %v2767_v54 }
 0x165   :  { %2182 = vset.pattern.permute.xlu0 %v2183_v4 }
 0x166   :  { %v690_v46 = vpop.permute.xlu1 %689  ;;  %v2773_v62 = vpop.permute.xlu2 %759  ;;  %v1946_v10 = vadd.f32 %v1945_v31, %v2771_v38 }
 0x167   :  { %v683_v8 = vpop.permute.xlu0 %682  ;;  %vm1052_vm7 = vcmp.gt.f32.partialorder %v690_v46, 0.0  ;;  %v1195_v46 = vrot.slane %v2164_v25, 4  ;;  %vm1062_vm2 = vcmp.gt.f32.partialorder %v2773_v62, 0.0 }
 0x168   :  { %vm1051_vm8 = vcmp.gt.f32.partialorder %v683_v8, 0.0  ;;  %v2779_v45 = vsel %vm1052_vm7, %v1564_v5, 0.0  ;;  %v1575_v5 = vperm.slane %v1194_v16, 0  ;;  %v2818_v40 = vsel %vm1062_vm2, %v1574_v34, 0.0 }
 0x169   :  { %v2776_v53 = vsel %vm1051_vm8, %v1563_v57, 0.0  ;;  %v1576_v41 = vperm.slane %v1195_v46, 0  ;;  %v1203_v46 = vrot.slane %v2165_v47, 5 }
 0x16a   :  { %v1947_v37 = vadd.f32 %v1946_v10, %v2776_v53 }
 0x16c   :  { %v1948_v35 = vadd.f32 %v1947_v37, %v2779_v45  ;;  %v1196_v37 = vrot.slane %v2164_v25, 5 }
 0x16e   :  { %v711_v52 = vpop.permute.xlu1 %710  ;;  %v1949_v61 = vadd.f32 %v1948_v35, %v2783_v43  ;;  %v2788_v51 = vpop.permute.xlu2 %780  ;;  %v1577_v62 = vperm.slane %v1196_v37, 0 }
 0x16f   :  { %v704_v1 = vpop.permute.xlu0 %703  ;;  %vm1055_vm10 = vcmp.gt.f32.partialorder %v711_v52, 0.0  ;;  %v1197_v52 = vrot.slane %v2164_v25, 6  ;;  %vm1065_vm5 = vcmp.gt.f32.partialorder %v2788_v51, 0.0  ;;  %v1580_v51 = vperm.slane %v2165_v47, 0 }
 0x170   :  { %vm1054_vm11 = vcmp.gt.f32.partialorder %v704_v1, 0.0  ;;  %v2791_v14 = vsel %vm1055_vm10, %v1567_v49, 0.0  ;;  %v1198_v1 = vrot.slane %v2164_v25, 7  ;;  %v2828_v59 = vsel %vm1065_vm5, %v1577_v62, 0.0 }
 0x171   :  { %v2786_v12 = vsel %vm1054_vm11, %v1566_v9, 0.0  ;;  %v1578_v55 = vperm.slane %v1197_v52, 0  ;;  %v2851_v52 = vld [vmem:[%s2952_s2 + $0x38] sm:$0xff]  }
 0x172   :  { %v1950_v42 = vadd.f32 %v1949_v61, %v2786_v12 }
 0x174   :  { %v1951_v56 = vadd.f32 %v1950_v42, %v2791_v14 }
 0x176   :  { %v732_v3 = vpop.permute.xlu1 %731  ;;  %v1952_v23 = vadd.f32 %v1951_v56, %v2798_v44  ;;  %v802_v4 = vpop.permute.xlu2 %801  ;;  %v1579_v56 = vperm.slane %v1198_v1, 0 }
 0x177   :  { %v725_v18 = vpop.permute.xlu0 %724  ;;  %vm1058_vm13 = vcmp.gt.f32.partialorder %v732_v3, 0.0  ;;  %vm1068_vm8 = vcmp.gt.f32.partialorder %v802_v4, 0.0 }
 0x178   :  { %vm1057_vm14 = vcmp.gt.f32.partialorder %v725_v18, 0.0  ;;  %v2804_v27 = vsel %vm1058_vm13, %v1570_v19, 0.0  ;;  %v1199_v18 = vrot.slane %v2165_v47, 1 }
 0x179   :  { %v2801_v63 = vsel %vm1057_vm14, %v1569_v11, 0.0 }
 0x17a   :  { %v1953_v7 = vadd.f32 %v1952_v23, %v2801_v63  ;;  %v1581_v58 = vperm.slane %v1199_v18, 0 }
 0x17c   :  { %v1954_v20 = vadd.f32 %v1953_v7, %v2804_v27  ;;  %v1200_v7 = vrot.slane %v2165_v47, 2 }
 0x17e   :  { %v753_v13 = vpop.permute.xlu1 %752  ;;  %v1955_v39 = vadd.f32 %v1954_v20, %v2808_v6  ;;  %v823_v8 = vpop.permute.xlu2 %822  ;;  %v2837_v20 = vsel %vm1068_vm8, %v1580_v51, 0.0 }
 0x17f   :  { %v746_v29 = vpop.permute.xlu0 %745  ;;  %vm1061_vm0 = vcmp.gt.f32.partialorder %v753_v13, 0.0  ;;  %v1582_v13 = vperm.slane %v1200_v7, 0  ;;  %vm1071_vm11 = vcmp.gt.f32.partialorder %v823_v8, 0.0  ;;  %v1205_v8 = vrot.slane %v2165_v47, 7 }
 0x180   :  { %vm1060_vm1 = vcmp.gt.f32.partialorder %v746_v29, 0.0  ;;  %v2814_v57 = vsel %vm1061_vm0, %v1573_v22, 0.0 }
 0x181   :  { %v2811_v50 = vsel %vm1060_vm1, %v1572_v36, 0.0  ;;  %v1201_v36 = vrot.slane %v2165_v47, 3 }
 0x182   :  { %v1956_v31 = vadd.f32 %v1955_v39, %v2811_v50  ;;  %v1202_v39 = vrot.slane %v2165_v47, 4 }
 0x183   :  { %v1583_v4 = vperm.slane %v1201_v36, 0 }
 0x184   :  { %v1957_v17 = vadd.f32 %v1956_v31, %v2814_v57 }
 0x185   :  { %v2846_v37 = vsel %vm1071_vm11, %v1583_v4, 0.0 }
 0x186   :  { %v774_v10 = vpop.permute.xlu1 %773  ;;  %v1958_v35 = vadd.f32 %v1957_v17, %v2818_v40  ;;  %v844_v3 = vpop.permute.xlu2 %843 }
 0x187   :  { %v767_v30 = vpop.permute.xlu0 %766  ;;  %vm1064_vm3 = vcmp.gt.f32.partialorder %v774_v10, 0.0  ;;  %vm1074_vm14 = vcmp.gt.f32.partialorder %v844_v3, 0.0 }
 0x188   :  { %vm1063_vm4 = vcmp.gt.f32.partialorder %v767_v30, 0.0  ;;  %v2824_v49 = vsel %vm1064_vm3, %v1576_v41, 0.0  ;;  %v1204_v41 = vrot.slane %v2165_v47, 6  ;;  %v1585_v30 = vperm.slane %v1203_v46, 0 }
 0x189   :  { %v2821_v9 = vsel %vm1063_vm4, %v1575_v5, 0.0  ;;  %v1584_v5 = vperm.slane %v1202_v39, 0  ;;  %v2072_v39 = vmax.f32 %v2751_v28, %v2767_v54 }
 0x18a   :  { %v1959_v2 = vadd.f32 %v1958_v35, %v2821_v9 }
 0x18b   :  { %v2076_v28 = vmax.f32 %v2072_v39, %v2783_v43 }
 0x18c   :  { %v1960_v61 = vadd.f32 %v1959_v2, %v2824_v49 }
 0x18e   :  { %v795_v42 = vpop.permute.xlu1 %794  ;;  %v1961_v15 = vadd.f32 %v1960_v61, %v2828_v59  ;;  %v865_v16 = vpop.permute.xlu2 %864  ;;  %v1586_v61 = vperm.slane %v1204_v41, 0 }
 0x18f   :  { %v788_v11 = vpop.permute.xlu0 %787  ;;  %vm1067_vm6 = vcmp.gt.f32.partialorder %v795_v42, 0.0  ;;  %vm1077_vm1 = vcmp.gt.f32.partialorder %v865_v16, 0.0  ;;  %v2075_v16 = vmax.f32 %v2071_v48, %v2779_v45 }
 0x190   :  { %vm1066_vm7 = vcmp.gt.f32.partialorder %v788_v11, 0.0  ;;  %v2834_v25 = vsel %vm1067_vm6, %v1579_v56, 0.0 }
 0x191   :  { %v2831_v19 = vsel %vm1066_vm7, %v1578_v55, 0.0  ;;  %v2858_v55 = vunpack.c.l.bf16 %v2851_v52  ;;  %v2079_v45 = vmax.f32 %v2075_v16, %v2798_v44 }
 0x192   :  { %v1962_v23 = vadd.f32 %v1961_v15, %v2831_v19  ;;  %v1587_v15 = vperm.slane %v1205_v8, 0  ;;  %v2080_v8 = vmax.f32 %v2076_v28, %v2801_v63 }
 0x193   :  { %v1206_v51 = vrot.slane %v2858_v55, 1  ;;  %v1588_v47 = vperm.slane %v2858_v55, 0  ;;  %v1207_v3 = vrot.slane %v2858_v55, 2 }
 0x194   :  { %v1963_v26 = vadd.f32 %v1962_v23, %v2834_v25  ;;  %v2863_v23 = vsel %vm1074_vm14, %v1586_v61, 0.0  ;;  %v2084_v48 = vmax.f32 %v2080_v8, %v2814_v57 }
 0x195   :  { %v1589_v36 = vperm.slane %v1206_v51, 0 }
 0x196   :  { %v816_v32 = vpop.permute.xlu1 %815  ;;  %v1964_v22 = vadd.f32 %v1963_v26, %v2837_v20  ;;  %v886_v56 = vpop.permute.xlu2 %885 }
 0x197   :  { %v809_v24 = vpop.permute.xlu0 %808  ;;  %vm1070_vm9 = vcmp.gt.f32.partialorder %v816_v32, 0.0  ;;  %vm1080_vm4 = vcmp.gt.f32.partialorder %v886_v56, 0.0 }
 0x198   :  { %vm1069_vm10 = vcmp.gt.f32.partialorder %v809_v24, 0.0  ;;  %v2843_v34 = vsel %vm1070_vm9, %v1582_v13, 0.0  ;;  %v1208_v24 = vrot.slane %v2858_v55, 3 }
 0x199   :  { %v2840_v29 = vsel %vm1069_vm10, %v1581_v58, 0.0 }
 0x19a   :  { %v1965_v31 = vadd.f32 %v1964_v22, %v2840_v29 }
 0x19c   :  { %v1966_v17 = vadd.f32 %v1965_v31, %v2843_v34  ;;  %v1590_v31 = vperm.slane %v1207_v3, 0 }
 0x19e   :  { %v837_v10 = vpop.permute.xlu1 %836  ;;  %v1967_v2 = vadd.f32 %v1966_v17, %v2846_v37  ;;  %v907_v4 = vpop.permute.xlu2 %906  ;;  %v2878_v17 = vsel %vm1077_vm1, %v1589_v36, 0.0 }
 0x19f   :  { %v830_v35 = vpop.permute.xlu0 %829  ;;  %vm1073_vm12 = vcmp.gt.f32.partialorder %v837_v10, 0.0  ;;  %v1591_v10 = vperm.slane %v1208_v24, 0  ;;  %vm1083_vm7 = vcmp.gt.f32.partialorder %v907_v4, 0.0 }
 0x1a0   :  { %vm1072_vm13 = vcmp.gt.f32.partialorder %v830_v35, 0.0  ;;  %v2860_v42 = vsel %vm1073_vm12, %v1585_v30, 0.0  ;;  %v1210_v35 = vrot.slane %v2858_v55, 5 }
 0x1a1   :  { %v2854_v62 = vsel %vm1072_vm13, %v1584_v5, 0.0  ;;  %v1209_v5 = vrot.slane %v2858_v55, 4 }
 0x1a2   :  { %v1968_v1 = vadd.f32 %v1967_v2, %v2854_v62  ;;  %v1593_v43 = vperm.slane %v1210_v35, 0 }
 0x1a4   :  { %v1969_v11 = vadd.f32 %v1968_v1, %v2860_v42  ;;  %v1592_v1 = vperm.slane %v1209_v5, 0 }
 0x1a6   :  { %v858_v18 = vpop.permute.xlu1 %857  ;;  %v1970_v26 = vadd.f32 %v1969_v11, %v2863_v23  ;;  %v1211_v11 = vrot.slane %v2858_v55, 6  ;;  %v928_v57 = vpop.permute.xlu2 %927 }
 0x1a7   :  { %v851_v7 = vpop.permute.xlu0 %850  ;;  %vm1076_vm15 = vcmp.gt.f32.partialorder %v858_v18, 0.0  ;;  %v2077_v18 = vmax.f32 %v2073_v33, %v2786_v12  ;;  %v2088_v12 = vmax.f32 %v2084_v48, %v2828_v59  ;;  %vm1086_vm10 = vcmp.gt.f32.partialorder %v928_v57, 0.0 }
 0x1a8   :  { %vm1075_vm0 = vcmp.gt.f32.partialorder %v851_v7, 0.0  ;;  %v2872_v13 = vsel %vm1076_vm15, %v1588_v47, 0.0  ;;  %v2083_v47 = vmax.f32 %v2079_v45, %v2811_v50  ;;  %v2905_v7 = vsel %vm1080_vm4, %v1592_v1, 0.0 }
 0x1a9   :  { %v2868_v58 = vsel %vm1075_vm0, %v1587_v15, 0.0  ;;  %v2074_v15 = vmax.f32 %v2739_v0, %v2776_v53  ;;  %v1212_v0 = vrot.slane %v2858_v55, 7  ;;  %v1594_v21 = vperm.slane %v1211_v11, 0 }
 0x1aa   :  { %v1971_v32 = vadd.f32 %v1970_v26, %v2868_v58  ;;  %v2909_v53 = vunpack.c.h.bf16 %v2851_v52  ;;  %v2081_v50 = vmax.f32 %v2077_v18, %v2804_v27  ;;  %v2092_v52 = vmax.f32 %v2088_v12, %v2840_v29 }
 0x1ab   :  { %v2078_v63 = vmax.f32 %v2074_v15, %v2791_v14  ;;  %v2087_v14 = vmax.f32 %v2083_v47, %v2824_v49 }
 0x1ac   :  { %v1972_v22 = vadd.f32 %v1971_v32, %v2872_v13  ;;  %v1213_v55 = vrot.slane %v2909_v53, 1  ;;  %v1595_v32 = vperm.slane %v1212_v0, 0  ;;  %v2096_v59 = vmax.f32 %v2092_v52, %v2860_v42 }
 0x1ad   :  { %v2082_v3 = vmax.f32 %v2078_v63, %v2808_v6  ;;  %v1596_v27 = vperm.slane %v2909_v53, 0  ;;  %v2085_v39 = vmax.f32 %v2081_v50, %v2818_v40  ;;  %v1214_v6 = vrot.slane %v2909_v53, 2 }
 0x1ae   :  { %v879_v46 = vpop.permute.xlu1 %878  ;;  %v1973_v30 = vadd.f32 %v1972_v22, %v2878_v17  ;;  %v2091_v22 = vmax.f32 %v2087_v14, %v2837_v20  ;;  %v1217_v29 = vrot.slane %v2909_v53, 5  ;;  %v1851_v5 = vsel %vm1083_vm7, %v1595_v32, 0.0 }
 0x1af   :  { %v872_v41 = vpop.permute.xlu0 %871  ;;  %vm1079_vm2 = vcmp.gt.f32.partialorder %v879_v46, 0.0  ;;  %v2086_v49 = vmax.f32 %v2082_v3, %v2821_v9  ;;  %v2089_v42 = vmax.f32 %v2085_v39, %v2831_v19  ;;  %v1215_v28 = vrot.slane %v2909_v53, 3 }
 0x1b0   :  { %vm1078_vm3 = vcmp.gt.f32.partialorder %v872_v41, 0.0  ;;  %v2892_v61 = vsel %vm1079_vm2, %v1591_v10, 0.0  ;;  %v2095_v10 = vmax.f32 %v2091_v22, %v2854_v62  ;;  %v1216_v41 = vrot.slane %v2909_v53, 4 }
 0x1b1   :  { %v2887_v54 = vsel %vm1078_vm3, %v1590_v31, 0.0  ;;  %v1597_v31 = vperm.slane %v1213_v55, 0  ;;  %v2090_v4 = vmax.f32 %v2086_v49, %v2834_v25  ;;  %v2093_v25 = vmax.f32 %v2089_v42, %v2843_v34 }
 0x1b2   :  { %v1974_v2 = vadd.f32 %v1973_v30, %v2887_v54  ;;  %v2099_v40 = vmax.f32 %v2095_v10, %v2872_v13  ;;  %v2100_v30 = vmax.f32 %v2096_v59, %v2878_v17  ;;  %v1598_v35 = vperm.slane %v1214_v6, 0 }
 0x1b3   :  { %v2094_v19 = vmax.f32 %v2090_v4, %v2846_v37  ;;  %v1601_v11 = vperm.slane %v1217_v29, 0  ;;  %v1600_v33 = vperm.slane %v1216_v41, 0  ;;  %v2097_v34 = vmax.f32 %v2093_v25, %v2863_v23 }
 0x1b4   :  { %v1975_v60 = vadd.f32 %v1974_v2, %v2892_v61  ;;  %v949_v2 = vpop.permute.xlu2 %948  ;;  %v2103_v17 = vmax.f32 %v2099_v40, %v2905_v7  ;;  %v1854_v48 = vsel %vm1086_vm10, %v1598_v35, 0.0  ;;  %v1218_v37 = vrot.slane %v2909_v53, 6 }
 0x1b5   :  { %vm1089_vm11 = vcmp.gt.f32.partialorder %v949_v2, 0.0  ;;  %v2098_v45 = vmax.f32 %v2094_v19, %v2868_v58  ;;  %v2101_v58 = vmax.f32 %v2097_v34, %v2887_v54 }
 0x1b6   :  { %v900_v51 = vpop.permute.xlu1 %899  ;;  %v1976_v44 = vadd.f32 %v1975_v60, %v2905_v7  ;;  %v1599_v60 = vperm.slane %v1215_v28, 0  ;;  %v1857_v47 = vsel %vm1089_vm11, %v1601_v11, 0.0  ;;  %v1602_v55 = vperm.slane %v1218_v37, 0 }
 0x1b7   :  { %v893_v38 = vpop.permute.xlu0 %892  ;;  %vm1082_vm5 = vcmp.gt.f32.partialorder %v900_v51, 0.0  ;;  %v1219_v51 = vrot.slane %v2909_v53, 7  ;;  %v2102_v7 = vmax.f32 %v2098_v45, %v2892_v61 }
 0x1b8   :  { %vm1081_vm6 = vcmp.gt.f32.partialorder %v893_v38, 0.0  ;;  %v2918_v36 = vsel %vm1082_vm5, %v1594_v21, 0.0 }
 0x1b9   :  { %v1849_v56 = vsel %vm1081_vm6, %v1593_v43, 0.0  ;;  %v2105_v12 = vmax.f32 %v2101_v58, %v2918_v36  ;;  %v1603_v50 = vperm.slane %v1219_v51, 0 }
 0x1ba   :  { %v1977_v26 = vadd.f32 %v1976_v44, %v1849_v56  ;;  %v2104_v1 = vmax.f32 %v2100_v30, %v1849_v56 }
 0x1bb   :  { %v2109_v61 = vmax.f32 %v2105_v12, %v1854_v48 }
 0x1bc   :  { %v1978_v24 = vadd.f32 %v1977_v26, %v2918_v36  ;;  %v2106_v26 = vmax.f32 %v2102_v7, %v1851_v5 }
 0x1be   :  { %v921_v46 = vpop.permute.xlu1 %920  ;;  %v1979_v20 = vadd.f32 %v1978_v24, %v1851_v5 }
 0x1bf   :  { %vm1085_vm8 = vcmp.gt.f32.partialorder %v921_v46, 0.0  ;;  %v914_v9 = vpop.permute.xlu0 %913 }
 0x1c0   :  { %vm1084_vm9 = vcmp.gt.f32.partialorder %v914_v9, 0.0  ;;  %v1853_v62 = vsel %vm1085_vm8, %v1597_v31, 0.0 }
 0x1c1   :  { %v1852_v16 = vsel %vm1084_vm9, %v1596_v27, 0.0  ;;  %v2108_v13 = vmax.f32 %v2104_v1, %v1853_v62  ;;  %v2130_v27 = vpop.permute.xlu2 %2129 }
 0x1c2   :  { %v1980_v8 = vadd.f32 %v1979_v20, %v1852_v16  ;;  %v2107_v63 = vmax.f32 %v2103_v17, %v1852_v16 }
 0x1c3   :  { %v2112_v38 = vmax.f32 %v2108_v13, %v1857_v47 }
 0x1c4   :  { %v1981_v15 = vadd.f32 %v1980_v8, %v1853_v62 }
 0x1c6   :  { %v942_v43 = vpop.permute.xlu1 %941  ;;  %v1982_v21 = vadd.f32 %v1981_v15, %v1854_v48 }
 0x1c7   :  { %vm1088_vm12 = vcmp.gt.f32.partialorder %v942_v43, 0.0  ;;  %v935_v18 = vpop.permute.xlu0 %934 }
 0x1c8   :  { %v1856_v0 = vsel %vm1088_vm12, %v1600_v33, 0.0  ;;  %vm1087_vm13 = vcmp.gt.f32.partialorder %v935_v18, 0.0 }
 0x1c9   :  { %v2111_v57 = vmax.f32 %v2107_v63, %v1856_v0  ;;  %v1855_v44 = vsel %vm1087_vm13, %v1599_v60, 0.0 }
 0x1ca   :  { %v1983_v23 = vadd.f32 %v1982_v21, %v1855_v44  ;;  %v2110_v3 = vmax.f32 %v2106_v26, %v1855_v44 }
 0x1cb   :  { %v2115_v14 = vmax.f32 %v2111_v57, %v2112_v38 }
 0x1cc   :  { %v1984_v56 = vadd.f32 %v1983_v23, %v1856_v0 }
 0x1ce   :  { %v963_v53 = vpop.permute.xlu1 %962  ;;  %v1985_v24 = vadd.f32 %v1984_v56, %v1857_v47 }
 0x1cf   :  { %vm1091_vm14 = vcmp.gt.f32.partialorder %v963_v53, 0.0  ;;  %v956_v52 = vpop.permute.xlu0 %955 }
 0x1d0   :  { %v1859_v32 = vsel %vm1091_vm14, %v1603_v50, 0.0  ;;  %vm1090_vm15 = vcmp.gt.f32.partialorder %v956_v52, 0.0 }
 0x1d1   :  { %v2114_v49 = vmax.f32 %v2110_v3, %v1859_v32  ;;  %v1858_v59 = vsel %vm1090_vm15, %v1602_v55, 0.0 }
 0x1d2   :  { %v1986_v22 = vadd.f32 %v1985_v24, %v1858_v59  ;;  %v2113_v54 = vmax.f32 %v2109_v61, %v1858_v59 }
 0x1d4   :  { %v2116_v39 = vmax.f32 %v2113_v54, %v2114_v49  ;;  %v1987_v6 = vadd.f32 %v1986_v22, %v1859_v32 }
 0x1d6   :  { %v2117_v36 = vmax.f32 %v2115_v14, %v2116_v39  ;;  %v2132_v29 = vmul.f32 %v2130_v27, %v1987_v6 }
 0x1d8   :  { %v2118_v31 = vmax.f32 %v2117_v36, 0.0  ;;  %2133 = vst [vmem:[%s2954_s3 + $0x8] sm:$0xff] %v2132_v29 }
 0x1da   :  { %2124 = vst [vmem:[%s2954_s3] sm:$0xff] %v2118_v31 }

// kernel: model_forward.9
= control target key start
LH: loop header
LB: loop body
LE: loop exit
PB: predicated region body
PF: predicated region fallthrough
CT: control target
= control target key end

     0   :  { %v4571_v0 = vmov 0   ;;  %v4570_v20 = vlaneseq  ;;  %s4554_s1 = inlined_call_operand.vmem [shape: f32[128,1], index: 1, kind: input, shape index: {}]   ;;  %s4555_s2 = inlined_call_operand.vmem [shape: bf16[128,128], index: 2, kind: input, shape index: {}]   ;;  %s4556_s0 = inlined_call_operand.vmem [shape: bf16[128,128], index: 0, kind: input, shape index: {}]   ;;  %s4557_s5 = inlined_call_operand.vmem [shape: f32[128,8], index: 5, kind: input, shape index: {}]   ;;  %s4558_s3 = inlined_call_operand.vmem [shape: bf16[128,128], index: 3, kind: input, shape index: {}]   ;;  %s4559_s4 = inlined_call_operand.vmem [shape: f32[1,128], index: 4, kind: input, shape index: {}]   ;;  %s4560_s6 = inlined_call_operand.vmem [shape: f32[8,1], index: 6, kind: input, shape index: {}]   ;;  %s4561_s9 = inlined_call_operand.vmem [shape: bf16[256,128], index: 9, kind: input, shape index: {}]   ;;  %s4562_s7 = inlined_call_operand.vmem [shape: f32[8,256], index: 7, kind: input, shape index: {}]   ;;  %s4563_s8 = inlined_call_operand.vmem [shape: f32[8,256], index: 8, kind: input, shape index: {}]   ;;  %s4564_s10 = inlined_call_operand.vmem [shape: f32[1,128], index: 10, kind: input, shape index: {}]   ;;  %s4565_s12 = inlined_call_operand.vmem [shape: f32[1,128], index: 12, kind: input, shape index: {}]   ;;  %s4566_s11 = inlined_call_operand.vmem [shape: bf16[128,128], index: 11, kind: input, shape index: {}]   ;;  %s4567_s13 = inlined_call_operand.vmem [shape: bf16[128,128], index: 13, kind: input, shape index: {}]   ;;  %s4568_s14 = inlined_call_operand.vmem [shape: f32[1,128], index: 14, kind: input, shape index: {}]   ;;  %s4569_s15 = inlined_call_operand.vmem [shape: f32[8,128], index: 15, kind: output, shape index: {}]  }
   0x1   :  { %3312 = vset.pattern.permute.xlu2 %v4571_v0  ;;  %3311 = vset.pattern.permute.xlu1 %v4571_v0  ;;  %v309_v1 = vld [vmem:[%s4554_s1 + $0x20] sm:$0xff]  ;;  %v307_v2 = vld [vmem:[%s4554_s1 + $0x10] sm:$0xff]  ;;  %v3252_v4 = vld [vmem:[%s4555_s2 + $0x38] sm:$0xff] }
   0x2   :  { %v305_v3 = vld [vmem:[%s4554_s1] sm:$0xff]  ;;  %3310 = vset.pattern.permute.xlu0 %v4571_v0  ;;  %359 = vperm.xlu2 %3312, %v309_v1   ;;  %v3251_v5 = vld [vmem:[%s4555_s2 + $0x30] sm:$0xff]  ;;  %v310_v6 = vld [vmem:[%s4554_s1 + $0x28] sm:$0xff]  ;;  %v3476_v22 = vshrl.u32 %v4570_v20, 7 }
   0x3   :  { %349 = vperm.xlu1 %3311, %v307_v2   ;;  %339 = vperm.xlu0 %3310, %v305_v3   ;;  %v308_v7 = vld [vmem:[%s4554_s1 + $0x18] sm:$0xff]  ;;  %v306_v8 = vld [vmem:[%s4554_s1 + $0x8] sm:$0xff]  ;;  %v3249_v10 = vld [vmem:[%s4555_s2 + $0x20] sm:$0xff] }
   0x4   :  { %221 = vmatpush.bf16.msra.mxu0 %v3252_v4  ;;  %3293 = vmatpush.bf16.msra.mxu2 %v3252_v4  ;;  %v3250_v9 = vld [vmem:[%s4555_s2 + $0x28] sm:$0xff]  ;;  %v313_v11 = vld [vmem:[%s4554_s1 + $0x40] sm:$0xff]  ;;  %v312_v12 = vld [vmem:[%s4554_s1 + $0x38] sm:$0xff] }
   0x5   :  { %v311_v13 = vld [vmem:[%s4554_s1 + $0x30] sm:$0xff]  ;;  %v3248_v14 = vld [vmem:[%s4555_s2 + $0x18] sm:$0xff]  ;;  %v314_v18 = vld [vmem:[%s4554_s1 + $0x48] sm:$0xff] }
   0x6   :  { %v3247_v15 = vld [vmem:[%s4555_s2 + $0x10] sm:$0xff]  ;;  %v316_v16 = vld [vmem:[%s4554_s1 + $0x58] sm:$0xff]  ;;  %v3246_v19 = vld [vmem:[%s4555_s2 + $0x8] sm:$0xff] }
   0x7   :  { %v315_v17 = vld [vmem:[%s4554_s1 + $0x50] sm:$0xff]  ;;  %v3245_v21 = vld [vmem:[%s4555_s2] sm:$0xff]  ;;  %v320_v29 = vld [vmem:[%s4554_s1 + $0x78] sm:$0xff] }
   0x8   :  { %222 = vmatpush.bf16.msra.mxu0 %v3251_v5  ;;  %3294 = vmatpush.bf16.msra.mxu2 %v3251_v5  ;;  %v317_v23 = vld [vmem:[%s4554_s1 + $0x60] sm:$0xff]  ;;  %v3243_v25 = vld [vmem:[%s4556_s0 + $0x30] sm:$0xff]  ;;  %v3238_v32 = vld [vmem:[%s4556_s0 + $0x8] sm:$0xff] }
   0x9   :  { %v3237_v24 = vld [vmem:[%s4556_s0] sm:$0xff]  ;;  %v3244_v33 = vld [vmem:[%s4556_s0 + $0x38] sm:$0xff]  ;;  %v575_v37 = vld [vmem:[%s4557_s5 + $0x8] sm:$0xff] }
   0xa   :  { %364 = vperm.xlu2 %3312, %v310_v6   ;;  %v574_v26 = vld [vmem:[%s4557_s5] sm:$0xff]  ;;  %v660_v38 = vperm.slane %v575_v37, 2  ;;  %v653_v39 = vperm.slane %v575_v37, 1  ;;  %v3239_v41 = vld [vmem:[%s4556_s0 + $0x10] sm:$0xff]  ;;  %v681_v42 = vperm.slane %v575_v37, 5  ;;  %v674_v43 = vperm.slane %v575_v37, 4 }
   0xb   :  { %354 = vperm.xlu1 %3311, %v308_v7   ;;  %344 = vperm.xlu0 %3310, %v306_v8   ;;  %v604_v27 = vperm.slane %v574_v26, 2  ;;  %v597_v28 = vperm.slane %v574_v26, 1  ;;  %v618_v30 = vperm.slane %v574_v26, 4  ;;  %v611_v31 = vperm.slane %v574_v26, 3  ;;  %v576_v45 = vld [vmem:[%s4557_s5 + $0x10] sm:$0xff]  ;;  %v3240_v49 = vld [vmem:[%s4556_s0 + $0x18] sm:$0xff] }
   0xc   :  { %223 = vmatpush.bf16.msra.mxu0 %v3250_v9  ;;  %3295 = vmatpush.bf16.msra.mxu2 %v3250_v9  ;;  %v639_v34 = vperm.slane %v574_v26, 7  ;;  %v632_v35 = vperm.slane %v574_v26, 6  ;;  %v590_v36 = vperm.slane %v574_v26, 0  ;;  %v625_v40 = vperm.slane %v574_v26, 5  ;;  %v3241_v57 = vld [vmem:[%s4556_s0 + $0x20] sm:$0xff]  ;;  %v3522_v58 = vld [vmem:[%s4557_s5 + $0x18] sm:$0xff] }
   0xd   :  { %v646_v44 = vperm.slane %v575_v37, 0  ;;  %v702_v46 = vperm.slane %v576_v45, 0  ;;  %v695_v47 = vperm.slane %v575_v37, 7  ;;  %v667_v48 = vperm.slane %v575_v37, 3  ;;  %v3260_v63 = vld [vmem:[%s4558_s3 + $0x38] sm:$0xff]  ;;  %v3242_v3 = vld [vmem:[%s4556_s0 + $0x28] sm:$0xff] }
   0xe   :  { %v723_v50 = vperm.slane %v576_v45, 3  ;;  %v716_v51 = vperm.slane %v576_v45, 2  ;;  %v688_v52 = vperm.slane %v575_v37, 6  ;;  %v744_v54 = vperm.slane %v576_v45, 6  ;;  %509 = vmatpush.bf16.msra.mxu1 %v3260_v63  ;;  %3301 = vmatpush.bf16.msra.mxu3 %v3260_v63  ;;  %v318_v5 = vld [vmem:[%s4554_s1 + $0x68] sm:$0xff]  ;;  %v3259_v6 = vld [vmem:[%s4558_s3 + $0x30] sm:$0xff] }
   0xf   :  { %v737_v55 = vperm.slane %v576_v45, 5  ;;  %v709_v56 = vperm.slane %v576_v45, 1  ;;  %v765_v59 = vperm.slane %v3522_v58, 1  ;;  %v758_v61 = vperm.slane %v3522_v58, 0  ;;  %v3258_v9 = vld [vmem:[%s4558_s3 + $0x28] sm:$0xff]  ;;  %v3634_v63 = vld [vmem:[%s4557_s5 + $0x38] sm:$0xff] }
  0x10   :  { %224 = vmatpush.bf16.msra.mxu0 %v3249_v10  ;;  %3296 = vmatpush.bf16.msra.mxu2 %v3249_v10  ;;  %v730_v62 = vperm.slane %v576_v45, 4  ;;  %v772_v1 = vperm.slane %v3522_v58, 2  ;;  %v751_v2 = vperm.slane %v576_v45, 7  ;;  %v786_v10 = vperm.slane %v3522_v58, 4  ;;  %v3609_v45 = vld [vmem:[%s4557_s5 + $0x30] sm:$0xff] }
  0x12   :  { %379 = vperm.xlu2 %3312, %v313_v11   ;;  %510 = vmatpush.bf16.msra.mxu1 %v3259_v6  ;;  %v793_v11 = vperm.slane %v3522_v58, 5 }
  0x13   :  { %374 = vperm.xlu1 %3311, %v312_v12   ;;  %369 = vperm.xlu0 %3310, %v311_v13   ;;  %v3257_v12 = vld [vmem:[%s4558_s3 + $0x20] sm:$0xff] }
  0x14   :  { %225 = vmatpush.bf16.msra.mxu0 %v3248_v14  ;;  %3297 = vmatpush.bf16.msra.mxu2 %v3248_v14  ;;  %v578_v14 = vld [vmem:[%s4557_s5 + $0x20] sm:$0xff] }
  0x15   :  { %3302 = vmatpush.bf16.msra.mxu3 %v3259_v6  ;;  %v821_v26 = vperm.slane %v578_v14, 1 }
  0x16   :  { %511 = vmatpush.bf16.msra.mxu1 %v3258_v9 }
  0x18   :  { %226 = vmatpush.bf16.msra.mxu0 %v3247_v15  ;;  %3298 = vmatpush.bf16.msra.mxu2 %v3247_v15 }
  0x19   :  { %3303 = vmatpush.bf16.msra.mxu3 %v3258_v9 }
  0x1a   :  { %394 = vperm.xlu2 %3312, %v316_v16   ;;  %512 = vmatpush.bf16.msra.mxu1 %v3257_v12  ;;  %v3256_v16 = vld [vmem:[%s4558_s3 + $0x18] sm:$0xff] }
  0x1b   :  { %389 = vperm.xlu1 %3311, %v315_v17   ;;  %384 = vperm.xlu0 %3310, %v314_v18   ;;  %v807_v17 = vperm.slane %v3522_v58, 7 }
  0x1c   :  { %227 = vmatpush.bf16.msra.mxu0 %v3246_v19  ;;  %3299 = vmatpush.bf16.msra.mxu2 %v3246_v19  ;;  %v828_v19 = vperm.slane %v578_v14, 2 }
  0x1d   :  { %3304 = vmatpush.bf16.msra.mxu3 %v3257_v12 }
  0x1e   :  { %513 = vmatpush.bf16.msra.mxu1 %v3256_v16 }
  0x20   :  { %228 = vmatpush.bf16.msra.mxu0 %v3245_v21  ;;  %3300 = vmatpush.bf16.msra.mxu2 %v3245_v21  ;;  %v779_v21 = vperm.slane %v3522_v58, 3 }
  0x21   :  { %3305 = vmatpush.bf16.msra.mxu3 %v3256_v16 }
  0x22   :  { %3314 = vset.pattern.permute.xlu2 %v3476_v22 }
  0x23   :  { %3313 = vset.pattern.permute.xlu1 %v3476_v22  ;;  %399 = vperm.xlu0 %3310, %v317_v23   ;;  %v3255_v23 = vld [vmem:[%s4558_s3 + $0x10] sm:$0xff] }
  0x24   :  { %229 = vmatmul.bf16.vlgmr.msra.gmra.mxu0 %v3237_v24  ;;  %259 = vmatmul.bf16.vlgmr.msra.gmra.mxu2 %v3243_v25  ;;  %v3254_v25 = vld [vmem:[%s4558_s3 + $0x8] sm:$0xff] }
  0x25   :  { %514 = vmatpush.bf16.msra.mxu1 %v3255_v23  ;;  %3306 = vmatpush.bf16.msra.mxu3 %v3255_v23 }
  0x29   :  { %515 = vmatpush.bf16.msra.mxu1 %v3254_v25  ;;  %3307 = vmatpush.bf16.msra.mxu3 %v3254_v25 }
  0x2a   :  { %609 = vperm.xlu2 %3314, %v604_v27  }
  0x2b   :  { %602 = vperm.xlu1 %3313, %v597_v28   ;;  %414 = vperm.xlu0 %3310, %v320_v29   ;;  %v849_v28 = vperm.slane %v578_v14, 5  ;;  %v800_v29 = vperm.slane %v3522_v58, 6 }
  0x32   :  { %623 = vperm.xlu2 %3314, %v618_v30  }
  0x33   :  { %616 = vperm.xlu1 %3313, %v611_v31   ;;  %3318 = vset.pattern.permute.xlu0 %v3476_v22  ;;  %v3253_v31 = vld [vmem:[%s4558_s3] sm:$0xff] }
  0x34   :  { %234 = vmatmul.bf16.gmra.mxu0 %v3238_v32  ;;  %264 = vmatmul.bf16.gmra.mxu2 %v3244_v33  ;;  %v3592_v33 = vld [vmem:[%s4557_s5 + $0x28] sm:$0xff] }
  0x35   :  { %516 = vmatpush.bf16.msra.mxu1 %v3253_v31  ;;  %3308 = vmatpush.bf16.msra.mxu3 %v3253_v31  ;;  %v905_v12 = vperm.slane %v3592_v33, 5  ;;  %v3668_v31 = vld [vmem:[%s4557_s5 + $0x40] sm:$0xff] }
  0x3a   :  { %644 = vperm.xlu2 %3314, %v639_v34   ;;  %v842_v34 = vperm.slane %v578_v14, 4 }
  0x3b   :  { %637 = vperm.xlu1 %3313, %v632_v35   ;;  %595 = vperm.xlu0 %3318, %v590_v36   ;;  %v870_v35 = vperm.slane %v3592_v33, 0  ;;  %v814_v36 = vperm.slane %v578_v14, 0 }
  0x42   :  { %665 = vperm.xlu2 %3314, %v660_v38  }
  0x43   :  { %658 = vperm.xlu1 %3313, %v653_v39   ;;  %630 = vperm.xlu0 %3318, %v625_v40   ;;  %v863_v40 = vperm.slane %v578_v14, 7 }
  0x44   :  { %239 = vmatmul.bf16.gmra.mxu0 %v3239_v41  ;;  %v912_v41 = vperm.slane %v3592_v33, 6 }
  0x4a   :  { %686 = vperm.xlu2 %3314, %v681_v42   ;;  %v835_v42 = vperm.slane %v578_v14, 3 }
  0x4b   :  { %679 = vperm.xlu1 %3313, %v674_v43   ;;  %651 = vperm.xlu0 %3318, %v646_v44  }
  0x52   :  { %707 = vperm.xlu2 %3314, %v702_v46  }
  0x53   :  { %700 = vperm.xlu1 %3313, %v695_v47   ;;  %672 = vperm.xlu0 %3318, %v667_v48   ;;  %v947_v47 = vperm.slane %v3609_v45, 3  ;;  %v319_v48 = vld [vmem:[%s4554_s1 + $0x70] sm:$0xff] }
  0x54   :  { %244 = vmatmul.bf16.gmra.mxu0 %v3240_v49  ;;  %v856_v49 = vperm.slane %v578_v14, 6  ;;  %v898_v14 = vperm.slane %v3592_v33, 4 }
  0x5a   :  { %728 = vperm.xlu2 %3314, %v723_v50  }
  0x5b   :  { %721 = vperm.xlu1 %3313, %v716_v51   ;;  %693 = vperm.xlu0 %3318, %v688_v52  }
  0x5c   :  { %v3514_v53 = vpop.permute.xlu2 %359 }
  0x62   :  { %749 = vperm.xlu2 %3314, %v744_v54  }
  0x63   :  { %742 = vperm.xlu1 %3313, %v737_v55   ;;  %714 = vperm.xlu0 %3318, %v709_v56   ;;  %v968_v55 = vperm.slane %v3609_v45, 6  ;;  %v877_v56 = vperm.slane %v3592_v33, 1 }
  0x64   :  { %249 = vmatmul.bf16.gmra.mxu0 %v3241_v57  ;;  %v3525_v60 = vpop.permute.xlu2 %364 }
  0x6a   :  { %770 = vperm.xlu2 %3314, %v765_v59  }
  0x6b   :  { %763 = vperm.xlu1 %3313, %v758_v61   ;;  %735 = vperm.xlu0 %3318, %v730_v62  }
  0x6c   :  { %v3535_v4 = vpop.permute.xlu2 %379 }
  0x72   :  { %777 = vperm.xlu2 %3314, %v772_v1  }
  0x73   :  { %3315 = vset.pattern.permute.xlu1 %v4571_v0  ;;  %756 = vperm.xlu0 %3318, %v751_v2  }
  0x74   :  { %404 = vperm.xlu1 %3315, %v318_v5   ;;  %254 = vmatmul.bf16.gmra.mxu0 %v3242_v3  ;;  %v3556_v13 = vpop.permute.xlu2 %394  ;;  %v989_v3 = vperm.slane %v3634_v63, 1  ;;  %v891_v5 = vperm.slane %v3592_v33, 3 }
  0x75   :  { %v3544_v7 = vpop.permute.xlu1 %349  ;;  %v3546_v8 = vpop.permute.xlu0 %339 }
  0x7a   :  { %791 = vperm.xlu2 %3314, %v786_v10  }
  0x7b   :  { %798 = vperm.xlu0 %3318, %v793_v11   ;;  %v1010_v11 = vperm.slane %v3634_v63, 4 }
  0x7c   :  { %3316 = vset.pattern.permute.xlu1 %v3476_v22 }
  0x7d   :  { %v3562_v15 = vpop.permute.xlu0 %344  ;;  %v3568_v18 = vpop.permute.xlu1 %354 }
  0x82   :  { %812 = vperm.xlu2 %3314, %v807_v17  }
  0x83   :  { %833 = vperm.xlu0 %3318, %v828_v19  }
  0x84   :  { %784 = vperm.xlu1 %3316, %v779_v21   ;;  %v3574_v24 = vpop.permute.xlu2 %609 }
  0x85   :  { %v3579_v27 = vpop.permute.xlu0 %369  ;;  %v3582_v30 = vpop.permute.xlu1 %374  ;;  %vm1488_vm0 = vcmp.gt.f32.partialorder %v3574_v24, 0.0 }
  0x8a   :  { %826 = vperm.xlu2 %3314, %v821_v26   ;;  %v1031_v26 = vperm.slane %v3634_v63, 7 }
  0x8b   :  { %854 = vperm.xlu0 %3318, %v849_v28   ;;  %v926_v28 = vperm.slane %v3609_v45, 0 }
  0x8c   :  { %805 = vperm.xlu1 %3316, %v800_v29   ;;  %v3587_v32 = vpop.permute.xlu2 %623  ;;  %v919_v29 = vperm.slane %v3592_v33, 7 }
  0x8d   :  { %v3595_v37 = vpop.permute.xlu0 %384  ;;  %v3597_v38 = vpop.permute.xlu1 %389  ;;  %vm1490_vm1 = vcmp.gt.f32.partialorder %v3587_v32, 0.0 }
  0x92   :  { %847 = vperm.xlu2 %3314, %v842_v34  }
  0x93   :  { %875 = vperm.xlu0 %3318, %v870_v35  }
  0x94   :  { %819 = vperm.xlu1 %3316, %v814_v36   ;;  %v3599_v39 = vpop.permute.xlu2 %644  ;;  %v1052_v36 = vperm.slane %v3668_v31, 2 }
  0x95   :  { %v3602_v43 = vpop.permute.xlu0 %399  ;;  %vm1493_vm2 = vcmp.gt.f32.partialorder %v3599_v39, 0.0 }
  0x9a   :  { %868 = vperm.xlu2 %3314, %v863_v40   ;;  %v940_v40 = vperm.slane %v3609_v45, 2 }
  0x9b   :  { %917 = vperm.xlu0 %3318, %v912_v41  }
  0x9c   :  { %840 = vperm.xlu1 %3316, %v835_v42   ;;  %v3604_v44 = vpop.permute.xlu2 %665 }
  0x9d   :  { %v3611_v46 = vpop.permute.xlu1 %602  ;;  %v3620_v52 = vpop.permute.xlu0 %414  ;;  %vm1496_vm8 = vcmp.gt.f32.partialorder %v3604_v44, 0.0 }
  0x9e   :  { %vm1487_vm3 = vcmp.gt.f32.partialorder %v3611_v46, 0.0 }
  0xa1   :  { %v230_v50 = vpop.f32.mrf.mxu0 }
  0xa2   :  { %3317 = vset.pattern.permute.xlu2 %v4571_v0  ;;  %v417_v58 = vmul.f32 %v3546_v8, %v230_v50 }
  0xa3   :  { %952 = vperm.xlu0 %3318, %v947_v47   ;;  %409 = vperm.xlu2 %3317, %v319_v48  }
  0xa4   :  { %861 = vperm.xlu1 %3316, %v856_v49   ;;  %v3618_v51 = vpop.permute.xlu2 %686 }
  0xa5   :  { %v3622_v54 = vpop.permute.xlu1 %616  ;;  %vm1499_vm9 = vcmp.gt.f32.partialorder %v3618_v51, 0.0 }
  0xa6   :  { %vm1489_vm4 = vcmp.gt.f32.partialorder %v3622_v54, 0.0 }
  0xa9   :  { %v232_v57 = vpop.f32.mrf.mxu0 }
  0xaa   :  { %v418_v59 = vmul.f32 %v3562_v15, %v232_v57  ;;  %v961_v57 = vperm.slane %v3609_v45, 5 }
  0xab   :  { %973 = vperm.xlu0 %3318, %v968_v55   ;;  %3319 = vset.pattern.permute.xlu2 %v3476_v22  ;;  %v884_v22 = vperm.slane %v3592_v33, 2  ;;  %v933_v33 = vperm.slane %v3609_v45, 1 }
  0xac   :  { %882 = vperm.xlu1 %3316, %v877_v56   ;;  %v3629_v61 = vpop.permute.xlu2 %707  ;;  %v433_v62 = vpack.c.bf16 %v418_v59, %v417_v58  ;;  %v1073_v56 = vperm.slane %v3668_v31, 5  ;;  %v954_v58 = vperm.slane %v3609_v45, 4  ;;  %v3693_v59 = vld [vmem:[%s4557_s5 + $0x48] sm:$0xff] }
  0xad   :  { %v3636_v1 = vpop.permute.xlu1 %637  ;;  %v3638_v2 = vpop.permute.xlu0 %595 }
  0xae   :  { %517 = vmatmul.bf16.vlgmr.msra.gmra.mxu1 %v433_v62  ;;  %vm1492_vm5 = vcmp.gt.f32.partialorder %v3636_v1, 0.0  ;;  %vm1486_vm6 = vcmp.gt.f32.partialorder %v3638_v2, 0.0 }
  0xb1   :  { %v235_v6 = vpop.f32.mrf.mxu0 }
  0xb2   :  { %v419_v16 = vmul.f32 %v3544_v7, %v235_v6  ;;  %v975_v6 = vperm.slane %v3609_v45, 7  ;;  %v1003_v45 = vperm.slane %v3634_v63, 3 }
  0xb3   :  { %994 = vperm.xlu0 %3318, %v989_v3   ;;  %896 = vperm.xlu2 %3319, %v891_v5   ;;  %v1094_v5 = vperm.slane %v3693_v59, 0 }
  0xb4   :  { %889 = vperm.xlu1 %3316, %v884_v22   ;;  %v3643_v8 = vpop.permute.xlu2 %728  ;;  %v982_v22 = vperm.slane %v3634_v63, 0 }
  0xb5   :  { %v3645_v9 = vpop.permute.xlu1 %658  ;;  %v3647_v10 = vpop.permute.xlu0 %630 }
  0xb6   :  { %vm1491_vm7 = vcmp.gt.f32.partialorder %v3647_v10, 0.0  ;;  %vm1495_vm10 = vcmp.gt.f32.partialorder %v3645_v9, 0.0 }
  0xb9   :  { %v237_v15 = vpop.f32.mrf.mxu0 }
  0xba   :  { %v420_v17 = vmul.f32 %v3568_v18, %v237_v15  ;;  %v260_v15 = vpop.f32.mrf.mxu2 }
  0xbb   :  { %1015 = vperm.xlu0 %3318, %v1010_v11   ;;  %910 = vperm.xlu2 %3319, %v905_v12  }
  0xbc   :  { %903 = vperm.xlu1 %3316, %v898_v14   ;;  %v3654_v19 = vpop.permute.xlu2 %749  ;;  %v434_v21 = vpack.c.bf16 %v420_v17, %v419_v16 }
  0xbd   :  { %v3656_v23 = vpop.permute.xlu1 %679  ;;  %v3658_v25 = vpop.permute.xlu0 %651 }
  0xbe   :  { %522 = vmatmul.bf16.gmra.mxu1 %v434_v21  ;;  %vm1498_vm11 = vcmp.gt.f32.partialorder %v3656_v23, 0.0  ;;  %vm1494_vm12 = vcmp.gt.f32.partialorder %v3658_v25, 0.0  ;;  %v3919_v23 = vld [vmem:[%s4557_s5 + $0x70] sm:$0xff] }
  0xc1   :  { %v240_v7 = vpop.f32.mrf.mxu0 }
  0xc2   :  { %v421_v42 = vmul.f32 %v3514_v53, %v240_v7 }
  0xc3   :  { %1036 = vperm.xlu0 %3318, %v1031_v26   ;;  %931 = vperm.xlu2 %3319, %v926_v28   ;;  %v1115_v28 = vperm.slane %v3693_v59, 3 }
  0xc4   :  { %924 = vperm.xlu1 %3316, %v919_v29   ;;  %v3663_v18 = vpop.permute.xlu2 %770 }
  0xc5   :  { %v3670_v34 = vpop.permute.xlu1 %700  ;;  %v3672_v35 = vpop.permute.xlu0 %672 }
  0xc6   :  { %vm1497_vm13 = vcmp.gt.f32.partialorder %v3672_v35, 0.0  ;;  %vm1501_vm15 = vcmp.gt.f32.partialorder %v3670_v34, 0.0 }
  0xc9   :  { %v242_v41 = vpop.f32.mrf.mxu0 }
  0xca   :  { %v422_v47 = vmul.f32 %v3525_v60, %v242_v41 }
  0xcb   :  { %1057 = vperm.xlu0 %3318, %v1052_v36   ;;  %945 = vperm.xlu2 %3319, %v940_v40   ;;  %v262_v36 = vpop.f32.mrf.mxu2 }
  0xcc   :  { %938 = vperm.xlu1 %3316, %v933_v33   ;;  %v3679_v48 = vpop.permute.xlu2 %777  ;;  %v435_v49 = vpack.c.bf16 %v422_v47, %v421_v42  ;;  %v429_v33 = vmul.f32 %v3602_v43, %v260_v15  ;;  %v1136_v42 = vperm.slane %v3693_v59, 6  ;;  %v1024_v47 = vperm.slane %v3634_v63, 6 }
  0xcd   :  { %v3681_v50 = vpop.permute.xlu1 %721  ;;  %v3683_v55 = vpop.permute.xlu0 %693 }
  0xce   :  { %527 = vmatmul.bf16.gmra.mxu1 %v435_v49  ;;  %v1017_v49 = vperm.slane %v3634_v63, 5  ;;  %vm1500_vm14 = vcmp.gt.f32.partialorder %v3683_v55, 0.0 }
  0xd1   :  { %v245_v53 = vpop.f32.mrf.mxu0 }
  0xd2   :  { %v423_v12 = vmul.f32 %v3579_v27, %v245_v53  ;;  %v996_v27 = vperm.slane %v3634_v63, 2 }
  0xd3   :  { %1078 = vperm.xlu0 %3318, %v1073_v56   ;;  %966 = vperm.xlu2 %3319, %v961_v57  }
  0xd4   :  { %959 = vperm.xlu1 %3316, %v954_v58   ;;  %v3688_v60 = vpop.permute.xlu2 %791 }
  0xd5   :  { %v3695_v62 = vpop.permute.xlu1 %742  ;;  %v3697_v3 = vpop.permute.xlu0 %714 }
  0xd9   :  { %v247_v11 = vpop.f32.mrf.mxu0 }
  0xda   :  { %v424_v14 = vmul.f32 %v3582_v30, %v247_v11  ;;  %v265_v11 = vpop.f32.mrf.mxu2 }
  0xdb   :  { %1099 = vperm.xlu0 %3318, %v1094_v5   ;;  %987 = vperm.xlu2 %3319, %v982_v22   ;;  %v3728_v22 = vld [vmem:[%s4557_s5 + $0x50] sm:$0xff] }
  0xdc   :  { %980 = vperm.xlu1 %3316, %v975_v6   ;;  %v3704_v16 = vpop.permute.xlu2 %812  ;;  %v436_v17 = vpack.c.bf16 %v424_v14, %v423_v12  ;;  %v1157_v63 = vperm.slane %v3728_v22, 1 }
  0xdd   :  { %v3706_v21 = vpop.permute.xlu1 %763  ;;  %v3708_v26 = vpop.permute.xlu0 %735 }
  0xde   :  { %532 = vmatmul.bf16.gmra.mxu1 %v436_v17 }
  0xe1   :  { %v250_v29 = vpop.f32.mrf.mxu0 }
  0xe2   :  { %v425_v58 = vmul.f32 %v3535_v4, %v250_v29  ;;  %v1045_v4 = vperm.slane %v3668_v31, 1 }
  0xe3   :  { %1120 = vperm.xlu0 %3318, %v1115_v28   ;;  %1008 = vperm.xlu2 %3319, %v1003_v45   ;;  %v1178_v28 = vperm.slane %v3728_v22, 4  ;;  %v1066_v45 = vperm.slane %v3668_v31, 4 }
  0xe4   :  { %1001 = vperm.xlu1 %3316, %v996_v27   ;;  %v3713_v30 = vpop.permute.xlu2 %826  ;;  %v1059_v27 = vperm.slane %v3668_v31, 3 }
  0xe5   :  { %v3715_v7 = vpop.permute.xlu0 %756 }
  0xe6   :  { %v405_v40 = vpop.permute.xlu1 %404 }
  0xe7   :  { %v430_v41 = vmul.f32 %v405_v40, %v262_v36 }
  0xe9   :  { %v252_v56 = vpop.f32.mrf.mxu0  ;;  %v439_v57 = vpack.c.bf16 %v430_v41, %v429_v33  ;;  %v267_v33 = vpop.f32.mrf.mxu2 }
  0xea   :  { %v426_v53 = vmul.f32 %v3595_v37, %v252_v56  ;;  %v1038_v37 = vperm.slane %v3668_v31, 0 }
  0xeb   :  { %1141 = vperm.xlu0 %3318, %v1136_v42   ;;  %547 = vmatmul.bf16.vlgmr.msra.gmra.mxu3 %v439_v57 }
  0xec   :  { %1029 = vperm.xlu2 %3319, %v1024_v47   ;;  %1022 = vperm.xlu1 %3316, %v1017_v49   ;;  %v3723_v5 = vpop.permute.xlu2 %847  ;;  %v437_v43 = vpack.c.bf16 %v426_v53, %v425_v58  ;;  %v432_v49 = vmul.f32 %v3620_v52, %v267_v33  ;;  %v1199_v58 = vperm.slane %v3728_v22, 7 }
  0xed   :  { %v3730_v6 = vpop.permute.xlu0 %798 }
  0xee   :  { %537 = vmatmul.bf16.gmra.mxu1 %v437_v43  ;;  %v3757_v43 = vld [vmem:[%s4557_s5 + $0x58] sm:$0xff] }
  0xef   :  { %v1234_v39 = vperm.slane %v3757_v43, 4  ;;  %v1248_v9 = vperm.slane %v3757_v43, 6 }
  0xf1   :  { %v255_v12 = vpop.f32.mrf.mxu0 }
  0xf2   :  { %v427_v36 = vmul.f32 %v3597_v38, %v255_v12  ;;  %v1087_v38 = vperm.slane %v3668_v31, 7 }
  0xf3   :  { %1162 = vperm.xlu0 %3318, %v1157_v63  }
  0xf4   :  { %1050 = vperm.xlu2 %3319, %v1045_v4   ;;  %1043 = vperm.xlu1 %3316, %v1038_v37   ;;  %v3735_v14 = vpop.permute.xlu2 %868  ;;  %v1220_v4 = vperm.slane %v3757_v43, 2  ;;  %v1108_v37 = vperm.slane %v3693_v59, 2 }
  0xf5   :  { %4575 = vst [vmem:[#allocation5_spill] sm:$0xff] %v3735_v14  ;;  %v3737_v15 = vpop.permute.xlu0 %833 }
  0xf6   :  { %v3739_v17 = vpop.permute.xlu1 %784 }
  0xf9   :  { %v257_v29 = vpop.f32.mrf.mxu0 }
  0xfa   :  { %v428_v40 = vmul.f32 %v3556_v13, %v257_v29  ;;  %v1080_v13 = vperm.slane %v3668_v31, 6 }
  0xfb   :  { %1183 = vperm.xlu0 %3318, %v1178_v28   ;;  %v1241_v28 = vperm.slane %v3757_v43, 5 }
  0xfc   :  { %1071 = vperm.xlu2 %3319, %v1066_v45   ;;  %1064 = vperm.xlu1 %3316, %v1059_v27   ;;  %v438_v41 = vpack.c.bf16 %v428_v40, %v427_v36  ;;  %v1129_v45 = vperm.slane %v3693_v59, 5  ;;  %v1122_v27 = vperm.slane %v3693_v59, 4  ;;  %v3778_v36 = vld [vmem:[%s4557_s5 + $0x60] sm:$0xff] }
  0xfd   :  { %v3746_v42 = vpop.permute.xlu0 %854  ;;  %v410_v47 = vpop.permute.xlu2 %409  ;;  %v1276_v34 = vperm.slane %v3778_v36, 2 }
  0xfe   :  { %v431_v56 = vmul.f32 %v410_v47, %v265_v11  ;;  %v3749_v57 = vpop.permute.xlu1 %805  ;;  %542 = vmatmul.bf16.gmra.mxu1 %v438_v41  ;;  %v1101_v11 = vperm.slane %v3693_v59, 1  ;;  %v1262_v41 = vperm.slane %v3778_v36, 0  ;;  %v1150_v47 = vperm.slane %v3728_v22, 0 }
 0x100   :  { %v440_v53 = vpack.c.bf16 %v432_v49, %v431_v56  ;;  %v1143_v49 = vperm.slane %v3693_v59, 7 }
 0x102   :  { %552 = vmatmul.bf16.gmra.mxu3 %v440_v53 }
 0x103   :  { %1204 = vperm.xlu0 %3318, %v1199_v58  }
 0x104   :  { %1092 = vperm.xlu2 %3319, %v1087_v38   ;;  %1085 = vperm.xlu1 %3316, %v1080_v13   ;;  %v1283_v38 = vperm.slane %v3778_v36, 3  ;;  %v1171_v13 = vperm.slane %v3728_v22, 3 }
 0x105   :  { %v3761_v63 = vpop.permute.xlu0 %875 }
 0x106   :  { %v3759_v52 = vpop.permute.xlu1 %819  ;;  %4576 = vst [vmem:[#allocation6_spill] sm:$0xff] %v3761_v63 }
 0x10b   :  { %1225 = vperm.xlu0 %3318, %v1220_v4   ;;  %v1164_v4 = vperm.slane %v3728_v22, 2 }
 0x10c   :  { %1113 = vperm.xlu2 %3319, %v1108_v37   ;;  %1106 = vperm.xlu1 %3316, %v1101_v11  }
 0x10d   :  { %v3766_v31 = vpop.permute.xlu2 %896  ;;  %v3773_v29 = vpop.permute.xlu0 %917 }
 0x10e   :  { %4577 = vst [vmem:[#allocation7_spill] sm:$0xff] %v3766_v31  ;;  %v3768_v12 = vpop.permute.xlu1 %840 }
 0x10f   :  { %4578 = vst [vmem:[#allocation8_spill] sm:$0xff] %v3773_v29 }
 0x113   :  { %1246 = vperm.xlu0 %3318, %v1241_v28   ;;  %v1304_v28 = vperm.slane %v3778_v36, 6 }
 0x114   :  { %1134 = vperm.xlu2 %3319, %v1129_v45   ;;  %1127 = vperm.xlu1 %3316, %v1122_v27   ;;  %v3806_v45 = vld [vmem:[%s4559_s4] ss:$0 sm:$0xff]  ;;  %v1192_v27 = vperm.slane %v3728_v22, 6 }
 0x115   :  { %v3780_v40 = vpop.permute.xlu2 %910  ;;  %v3787_v56 = vpop.permute.xlu0 %952 }
 0x116   :  { %4579 = vst [vmem:[#allocation9_spill] sm:$0xff] %v3780_v40  ;;  %v3782_v33 = vpop.permute.xlu1 %861 }
 0x117   :  { %4580 = vst [vmem:[#allocation10_spill] sm:$0xff] %v3782_v33 }
 0x118   :  { %4581 = vst [vmem:[#allocation11_spill] sm:$0xff] %v3787_v56 }
 0x11b   :  { %1267 = vperm.xlu0 %3318, %v1262_v41   ;;  %v1185_v41 = vperm.slane %v3728_v22, 5 }
 0x11c   :  { %1155 = vperm.xlu2 %3319, %v1150_v47   ;;  %1148 = vperm.xlu1 %3316, %v1143_v49  }
 0x11d   :  { %v3789_v58 = vpop.permute.xlu2 %931  ;;  %v3796_v37 = vpop.permute.xlu0 %973 }
 0x11e   :  { %4582 = vst [vmem:[#allocation12_spill] sm:$0xff] %v3789_v58  ;;  %v3791_v53 = vpop.permute.xlu1 %882 }
 0x11f   :  { %4583 = vst [vmem:[#allocation13_spill] sm:$0xff] %v3791_v53 }
 0x120   :  { %4584 = vst [vmem:[#allocation14_spill] sm:$0xff] %v3796_v37 }
 0x123   :  { %1288 = vperm.xlu0 %3318, %v1283_v38   ;;  %v3814_v38 = vld [vmem:[%s4557_s5 + $0x68] sm:$0xff] }
 0x124   :  { %1176 = vperm.xlu2 %3319, %v1171_v13   ;;  %1169 = vperm.xlu1 %3316, %v1164_v4   ;;  %v1325_v4 = vperm.slane %v3814_v38, 1 }
 0x125   :  { %v3798_v59 = vpop.permute.xlu2 %945 }
 0x126   :  { %4585 = vst [vmem:[#allocation15_spill] sm:$0xff] %v3798_v59  ;;  %v3800_v11 = vpop.permute.xlu1 %889 }
 0x127   :  { %4586 = vst [vmem:[#allocation16_spill] sm:$0xff] %v3800_v11 }
 0x12b   :  { %1309 = vperm.xlu0 %3318, %v1304_v28   ;;  %v518_v47 = vpop.f32.mrf.mxu1  ;;  %v1213_v28 = vperm.slane %v3757_v43, 1 }
 0x12c   :  { %v519_v49 = vadd.f32 %v3806_v45, %v518_v47  ;;  %1197 = vperm.xlu2 %3319, %v1192_v27   ;;  %1190 = vperm.xlu1 %3316, %v1185_v41   ;;  %v1206_v27 = vperm.slane %v3757_v43, 0  ;;  %v3828_v41 = vpop.permute.xlu0 %994 }
 0x12d   :  { %4588 = vst [vmem:[#allocation18_spill] sm:$0xff] %v3828_v41  ;;  %v3830_v56 = vpop.permute.xlu2 %966 }
 0x12e   :  { %v558_v22 = vmax.f32 %v519_v49, 0.0  ;;  %v3822_v13 = vpop.permute.xlu1 %903  ;;  %4589 = vst [vmem:[#allocation19_spill] sm:$0xff] %v3830_v56 }
 0x12f   :  { %4587 = vst [vmem:[#allocation17_spill] sm:$0xff] %v3822_v13 }
 0x130   :  { %v1630_v47 = vrot.slane %v558_v22, 1  ;;  %v1631_v20 = vrot.slane %v558_v22, 2  ;;  %v1632_v0 = vrot.slane %v558_v22, 3  ;;  %v1633_v37 = vrot.slane %v558_v22, 4 }
 0x131   :  { %v1634_v59 = vrot.slane %v558_v22, 5  ;;  %v1635_v49 = vrot.slane %v558_v22, 6  ;;  %v1636_v58 = vrot.slane %v558_v22, 7  ;;  %v1998_v29 = vperm.slane %v558_v22, 0 }
 0x132   :  { %v1999_v40 = vperm.slane %v1630_v47, 0  ;;  %v2000_v13 = vperm.slane %v1631_v20, 0  ;;  %v2001_v31 = vperm.slane %v1632_v0, 0  ;;  %v2002_v11 = vperm.slane %v1633_v37, 0 }
 0x133   :  { %v2003_v53 = vperm.slane %v1634_v59, 0  ;;  %v2004_v63 = vperm.slane %v1635_v49, 0  ;;  %v2005_v14 = vperm.slane %v1636_v58, 0  ;;  %1330 = vperm.xlu0 %3318, %v1325_v4   ;;  %v520_v41 = vpop.f32.mrf.mxu1  ;;  %v2254_v33 = vsel %vm1486_vm6, %v1998_v29, 0.0 }
 0x134   :  { %v3837_v56 = vsel %vm1487_vm3, %v1999_v40, 0.0  ;;  %v3841_v22 = vsel %vm1488_vm0, %v2000_v13, 0.0  ;;  %v2258_v0 = vsel %vm1490_vm1, %v2002_v11, 0.0  ;;  %1218 = vperm.xlu2 %3319, %v1213_v28   ;;  %1211 = vperm.xlu1 %3316, %v1206_v27   ;;  %v3847_v20 = vsel %vm1489_vm4, %v2001_v31, 0.0  ;;  %v3880_v37 = vpop.permute.xlu0 %1015 }
 0x135   :  { %4590 = vst [vmem:[#allocation20_spill] sm:$0xff] %v3837_v56  ;;  %v3851_v2 = vsel %vm1492_vm5, %v2004_v63, 0.0  ;;  %v3855_v46 = vsel %vm1493_vm2, %v2005_v14, 0.0  ;;  %v2383_v24 = vadd.f32 %v3837_v56, %v2254_v33  ;;  %v3860_v32 = vsel %vm1491_vm7, %v2003_v53, 0.0  ;;  %v3882_v28 = vpop.permute.xlu2 %987 }
 0x136   :  { %4591 = vst [vmem:[#allocation21_spill] sm:$0xff] %v3841_v22  ;;  %v2513_v29 = vmax.f32 %v2254_v33, %v2258_v0  ;;  %v521_v40 = vadd.f32 %v3806_v45, %v520_v41  ;;  %v3863_v54 = vpop.permute.xlu1 %924  ;;  %v1346_v63 = vperm.slane %v3814_v38, 4  ;;  %v1227_v31 = vperm.slane %v3757_v43, 3 }
 0x137   :  { %v2384_v1 = vadd.f32 %v2383_v24, %v3841_v22  ;;  %vm1502_vm0 = vcmp.gt.f32.partialorder %v3629_v61, 0.0  ;;  %vm1503_vm1 = vcmp.gt.f32.partialorder %v3697_v3, 0.0  ;;  %vm1505_vm2 = vcmp.gt.f32.partialorder %v3643_v8, 0.0 }
 0x138   :  { %v559_v14 = vmax.f32 %v521_v40, 0.0  ;;  %vm1504_vm3 = vcmp.gt.f32.partialorder %v3681_v50, 0.0  ;;  %vm1506_vm4 = vcmp.gt.f32.partialorder %v3708_v26, 0.0  ;;  %vm1507_vm5 = vcmp.gt.f32.partialorder %v3695_v62, 0.0  ;;  %v3963_v26 = vld [vmem:[%s4557_s5 + $0x78] sm:$0xff] }
 0x139   :  { %v2385_v58 = vadd.f32 %v2384_v1, %v3847_v20  ;;  %vm1508_vm6 = vcmp.gt.f32.partialorder %v3654_v19, 0.0  ;;  %vm1509_vm7 = vcmp.gt.f32.partialorder %v3715_v7, 0.0 }
 0x13a   :  { %v1637_v59 = vrot.slane %v559_v14, 1  ;;  %v1638_v11 = vrot.slane %v559_v14, 2  ;;  %v1639_v13 = vrot.slane %v559_v14, 3  ;;  %v1640_v4 = vrot.slane %v559_v14, 4 }
 0x13b   :  { %v2386_v27 = vadd.f32 %v2385_v58, %v2258_v0  ;;  %v1641_v41 = vrot.slane %v559_v14, 5  ;;  %v1642_v47 = vrot.slane %v559_v14, 6  ;;  %1351 = vperm.xlu0 %3318, %v1346_v63   ;;  %v2006_v49 = vperm.slane %v559_v14, 0  ;;  %v523_v58 = vpop.f32.mrf.mxu1 }
 0x13c   :  { %v2007_v24 = vperm.slane %v1637_v59, 0  ;;  %v2008_v40 = vperm.slane %v1638_v11, 0  ;;  %v2009_v1 = vperm.slane %v1639_v13, 0  ;;  %1239 = vperm.xlu2 %3319, %v1234_v39   ;;  %1232 = vperm.xlu1 %3316, %v1227_v31   ;;  %v1643_v33 = vrot.slane %v559_v14, 7 }
 0x13d   :  { %v2387_v53 = vadd.f32 %v2386_v27, %v3860_v32  ;;  %v2010_v10 = vperm.slane %v1640_v4, 0  ;;  %v2011_v56 = vperm.slane %v1641_v41, 0  ;;  %v2262_v22 = vsel %vm1494_vm12, %v2006_v49, 0.0 }
 0x13e   :  { %v2263_v0 = vsel %vm1495_vm10, %v2007_v24, 0.0  ;;  %v2264_v63 = vsel %vm1496_vm8, %v2008_v40, 0.0  ;;  %v3893_v59 = vpop.permute.xlu1 %938  ;;  %v1367_v31 = vperm.slane %v3814_v38, 7  ;;  %v1255_v14 = vperm.slane %v3757_v43, 7  ;;  %v3912_v40 = vpop.permute.xlu0 %1036 }
 0x13f   :  { %v2388_v39 = vadd.f32 %v2387_v53, %v3851_v2  ;;  %v2520_v35 = vmax.f32 %v2264_v63, %v2263_v0  ;;  %v2012_v11 = vperm.slane %v1642_v47, 0  ;;  %v2265_v13 = vsel %vm1497_vm13, %v2009_v1, 0.0  ;;  %v3914_v1 = vpop.permute.xlu2 %1008 }
 0x140   :  { %v3898_v25 = vmax.f32 %v2513_v29, %v2262_v22  ;;  %v3904_v27 = vsel %vm1498_vm11, %v2010_v10, 0.0  ;;  %v524_v53 = vadd.f32 %v3806_v45, %v523_v58  ;;  %v2013_v41 = vperm.slane %v1643_v33, 0 }
 0x141   :  { %v2389_v4 = vadd.f32 %v2388_v39, %v3855_v46  ;;  %v2524_v44 = vmax.f32 %v2520_v35, %v2265_v13  ;;  %v2267_v49 = vsel %vm1499_vm9, %v2011_v56, 0.0  ;;  %v2268_v43 = vsel %vm1500_vm14, %v2012_v11, 0.0 }
 0x142   :  { %v3910_v24 = vmax.f32 %v524_v53, 0.0  ;;  %v2269_v10 = vsel %vm1501_vm15, %v2013_v41, 0.0  ;;  %vm1510_vm8 = vcmp.gt.f32.partialorder %v3706_v21, 0.0  ;;  %vm1511_vm9 = vcmp.gt.f32.partialorder %v3663_v18, 0.0 }
 0x143   :  { %v2528_v47 = vmax.f32 %v2524_v44, %v2267_v49  ;;  %v2390_v29 = vadd.f32 %v2389_v4, %v2262_v22  ;;  %1372 = vperm.xlu0 %3318, %v1367_v31   ;;  %v525_v44 = vpop.f32.mrf.mxu1  ;;  %vm1512_vm10 = vcmp.gt.f32.partialorder %v3679_v48, 0.0  ;;  %vm1513_vm11 = vcmp.gt.f32.partialorder %v3739_v17, 0.0 }
 0x144   :  { %1260 = vperm.xlu2 %3319, %v1255_v14   ;;  %1253 = vperm.xlu1 %3316, %v1248_v9   ;;  %v1644_v22 = vrot.slane %v3910_v24, 1  ;;  %v1645_v33 = vrot.slane %v3910_v24, 2  ;;  %v2014_v31 = vperm.slane %v3910_v24, 0  ;;  %v1388_v14 = vperm.slane %v3919_v23, 2 }
 0x145   :  { %v2532_v55 = vmax.f32 %v2528_v47, %v2268_v43  ;;  %v2391_v56 = vadd.f32 %v2390_v29, %v2263_v0  ;;  %v1646_v11 = vrot.slane %v3910_v24, 3  ;;  %v1269_v0 = vperm.slane %v3778_v36, 1 }
 0x146   :  { %v3926_v58 = vpop.permute.xlu1 %959  ;;  %v2015_v9 = vperm.slane %v1644_v22, 0  ;;  %v1647_v53 = vrot.slane %v3910_v24, 4  ;;  %v2016_v41 = vperm.slane %v1645_v33, 0  ;;  %v2270_v47 = vsel %vm1502_vm0, %v2014_v31, 0.0 }
 0x147   :  { %v2536_v39 = vmax.f32 %v2532_v55, %v2269_v10  ;;  %v2392_v35 = vadd.f32 %v2391_v56, %v2264_v63  ;;  %v1648_v55 = vrot.slane %v3910_v24, 5  ;;  %v2017_v56 = vperm.slane %v1646_v11, 0  ;;  %v3944_v31 = vpop.permute.xlu2 %1029 }
 0x148   :  { %v2271_v22 = vsel %vm1503_vm1, %v2015_v9, 0.0  ;;  %v526_v51 = vadd.f32 %v3806_v45, %v525_v44  ;;  %v1649_v3 = vrot.slane %v3910_v24, 6  ;;  %v2018_v33 = vperm.slane %v1647_v53, 0 }
 0x149   :  { %v2393_v4 = vadd.f32 %v2392_v35, %v2265_v13  ;;  %v2540_v29 = vmax.f32 %v2536_v39, %v2270_v47  ;;  %v2272_v35 = vsel %vm1504_vm3, %v2016_v41, 0.0  ;;  %v3942_v39 = vpop.permute.xlu0 %1057  ;;  %v1650_v50 = vrot.slane %v3910_v24, 7 }
 0x14a   :  { %v3952_v44 = vmax.f32 %v526_v51, 0.0  ;;  %vm1514_vm12 = vcmp.gt.f32.partialorder %v3688_v60, 0.0  ;;  %vm1515_vm13 = vcmp.gt.f32.partialorder %v3730_v6, 0.0  ;;  %vm1516_vm14 = vcmp.gt.f32.partialorder %v3749_v57, 0.0 }
 0x14b   :  { %v2394_v63 = vadd.f32 %v2393_v4, %v3904_v27  ;;  %1393 = vperm.xlu0 %3318, %v1388_v14   ;;  %v2544_v13 = vmax.f32 %v2540_v29, %v2271_v22  ;;  %v1409_v14 = vperm.slane %v3919_v23, 5  ;;  %v2273_v4 = vsel %vm1505_vm2, %v2017_v56, 0.0 }
 0x14c   :  { %1281 = vperm.xlu2 %3319, %v1276_v34   ;;  %1274 = vperm.xlu1 %3316, %v1269_v0   ;;  %v1297_v34 = vperm.slane %v3778_v36, 5  ;;  %v1290_v0 = vperm.slane %v3778_v36, 4  ;;  %v2274_v29 = vsel %vm1506_vm4, %v2018_v33, 0.0  ;;  %v2021_v24 = vperm.slane %v1650_v50, 0 }
 0x14d   :  { %v2395_v61 = vadd.f32 %v2394_v63, %v2267_v49  ;;  %v2548_v9 = vmax.f32 %v2544_v13, %v2272_v35  ;;  %v2019_v49 = vperm.slane %v1648_v55, 0  ;;  %v1651_v8 = vrot.slane %v3952_v44, 1 }
 0x14e   :  { %v3954_v53 = vpop.permute.xlu1 %980  ;;  %v1652_v62 = vrot.slane %v3952_v44, 2  ;;  %vm1517_vm15 = vcmp.gt.f32.partialorder %v3704_v16, 0.0  ;;  %vm1518_vm0 = vcmp.gt.f32.partialorder %v3759_v52, 0.0  ;;  %v1451_v16 = vperm.slane %v3963_v26, 3 }
 0x14f   :  { %v2396_v11 = vadd.f32 %v2395_v61, %v2268_v43  ;;  %v2552_v63 = vmax.f32 %v2548_v9, %v2273_v4  ;;  %v2020_v43 = vperm.slane %v1649_v3, 0  ;;  %v2275_v55 = vsel %vm1507_vm5, %v2019_v49, 0.0  ;;  %v528_v49 = vpop.f32.mrf.mxu1 }
 0x150   :  { %v2023_v19 = vperm.slane %v1651_v8, 0  ;;  %v2024_v7 = vperm.slane %v1652_v62, 0  ;;  %v529_v21 = vadd.f32 %v3806_v45, %v528_v49  ;;  %vm1519_vm1 = vcmp.gt.f32.partialorder %v3713_v30, 0.0 }
 0x151   :  { %v2397_v41 = vadd.f32 %v2396_v11, %v2269_v10  ;;  %v2556_v61 = vmax.f32 %v2552_v63, %v2274_v29  ;;  %v2276_v10 = vsel %vm1508_vm6, %v2020_v43, 0.0  ;;  %v1653_v11 = vrot.slane %v3952_v44, 3  ;;  %v3969_v9 = vpop.permute.xlu0 %1078 }
 0x152   :  { %v2279_v8 = vsel %vm1511_vm9, %v2023_v19, 0.0  ;;  %vm1520_vm2 = vcmp.gt.f32.partialorder %v3737_v15, 0.0  ;;  %vm1521_vm3 = vcmp.gt.f32.partialorder %v3768_v12, 0.0  ;;  %vm1522_vm4 = vcmp.gt.f32.partialorder %v3723_v5, 0.0 }
 0x153   :  { %v2398_v13 = vadd.f32 %v2397_v41, %v2270_v47  ;;  %1414 = vperm.xlu0 %3318, %v1409_v14   ;;  %v2560_v51 = vmax.f32 %v2556_v61, %v2275_v55  ;;  %v2022_v47 = vperm.slane %v3952_v44, 0  ;;  %v2277_v14 = vsel %vm1509_vm7, %v2021_v24, 0.0 }
 0x154   :  { %1302 = vperm.xlu2 %3319, %v1297_v34   ;;  %1295 = vperm.xlu1 %3316, %v1290_v0   ;;  %v1430_v34 = vperm.slane %v3963_v26, 0  ;;  %v1654_v41 = vrot.slane %v3952_v44, 4  ;;  %v2025_v24 = vperm.slane %v1653_v11, 0  ;;  %v3985_v11 = vmax.f32 %v529_v21, 0.0 }
 0x155   :  { %v2399_v56 = vadd.f32 %v2398_v13, %v2271_v22  ;;  %v2564_v3 = vmax.f32 %v2560_v51, %v2276_v10  ;;  %v3971_v22 = vpop.permute.xlu2 %1050  ;;  %v2278_v63 = vsel %vm1510_vm8, %v2022_v47, 0.0  ;;  %v1655_v13 = vrot.slane %v3952_v44, 5 }
 0x156   :  { %v2026_v62 = vperm.slane %v1654_v41, 0  ;;  %v2280_v47 = vsel %vm1512_vm10, %v2024_v7, 0.0  ;;  %v1658_v7 = vrot.slane %v3985_v11, 1  ;;  %v1663_v30 = vrot.slane %v3985_v11, 6 }
 0x157   :  { %v2400_v33 = vadd.f32 %v2399_v56, %v2272_v35  ;;  %v2568_v0 = vmax.f32 %v2564_v3, %v2277_v14  ;;  %v3976_v35 = vpop.permute.xlu1 %1001  ;;  %v1656_v56 = vrot.slane %v3952_v44, 6  ;;  %v1657_v3 = vrot.slane %v3952_v44, 7 }
 0x158   :  { %vm1523_vm5 = vcmp.gt.f32.partialorder %v3746_v42, 0.0 }
 0x159   :  { %v2401_v50 = vadd.f32 %v2400_v33, %v2273_v4  ;;  %v2572_v61 = vmax.f32 %v2568_v0, %v2278_v63  ;;  %v2027_v33 = vperm.slane %v1655_v13, 0  ;;  %v2282_v0 = vsel %vm1514_vm12, %v2026_v62, 0.0 }
 0x15a   :  { %v2029_v41 = vperm.slane %v1657_v3, 0  ;;  %v1659_v13 = vrot.slane %v3985_v11, 2 }
 0x15b   :  { %v2402_v43 = vadd.f32 %v2401_v50, %v2274_v29  ;;  %1435 = vperm.xlu0 %3318, %v1430_v34   ;;  %v2576_v51 = vmax.f32 %v2572_v61, %v2279_v8  ;;  %v2281_v34 = vsel %vm1513_vm11, %v2025_v24, 0.0  ;;  %v3988_v50 = vpop.permute.xlu0 %1099  ;;  %v2283_v44 = vsel %vm1515_vm13, %v2027_v33, 0.0 }
 0x15c   :  { %v2030_v24 = vperm.slane %v3985_v11, 0  ;;  %v2032_v3 = vperm.slane %v1659_v13, 0 }
 0x15d   :  { %v2403_v4 = vadd.f32 %v2402_v43, %v2275_v55  ;;  %v2580_v29 = vmax.f32 %v2576_v51, %v2280_v47  ;;  %v2028_v55 = vperm.slane %v1656_v56, 0  ;;  %v3990_v49 = vpop.permute.xlu2 %1071  ;;  %v2031_v51 = vperm.slane %v1658_v7, 0 }
 0x15e   :  { %v1318_v56 = vperm.slane %v3814_v38, 0  ;;  %v2286_v33 = vsel %vm1518_vm0, %v2030_v24, 0.0  ;;  %v2288_v7 = vsel %vm1520_vm2, %v2032_v3, 0.0  ;;  %v4592_v3 = vld [vmem:[#allocation10_spill] sm:$0xff] }
 0x15f   :  { %v2404_v18 = vadd.f32 %v2403_v4, %v2276_v10  ;;  %v2519_v48 = vmax.f32 %v2281_v34, %v2580_v29  ;;  %v3994_v43 = vpop.permute.xlu1 %1022  ;;  %v2284_v61 = vsel %vm1516_vm14, %v2028_v55, 0.0  ;;  %v1660_v4 = vrot.slane %v3985_v11, 3 }
 0x160   :  { %v1661_v29 = vrot.slane %v3985_v11, 4  ;;  %1323 = vperm.xlu2 %3319, %v1318_v56   ;;  %v2287_v55 = vsel %vm1519_vm1, %v2031_v51, 0.0  ;;  %vm1524_vm6 = vcmp.gt.f32.partialorder %v4592_v3, 0.0  ;;  %vm1535_vm1 = vcmp.gt.f32.partialorder %v3893_v59, 0.0 }
 0x161   :  { %v2405_v19 = vadd.f32 %v2404_v18, %v2277_v14  ;;  %v2523_v17 = vmax.f32 %v2519_v48, %v2282_v0  ;;  %v1311_v18 = vperm.slane %v3778_v36, 7  ;;  %v1662_v48 = vrot.slane %v3985_v11, 5 }
 0x162   :  { %v2033_v52 = vperm.slane %v1660_v4, 0  ;;  %v1395_v59 = vperm.slane %v3919_v23, 3 }
 0x163   :  { %v2406_v10 = vadd.f32 %v2405_v19, %v2278_v63  ;;  %v2527_v60 = vmax.f32 %v2523_v17, %v2283_v44  ;;  %v2285_v63 = vsel %vm1517_vm15, %v2029_v41, 0.0  ;;  %1316 = vperm.xlu1 %3316, %v1311_v18   ;;  %v4009_v17 = vpop.permute.xlu0 %1120  ;;  %1456 = vperm.xlu0 %3318, %v1451_v16   ;;  %v2035_v4 = vperm.slane %v1662_v48, 0 }
 0x164   :  { %v2289_v15 = vsel %vm1521_vm3, %v2033_v52, 0.0  ;;  %v4593_v52 = vld [vmem:[#allocation5_spill] sm:$0xff]  ;;  %vm1533_vm15 = vcmp.gt.f32.partialorder %v3863_v54, 0.0 }
 0x165   :  { %v2407_v14 = vadd.f32 %v2406_v10, %v2279_v8  ;;  %v2531_v6 = vmax.f32 %v2527_v60, %v2284_v61  ;;  %v530_v8 = vpop.f32.mrf.mxu1  ;;  %v4011_v36 = vpop.permute.xlu2 %1092  ;;  %v1339_v60 = vperm.slane %v3814_v38, 3  ;;  %vm1525_vm7 = vcmp.gt.f32.partialorder %v4593_v52, 0.0 }
 0x167   :  { %v2408_v21 = vadd.f32 %v2407_v14, %v2280_v47  ;;  %v2535_v57 = vmax.f32 %v2531_v6, %v2285_v63  ;;  %v4016_v14 = vpop.permute.xlu1 %1043  ;;  %v1332_v6 = vperm.slane %v3814_v38, 2 }
 0x168   :  { %1344 = vperm.xlu2 %3319, %v1339_v60  }
 0x169   :  { %v2409_v62 = vadd.f32 %v2408_v21, %v2281_v34  ;;  %v2539_v19 = vmax.f32 %v2535_v57, %v2286_v33  ;;  %v531_v34 = vadd.f32 %v3806_v45, %v530_v8  ;;  %v1664_v21 = vrot.slane %v3985_v11, 7 }
 0x16a   :  { %v1472_v57 = vperm.slane %v3963_v26, 6  ;;  %v2291_v11 = vsel %vm1523_vm5, %v2035_v4, 0.0 }
 0x16b   :  { %v2410_v47 = vadd.f32 %v2409_v62, %v2282_v0  ;;  %v2543_v41 = vmax.f32 %v2539_v19, %v2287_v55  ;;  %v2034_v0 = vperm.slane %v1661_v29, 0  ;;  %v2036_v62 = vperm.slane %v1663_v30, 0  ;;  %1337 = vperm.xlu1 %3316, %v1332_v6   ;;  %v4030_v48 = vpop.permute.xlu0 %1141 }
 0x16c   :  { %v2037_v18 = vperm.slane %v1664_v21, 0  ;;  %1477 = vperm.xlu0 %3318, %v1472_v57   ;;  %v4595_v57 = vld [vmem:[#allocation13_spill] sm:$0xff] }
 0x16d   :  { %v2411_v10 = vadd.f32 %v2410_v47, %v2283_v44  ;;  %v2547_v24 = vmax.f32 %v2543_v41, %v2288_v7  ;;  %v4021_v44 = vmax.f32 %v531_v34, 0.0  ;;  %v2290_v8 = vsel %vm1522_vm4, %v2034_v0, 0.0  ;;  %v4032_v42 = vpop.permute.xlu2 %1113  ;;  %v533_v21 = vpop.f32.mrf.mxu1 }
 0x16e   :  { %v2292_v16 = vsel %vm1524_vm6, %v2036_v62, 0.0  ;;  %v1353_v41 = vperm.slane %v3814_v38, 5  ;;  %v2293_v30 = vsel %vm1525_vm7, %v2037_v18, 0.0  ;;  %vm1527_vm9 = vcmp.gt.f32.partialorder %v4595_v57, 0.0 }
 0x16f   :  { %v2412_v13 = vadd.f32 %v2411_v10, %v2284_v61  ;;  %v2551_v56 = vmax.f32 %v2547_v24, %v2289_v15  ;;  %v1665_v29 = vrot.slane %v4021_v44, 1  ;;  %v1666_v47 = vrot.slane %v4021_v44, 2  ;;  %v4038_v60 = vpop.permute.xlu1 %1064 }
 0x170   :  { %v2038_v19 = vperm.slane %v4021_v44, 0  ;;  %v1668_v4 = vrot.slane %v4021_v44, 4  ;;  %v1669_v62 = vrot.slane %v4021_v44, 5  ;;  %v534_v18 = vadd.f32 %v3806_v45, %v533_v21 }
 0x171   :  { %v2413_v51 = vadd.f32 %v2412_v13, %v2285_v63  ;;  %v2555_v12 = vmax.f32 %v2551_v56, %v2290_v8  ;;  %v2039_v0 = vperm.slane %v1665_v29, 0  ;;  %v4594_v13 = vld [vmem:[#allocation6_spill] sm:$0xff]  ;;  %v4596_v29 = vmov 0  }
 0x172   :  { %vm1526_vm8 = vcmp.gt.f32.partialorder %v4594_v13, 0.0  ;;  %vm1538_vm4 = vcmp.gt.f32.partialorder %v3926_v58, 0.0  ;;  %v1416_v58 = vperm.slane %v3919_v23, 6  ;;  %vm1541_vm7 = vcmp.gt.f32.partialorder %v3954_v53, 0.0 }
 0x173   :  { %v2414_v61 = vadd.f32 %v2413_v51, %v2286_v33  ;;  %v2559_v5 = vmax.f32 %v2555_v12, %v2291_v11  ;;  %v1360_v33 = vperm.slane %v3814_v38, 6  ;;  %v2040_v51 = vperm.slane %v1666_v47, 0  ;;  %1358 = vperm.xlu1 %3316, %v1353_v41  }
 0x174   :  { %v2294_v56 = vsel %vm1526_vm8, %v2038_v19, 0.0  ;;  %3321 = vset.pattern.permute.xlu0 %v4596_v29  ;;  %v2042_v47 = vperm.slane %v1668_v4, 0  ;;  %vm1542_vm8 = vcmp.gt.f32.partialorder %v3882_v28, 0.0  ;;  %v1437_v28 = vperm.slane %v3963_v26, 1 }
 0x175   :  { %v2415_v63 = vadd.f32 %v2414_v61, %v2287_v55  ;;  %v2563_v34 = vmax.f32 %v2559_v5, %v2292_v16  ;;  %v1667_v55 = vrot.slane %v4021_v44, 3  ;;  %1365 = vperm.xlu2 %3319, %v1360_v33   ;;  %v2295_v61 = vsel %vm1527_vm9, %v2039_v0, 0.0  ;;  %v4598_v33 = vld [vmem:[#allocation7_spill] sm:$0xff]  ;;  %v4052_v0 = vpop.permute.xlu0 %1162  ;;  %v4054_v13 = vpop.permute.xlu2 %1134 }
 0x176   :  { %v1670_v5 = vrot.slane %v4021_v44, 6  ;;  %vm1529_vm11 = vcmp.gt.f32.partialorder %v4598_v33, 0.0 }
 0x177   :  { %v2416_v10 = vadd.f32 %v2415_v63, %v2288_v7  ;;  %v2567_v24 = vmax.f32 %v2563_v34, %v2293_v30  ;;  %v2041_v12 = vperm.slane %v1667_v55, 0  ;;  %v1671_v34 = vrot.slane %v4021_v44, 7 }
 0x178   :  { %v4050_v55 = vmax.f32 %v534_v18, 0.0 }
 0x179   :  { %v2417_v6 = vadd.f32 %v2416_v10, %v2289_v15  ;;  %v2571_v38 = vmax.f32 %v2567_v24, %v2294_v56  ;;  %v4597_v15 = vld [vmem:[#allocation16_spill] sm:$0xff]  ;;  %v2043_v10 = vperm.slane %v1669_v62, 0  ;;  %v2297_v41 = vsel %vm1529_vm11, %v2041_v12, 0.0 }
 0x17a   :  { %vm1528_vm10 = vcmp.gt.f32.partialorder %v4597_v15, 0.0  ;;  %v1672_v12 = vrot.slane %v4050_v55, 1  ;;  %vm1545_vm11 = vcmp.gt.f32.partialorder %v3914_v1, 0.0 }
 0x17b   :  { %v2418_v7 = vadd.f32 %v2417_v6, %v2290_v8  ;;  %v2575_v63 = vmax.f32 %v2571_v38, %v2295_v61  ;;  %v2296_v19 = vsel %vm1528_vm10, %v2040_v51, 0.0  ;;  %v2044_v6 = vperm.slane %v1670_v5, 0  ;;  %v4057_v51 = vpop.permute.xlu1 %1085 }
 0x17c   :  { %v2045_v38 = vperm.slane %v1671_v34, 0  ;;  %v2046_v5 = vperm.slane %v4050_v55, 0  ;;  %v535_v34 = vpop.f32.mrf.mxu1  ;;  %vm1544_vm10 = vcmp.gt.f32.partialorder %v3976_v35, 0.0 }
 0x17d   :  { %v2419_v3 = vadd.f32 %v2418_v7, %v2291_v11  ;;  %v2579_v52 = vmax.f32 %v2575_v63, %v2296_v19  ;;  %v4599_v11 = vld [vmem:[#allocation17_spill] sm:$0xff]  ;;  %v4601_v7 = vld [vmem:[#allocation8_spill] sm:$0xff]  ;;  %v1381_v63 = vperm.slane %v3919_v23, 1  ;;  %v4071_v54 = vpop.permute.xlu0 %1183 }
 0x17e   :  { %vm1530_vm12 = vcmp.gt.f32.partialorder %v4599_v11, 0.0  ;;  %vm1532_vm14 = vcmp.gt.f32.partialorder %v4601_v7, 0.0 }
 0x17f   :  { %v2420_v8 = vadd.f32 %v2419_v3, %v2292_v16  ;;  %v2583_v21 = vmax.f32 %v2579_v52, %v2297_v41  ;;  %v2298_v4 = vsel %vm1530_vm12, %v2042_v47, 0.0  ;;  %v4600_v16 = vld [vmem:[#allocation9_spill] sm:$0xff]  ;;  %v2300_v15 = vsel %vm1532_vm14, %v2044_v6, 0.0  ;;  %1386 = vperm.xlu2 %3319, %v1381_v63  }
 0x180   :  { %vm1531_vm13 = vcmp.gt.f32.partialorder %v4600_v16, 0.0  ;;  %v1374_v47 = vperm.slane %v3919_v23, 0  ;;  %v2047_v52 = vperm.slane %v1672_v12, 0  ;;  %v1675_v6 = vrot.slane %v4050_v55, 4 }
 0x181   :  { %v2421_v24 = vadd.f32 %v2420_v8, %v2293_v30  ;;  %v2518_v57 = vmax.f32 %v2298_v4, %v2583_v21  ;;  %v2299_v62 = vsel %vm1531_vm13, %v2043_v10, 0.0  ;;  %v1673_v30 = vrot.slane %v4050_v55, 2 }
 0x182   :  { %v2301_v8 = vsel %vm1533_vm15, %v2045_v38, 0.0  ;;  %v1674_v10 = vrot.slane %v4050_v55, 3  ;;  %1379 = vperm.xlu1 %3316, %v1374_v47   ;;  %v536_v38 = vadd.f32 %v3806_v45, %v535_v34  ;;  %v2303_v12 = vsel %vm1535_vm1, %v2047_v52, 0.0 }
 0x183   :  { %v2422_v44 = vadd.f32 %v2421_v24, %v2294_v56  ;;  %v2522_v18 = vmax.f32 %v2518_v57, %v2299_v62  ;;  %v2048_v21 = vperm.slane %v1673_v30, 0  ;;  %v4603_v30 = vld [vmem:[#allocation15_spill] sm:$0xff]  ;;  %v2050_v47 = vperm.slane %v1675_v6, 0 }
 0x184   :  { %vm1536_vm2 = vcmp.gt.f32.partialorder %v4603_v30, 0.0  ;;  %v4084_v52 = vmax.f32 %v536_v38, 0.0  ;;  %vm1546_vm12 = vcmp.gt.f32.partialorder %v3880_v37, 0.0  ;;  %vm1547_vm13 = vcmp.gt.f32.partialorder %v3994_v43, 0.0 }
 0x185   :  { %v2423_v3 = vadd.f32 %v2422_v44, %v2295_v61  ;;  %v2526_v56 = vmax.f32 %v2522_v18, %v2300_v15  ;;  %v4602_v61 = vld [vmem:[#allocation12_spill] sm:$0xff]  ;;  %v1676_v44 = vrot.slane %v4050_v55, 5  ;;  %v2049_v18 = vperm.slane %v1674_v10, 0 }
 0x186   :  { %vm1534_vm0 = vcmp.gt.f32.partialorder %v4602_v61, 0.0  ;;  %v1678_v10 = vrot.slane %v4050_v55, 7  ;;  %vm1548_vm14 = vcmp.gt.f32.partialorder %v3944_v31, 0.0  ;;  %vm1549_vm15 = vcmp.gt.f32.partialorder %v3912_v40, 0.0 }
 0x187   :  { %v2424_v33 = vadd.f32 %v2423_v3, %v2296_v19  ;;  %v2530_v11 = vmax.f32 %v2526_v56, %v2301_v8  ;;  %v2302_v16 = vsel %vm1534_vm0, %v2046_v5, 0.0  ;;  %v4073_v19 = vpop.permute.xlu2 %1155  ;;  %v4079_v3 = vpop.permute.xlu1 %1106  ;;  %v2304_v56 = vsel %vm1536_vm2, %v2048_v21, 0.0 }
 0x188   :  { %v2306_v21 = vsel %vm1538_vm4, %v2050_v47, 0.0  ;;  %v2053_v38 = vperm.slane %v1678_v10, 0  ;;  %v538_v10 = vpop.f32.mrf.mxu1  ;;  %vm1550_vm0 = vcmp.gt.f32.partialorder %v4016_v14, 0.0  ;;  %vm1551_vm1 = vcmp.gt.f32.partialorder %v3971_v22, 0.0  ;;  %v4145_v14 = vld [vmem:[%s4559_s4] ss:$0 sm:$0xff] }
 0x189   :  { %v2425_v24 = vadd.f32 %v2424_v33, %v2297_v41  ;;  %v2534_v7 = vmax.f32 %v2530_v11, %v2302_v16  ;;  %v1402_v41 = vperm.slane %v3919_v23, 4  ;;  %v4604_v33 = vld [vmem:[#allocation11_spill] sm:$0xff]  ;;  %v2051_v11 = vperm.slane %v1676_v44, 0 }
 0x18a   :  { %vm1537_vm3 = vcmp.gt.f32.partialorder %v4604_v33, 0.0  ;;  %1400 = vperm.xlu1 %3316, %v1395_v59   ;;  %v4090_v33 = vpop.permute.xlu0 %1204  ;;  %v1423_v44 = vperm.slane %v3919_v23, 7  ;;  %v1680_v59 = vrot.slane %v4084_v52, 2  ;;  %v2309_v23 = vsel %vm1541_vm7, %v2053_v38, 0.0 }
 0x18b   :  { %v2426_v57 = vadd.f32 %v2425_v24, %v2298_v4  ;;  %v2538_v63 = vmax.f32 %v2534_v7, %v2303_v12  ;;  %v1677_v4 = vrot.slane %v4050_v55, 6  ;;  %v2305_v24 = vsel %vm1537_vm3, %v2049_v18, 0.0  ;;  %1407 = vperm.xlu2 %3319, %v1402_v41   ;;  %v4605_v7 = vld [vmem:[#allocation19_spill] sm:$0xff] }
 0x18c   :  { %vm1539_vm5 = vcmp.gt.f32.partialorder %v4605_v7, 0.0  ;;  %v4607_v7 = vld [vmem:[#allocation18_spill] sm:$0xff]  ;;  %v539_v53 = vadd.f32 %v3806_v45, %v538_v10  ;;  %vm1552_vm2 = vcmp.gt.f32.partialorder %v3942_v39, 0.0  ;;  %vm1553_vm3 = vcmp.gt.f32.partialorder %v4038_v60, 0.0 }
 0x18d   :  { %v2427_v5 = vadd.f32 %v2426_v57, %v2299_v62  ;;  %v2542_v34 = vmax.f32 %v2538_v63, %v2304_v56  ;;  %v2052_v6 = vperm.slane %v1677_v4, 0  ;;  %v2307_v63 = vsel %vm1539_vm5, %v2051_v11, 0.0 }
 0x18e   :  { %v1681_v11 = vrot.slane %v4084_v52, 3  ;;  %vm1543_vm9 = vcmp.gt.f32.partialorder %v4607_v7, 0.0  ;;  %vm1554_vm4 = vcmp.gt.f32.partialorder %v3990_v49, 0.0  ;;  %vm1557_vm5 = vcmp.gt.f32.partialorder %v4011_v36, 0.0 }
 0x18f   :  { %v2428_v61 = vadd.f32 %v2427_v5, %v2300_v15  ;;  %v2546_v57 = vmax.f32 %v2542_v34, %v2305_v24  ;;  %v1679_v15 = vrot.slane %v4084_v52, 1  ;;  %v4092_v55 = vpop.permute.xlu2 %1176  ;;  %v4099_v4 = vpop.permute.xlu1 %1127  ;;  %vm1556_vm7 = vcmp.gt.f32.partialorder %v4057_v51, 0.0 }
 0x191   :  { %v2429_v62 = vadd.f32 %v2428_v61, %v2301_v8  ;;  %v2550_v5 = vmax.f32 %v2546_v57, %v2306_v21  ;;  %v4606_v8 = vld [vmem:[#allocation14_spill] sm:$0xff] }
 0x192   :  { %vm1540_vm6 = vcmp.gt.f32.partialorder %v4606_v8, 0.0  ;;  %1421 = vperm.xlu1 %3316, %v1416_v58  }
 0x193   :  { %v2430_v30 = vadd.f32 %v2429_v62, %v2302_v16  ;;  %v2554_v41 = vmax.f32 %v2550_v5, %v2307_v63  ;;  %v2054_v16 = vperm.slane %v4084_v52, 0  ;;  %v2308_v47 = vsel %vm1540_vm6, %v2052_v6, 0.0  ;;  %1428 = vperm.xlu2 %3319, %v1423_v44  }
 0x194   :  { %v2055_v62 = vperm.slane %v1679_v15, 0  ;;  %v1682_v6 = vrot.slane %v4084_v52, 4  ;;  %v2057_v15 = vperm.slane %v1681_v11, 0  ;;  %v1444_v44 = vperm.slane %v3963_v26, 2 }
 0x195   :  { %v2431_v18 = vadd.f32 %v2430_v30, %v2303_v12  ;;  %v2558_v61 = vmax.f32 %v2554_v41, %v2308_v47  ;;  %v2056_v30 = vperm.slane %v1680_v59, 0  ;;  %v2310_v5 = vsel %vm1542_vm8, %v2054_v16, 0.0 }
 0x196   :  { %v2311_v38 = vsel %vm1543_vm9, %v2055_v62, 0.0  ;;  %v1684_v41 = vrot.slane %v4084_v52, 6  ;;  %v2058_v59 = vperm.slane %v1682_v6, 0  ;;  %v1685_v11 = vrot.slane %v4084_v52, 7 }
 0x197   :  { %v2432_v34 = vadd.f32 %v2431_v18, %v2304_v56  ;;  %v2562_v12 = vmax.f32 %v2558_v61, %v2309_v23  ;;  %v1683_v56 = vrot.slane %v4084_v52, 5  ;;  %v2312_v16 = vsel %vm1544_vm10, %v2056_v30, 0.0  ;;  %v4112_v61 = vpop.permute.xlu0 %1225  ;;  %v4114_v45 = vpop.permute.xlu2 %1197 }
 0x198   :  { %v2313_v35 = vsel %vm1545_vm11, %v2057_v15, 0.0  ;;  %v2060_v7 = vperm.slane %v1684_v41, 0  ;;  %v2314_v6 = vsel %vm1546_vm12, %v2058_v59, 0.0  ;;  %v2061_v52 = vperm.slane %v1685_v11, 0 }
 0x199   :  { %v2433_v57 = vadd.f32 %v2432_v34, %v2305_v24  ;;  %v2566_v8 = vmax.f32 %v2562_v12, %v2310_v5  ;;  %v2059_v62 = vperm.slane %v1683_v56, 0  ;;  %vm1555_vm6 = vcmp.gt.f32.partialorder %v3969_v9, 0.0 }
 0x19a   :  { %1442 = vperm.xlu1 %3316, %v1437_v28   ;;  %v2316_v43 = vsel %vm1548_vm14, %v2060_v7, 0.0  ;;  %v2317_v41 = vsel %vm1549_vm15, %v2061_v52, 0.0  ;;  %vm1560_vm8 = vcmp.gt.f32.partialorder %v4032_v42, 0.0  ;;  %vm1569_vm9 = vcmp.gt.f32.partialorder %v4092_v55, 0.0 }
 0x19b   :  { %v2434_v18 = vadd.f32 %v2433_v57, %v2306_v21  ;;  %v2570_v24 = vmax.f32 %v2566_v8, %v2311_v38  ;;  %v4117_v21 = vmax.f32 %v539_v53, 0.0  ;;  %1449 = vperm.xlu2 %3319, %v1444_v44   ;;  %v540_v53 = vpop.f32.mrf.mxu1  ;;  %v2315_v56 = vsel %vm1547_vm13, %v2059_v62, 0.0 }
 0x19c   :  { %v1465_v8 = vperm.slane %v3963_v26, 5  ;;  %vm1558_vm10 = vcmp.gt.f32.partialorder %v3988_v50, 0.0  ;;  %vm1559_vm11 = vcmp.gt.f32.partialorder %v4079_v3, 0.0  ;;  %vm1563_vm12 = vcmp.gt.f32.partialorder %v4054_v13, 0.0 }
 0x19d   :  { %v2435_v58 = vadd.f32 %v2434_v18, %v2307_v63  ;;  %v2574_v34 = vmax.f32 %v2570_v24, %v2312_v16  ;;  %v4120_v63 = vpop.permute.xlu1 %1148  ;;  %v1686_v1 = vrot.slane %v4117_v21, 1  ;;  %v1458_v18 = vperm.slane %v3963_v26, 4 }
 0x19e   :  { %v2062_v44 = vperm.slane %v4117_v21, 0  ;;  %v1688_v24 = vrot.slane %v4117_v21, 3  ;;  %vm1561_vm13 = vcmp.gt.f32.partialorder %v4009_v17, 0.0  ;;  %vm1562_vm14 = vcmp.gt.f32.partialorder %v4099_v4, 0.0 }
 0x19f   :  { %v2436_v10 = vadd.f32 %v2435_v58, %v2308_v47  ;;  %v2578_v12 = vmax.f32 %v2574_v34, %v2313_v35  ;;  %v2063_v58 = vperm.slane %v1686_v1, 0  ;;  %v4132_v59 = vpop.permute.xlu0 %1246  ;;  %v4134_v34 = vpop.permute.xlu2 %1218 }
 0x1a0   :  { %v2318_v40 = vsel %vm1550_vm0, %v2062_v44, 0.0  ;;  %v2065_v7 = vperm.slane %v1688_v24, 0  ;;  %vm1579_vm15 = vcmp.gt.f32.partialorder %v4132_v59, 0.0  ;;  %vm1572_vm0 = vcmp.gt.f32.partialorder %v4114_v45, 0.0 }
 0x1a1   :  { %v2437_v57 = vadd.f32 %v2436_v10, %v2309_v23  ;;  %v2582_v30 = vmax.f32 %v2578_v12, %v2314_v6  ;;  %v1687_v23 = vrot.slane %v4117_v21, 2  ;;  %v1689_v10 = vrot.slane %v4117_v21, 4 }
 0x1a2   :  { %1463 = vperm.xlu1 %3316, %v1458_v18   ;;  %v2319_v1 = vsel %vm1551_vm1, %v2063_v58, 0.0  ;;  %vm1564_vm1 = vcmp.gt.f32.partialorder %v4030_v48, 0.0 }
 0x1a3   :  { %v2438_v47 = vadd.f32 %v2437_v57, %v2310_v5  ;;  %v2586_v37 = vmax.f32 %v2582_v30, %v2315_v56  ;;  %1470 = vperm.xlu2 %3319, %v1465_v8   ;;  %v2064_v11 = vperm.slane %v1687_v23, 0  ;;  %v1479_v30 = vperm.slane %v3963_v26, 7  ;;  %v543_v22 = vpop.f32.mrf.mxu1 }
 0x1a4   :  { %v2066_v8 = vperm.slane %v1689_v10, 0  ;;  %v2321_v23 = vsel %vm1553_vm3, %v2065_v7, 0.0  ;;  %vm1567_vm3 = vcmp.gt.f32.partialorder %v4052_v0, 0.0 }
 0x1a5   :  { %v2439_v15 = vadd.f32 %v2438_v47, %v2311_v38  ;;  %v2525_v28 = vmax.f32 %v2316_v43, %v2586_v37  ;;  %v4138_v62 = vpop.permute.xlu1 %1169  ;;  %v2320_v18 = vsel %vm1552_vm2, %v2064_v11, 0.0  ;;  %vm1565_vm2 = vcmp.gt.f32.partialorder %v4120_v63, 0.0 }
 0x1a6   :  { %v2322_v60 = vsel %vm1554_vm4, %v2066_v8, 0.0  ;;  %vm1566_vm4 = vcmp.gt.f32.partialorder %v4073_v19, 0.0  ;;  %v4613_v19 = vmax.f32 %v3898_v25, %v3904_v27 }
 0x1a7   :  { %v2440_v5 = vadd.f32 %v2439_v15, %v2312_v16  ;;  %v2529_v31 = vmax.f32 %v2525_v28, %v2317_v41  ;;  %v1692_v16 = vrot.slane %v4117_v21, 7  ;;  %v1690_v28 = vrot.slane %v4117_v21, 5 }
 0x1a9   :  { %v2441_v38 = vadd.f32 %v2440_v5, %v2313_v35  ;;  %v2533_v12 = vmax.f32 %v2529_v31, %v2318_v40  ;;  %v541_v35 = vadd.f32 %v4145_v14, %v540_v53  ;;  %v544_v53 = vadd.f32 %v4145_v14, %v543_v22 }
 0x1aa   :  { %1484 = vperm.xlu1 %3316, %v1479_v30   ;;  %v1691_v31 = vrot.slane %v4117_v21, 6  ;;  %v2067_v10 = vperm.slane %v1690_v28, 0 }
 0x1ab   :  { %v2442_v57 = vadd.f32 %v2441_v38, %v2314_v6  ;;  %v2537_v47 = vmax.f32 %v2533_v12, %v2319_v1  ;;  %v2069_v6 = vperm.slane %v1692_v16, 0  ;;  %v4151_v44 = vmax.f32 %v541_v35, 0.0  ;;  %3320 = vset.pattern.permute.xlu2 %v4596_v29 }
 0x1ac   :  { %v4164_v29 = vmax.f32 %v544_v53, 0.0  ;;  %v4608_v16 = vmax.f32 %v3847_v20, %v3855_v46  ;;  %v2068_v21 = vperm.slane %v1691_v31, 0  ;;  %v2323_v7 = vsel %vm1555_vm6, %v2067_v10, 0.0 }
 0x1ad   :  { %v2443_v52 = vadd.f32 %v2442_v57, %v2315_v56  ;;  %v2541_v37 = vmax.f32 %v2537_v47, %v2320_v18  ;;  %v4158_v56 = vpop.permute.xlu0 %1267  ;;  %v2325_v24 = vsel %vm1557_vm5, %v2069_v6, 0.0  ;;  %v1694_v38 = vrot.slane %v4151_v44, 2  ;;  %v4166_v49 = vpop.permute.xlu1 %1190 }
 0x1ae   :  { %v1702_v35 = vrot.slane %v4164_v29, 3  ;;  %v1696_v55 = vrot.slane %v4151_v44, 4  ;;  %v1698_v3 = vrot.slane %v4151_v44, 6  ;;  %v1699_v4 = vrot.slane %v4151_v44, 7 }
 0x1af   :  { %v2444_v15 = vadd.f32 %v2443_v52, %v2316_v43  ;;  %v2545_v39 = vmax.f32 %v2541_v37, %v2321_v23  ;;  %v4160_v43 = vpop.permute.xlu2 %1239  ;;  %v2072_v57 = vperm.slane %v1694_v38, 0  ;;  %v2324_v52 = vsel %vm1556_vm7, %v2068_v21, 0.0 }
 0x1b0   :  { %v2081_v20 = vperm.slane %v1702_v35, 0  ;;  %v1693_v37 = vrot.slane %v4151_v44, 1  ;;  %v2074_v13 = vperm.slane %v1696_v55, 0  ;;  %vm1582_vm5 = vcmp.gt.f32.partialorder %v4158_v56, 0.0 }
 0x1b1   :  { %v2445_v26 = vadd.f32 %v2444_v15, %v2317_v41  ;;  %v2549_v5 = vmax.f32 %v2545_v39, %v2322_v60  ;;  %v2328_v8 = vsel %vm1560_vm8, %v2072_v57, 0.0  ;;  %v1697_v15 = vrot.slane %v4151_v44, 5  ;;  %v4609_v39 = vld [vmem:[#allocation21_spill] sm:$0xff] }
 0x1b2   :  { %v2071_v10 = vperm.slane %v1693_v37, 0  ;;  %vm1568_vm6 = vcmp.gt.f32.partialorder %v4138_v62, 0.0  ;;  %vm1575_vm7 = vcmp.gt.f32.partialorder %v4134_v34, 0.0  ;;  %vm1570_vm8 = vcmp.gt.f32.partialorder %v4071_v54, 0.0 }
 0x1b3   :  { %v2446_v58 = vadd.f32 %v2445_v26, %v2318_v40  ;;  %v2553_v41 = vmax.f32 %v2549_v5, %v2325_v24  ;;  %v545_v40 = vpop.f32.mrf.mxu1  ;;  %v4610_v26 = vmax.f32 %v4609_v39, %v3851_v2  ;;  %v4191_v5 = vsel %vm1569_vm9, %v2081_v20, 0.0  ;;  %v4611_v20 = vld [vmem:[#allocation20_spill] sm:$0xff] }
 0x1b4   :  { %vm1571_vm9 = vcmp.gt.f32.partialorder %v4166_v49, 0.0 }
 0x1b5   :  { %v2447_v11 = vadd.f32 %v2446_v58, %v2319_v1  ;;  %v2557_v12 = vmax.f32 %v2553_v41, %v4608_v16  ;;  %v546_v1 = vadd.f32 %v4145_v14, %v545_v40  ;;  %v4176_v46 = vpop.permute.xlu0 %1288  ;;  %v4185_v53 = vpop.permute.xlu1 %1211  ;;  %v1695_v58 = vrot.slane %v4151_v44, 3 }
 0x1b6   :  { %v2075_v41 = vperm.slane %v1697_v15, 0 }
 0x1b7   :  { %v2448_v36 = vadd.f32 %v2447_v11, %v2320_v18  ;;  %v2561_v47 = vmax.f32 %v2557_v12, %v2323_v7  ;;  %v4178_v51 = vpop.permute.xlu2 %1260  ;;  %v4183_v28 = vmax.f32 %v546_v1, 0.0  ;;  %v2327_v12 = vsel %vm1559_vm11, %v2071_v10, 0.0  ;;  %v548_v1 = vpop.f32.mrf.mxu3 }
 0x1b8   :  { %v2073_v40 = vperm.slane %v1695_v58, 0  ;;  %v2331_v57 = vsel %vm1563_vm12, %v2075_v41, 0.0  ;;  %v549_v59 = vadd.f32 %v4145_v14, %v548_v1  ;;  %v2078_v58 = vperm.slane %v4164_v29, 0 }
 0x1b9   :  { %v2449_v30 = vadd.f32 %v2448_v36, %v2321_v23  ;;  %v2565_v22 = vmax.f32 %v2561_v47, %v2324_v52  ;;  %v2070_v23 = vperm.slane %v4151_v44, 0  ;;  %v1711_v36 = vrot.slane %v4183_v28, 5 }
 0x1ba   :  { %v2077_v44 = vperm.slane %v1699_v4, 0  ;;  %v2334_v55 = vsel %vm1566_vm4, %v2078_v58, 0.0  ;;  %v1710_v34 = vrot.slane %v4183_v28, 4  ;;  %vm1578_vm11 = vcmp.gt.f32.partialorder %v4160_v43, 0.0 }
 0x1bb   :  { %v2450_v9 = vadd.f32 %v2449_v30, %v2322_v60  ;;  %v2569_v18 = vmax.f32 %v2565_v22, %v2328_v8  ;;  %v2326_v11 = vsel %vm1558_vm10, %v2070_v23, 0.0  ;;  %v2076_v23 = vperm.slane %v1698_v3, 0 }
 0x1bc   :  { %vm1585_vm10 = vcmp.gt.f32.partialorder %v4176_v46, 0.0  ;;  %vm1573_vm12 = vcmp.gt.f32.partialorder %v4090_v33, 0.0  ;;  %v2086_v43 = vperm.slane %v4183_v28, 0 }
 0x1bd   :  { %v2451_v6 = vadd.f32 %v2450_v9, %v2323_v7  ;;  %v2573_v60 = vmax.f32 %v2569_v18, %v4610_v26  ;;  %v2091_v7 = vperm.slane %v1711_v36, 0  ;;  %v4202_v35 = vpop.permute.xlu0 %1309  ;;  %v2329_v9 = vsel %vm1561_vm13, %v2073_v40, 0.0  ;;  %v4209_v22 = vpop.permute.xlu1 %1232 }
 0x1be   :  { %v4612_v18 = vmax.f32 %v4611_v20, %v3860_v32  ;;  %v1700_v32 = vrot.slane %v4164_v29, 1  ;;  %v1701_v36 = vrot.slane %v4164_v29, 2  ;;  %v1707_v40 = vrot.slane %v4183_v28, 1 }
 0x1bf   :  { %v2452_v42 = vadd.f32 %v2451_v6, %v2324_v52  ;;  %v2577_v38 = vmax.f32 %v2573_v60, %v4191_v5  ;;  %v4204_v30 = vpop.permute.xlu2 %1281  ;;  %v4215_v17 = vsel %vm1579_vm15, %v2091_v7, 0.0  ;;  %v550_v54 = vpop.f32.mrf.mxu3  ;;  %vm1574_vm13 = vcmp.gt.f32.partialorder %v4185_v53, 0.0 }
 0x1c0   :  { %v2080_v0 = vperm.slane %v1701_v36, 0  ;;  %v2087_v1 = vperm.slane %v1707_v40, 0  ;;  %v551_v46 = vadd.f32 %v4145_v14, %v550_v54  ;;  %v1709_v40 = vrot.slane %v4183_v28, 3 }
 0x1c1   :  { %v2453_v31 = vadd.f32 %v2452_v42, %v2325_v24  ;;  %v2581_v2 = vmax.f32 %v2577_v38, %v2326_v11  ;;  %v1705_v24 = vrot.slane %v4164_v29, 6  ;;  %v4227_v38 = vmax.f32 %v549_v59, 0.0 }
 0x1c2   :  { %v2343_v62 = vsel %vm1575_vm7, %v2087_v1, 0.0  ;;  %vm1576_vm15 = vcmp.gt.f32.partialorder %v4112_v61, 0.0  ;;  %vm1584_vm4 = vcmp.gt.f32.partialorder %v4204_v30, 0.0 }
 0x1c3   :  { %v2454_v16 = vadd.f32 %v2453_v31, %v2326_v11  ;;  %v2585_v21 = vmax.f32 %v2581_v2, %v2327_v12  ;;  %v2084_v37 = vperm.slane %v1705_v24, 0  ;;  %v2332_v31 = vsel %vm1564_vm1, %v2076_v23, 0.0 }
 0x1c4   :  { %v2333_v11 = vsel %vm1565_vm2, %v2077_v44, 0.0  ;;  %v2079_v2 = vperm.slane %v1700_v32, 0  ;;  %v2090_v44 = vperm.slane %v1710_v34, 0  ;;  %vm1577_vm1 = vcmp.gt.f32.partialorder %v4209_v22, 0.0 }
 0x1c5   :  { %v2455_v50 = vadd.f32 %v2454_v16, %v2327_v12  ;;  %v2589_v47 = vmax.f32 %v2585_v21, %v2331_v57  ;;  %v4220_v26 = vsel %vm1572_vm0, %v2084_v37, 0.0  ;;  %v4230_v16 = vpop.permute.xlu0 %1330  ;;  %v1703_v21 = vrot.slane %v4164_v29, 4 }
 0x1c6   :  { %v2335_v3 = vsel %vm1567_vm3, %v2079_v2, 0.0  ;;  %v1716_v37 = vrot.slane %v4227_v38, 3  ;;  %v2346_v36 = vsel %vm1578_vm11, %v2090_v44, 0.0  ;;  %vm1581_vm0 = vcmp.gt.f32.partialorder %v4178_v51, 0.0 }
 0x1c7   :  { %v2456_v52 = vadd.f32 %v2455_v50, %v2328_v8  ;;  %v2584_v6 = vmax.f32 %v4612_v18, %v2589_v47  ;;  %v2330_v8 = vsel %vm1562_vm14, %v2074_v13, 0.0  ;;  %v4232_v48 = vpop.permute.xlu2 %1302  ;;  %v4239_v50 = vpop.permute.xlu1 %1253  ;;  %v2336_v13 = vsel %vm1568_vm6, %v2080_v0, 0.0 }
 0x1c8   :  { %v2082_v20 = vperm.slane %v1703_v21, 0  ;;  %vm1588_vm14 = vcmp.gt.f32.partialorder %v4202_v35, 0.0  ;;  %v2089_v35 = vperm.slane %v1709_v40, 0  ;;  %v1712_v51 = vrot.slane %v4183_v28, 6 }
 0x1c9   :  { %v2457_v15 = vadd.f32 %v2456_v52, %v2329_v9  ;;  %v2588_v42 = vmax.f32 %v2584_v6, %v4215_v17  ;;  %vm1591_vm2 = vcmp.gt.f32.partialorder %v4230_v16, 0.0  ;;  %vm1580_vm3 = vcmp.gt.f32.partialorder %v4239_v50, 0.0 }
 0x1ca   :  { %v4257_v4 = vsel %vm1570_vm8, %v2082_v20, 0.0  ;;  %v2092_v34 = vperm.slane %v1712_v51, 0  ;;  %v1718_v44 = vrot.slane %v4227_v38, 5  ;;  %vm1587_vm7 = vcmp.gt.f32.partialorder %v4232_v48, 0.0 }
 0x1cb   :  { %v2458_v39 = vadd.f32 %v2457_v15, %v2330_v8  ;;  %v2592_v45 = vmax.f32 %v2588_v42, %v4220_v26  ;;  %v1706_v15 = vrot.slane %v4164_v29, 7 }
 0x1cc   :  { %v4312_v54 = vsel %vm1580_vm3, %v2092_v34, 0.0  ;;  %v2099_v40 = vperm.slane %v1718_v44, 0 }
 0x1cd   :  { %v2459_v60 = vadd.f32 %v2458_v39, %v2331_v57  ;;  %v2587_v10 = vmax.f32 %v2329_v9, %v2592_v45  ;;  %v2094_v57 = vperm.slane %v4227_v38, 0  ;;  %v1704_v9 = vrot.slane %v4164_v29, 5  ;;  %v4259_v23 = vpop.permute.xlu0 %1351 }
 0x1ce   :  { %v2097_v39 = vperm.slane %v1716_v37, 0  ;;  %v1715_v37 = vrot.slane %v4227_v38, 2  ;;  %vm1594_vm6 = vcmp.gt.f32.partialorder %v4259_v23, 0.0 }
 0x1cf   :  { %v2460_v41 = vadd.f32 %v2459_v60, %v2332_v31  ;;  %v2591_v63 = vmax.f32 %v2587_v10, %v2330_v8  ;;  %v4246_v52 = vsel %vm1582_vm5, %v2094_v57, 0.0  ;;  %v2083_v8 = vperm.slane %v1704_v9, 0  ;;  %v4261_v59 = vpop.permute.xlu2 %1323  ;;  %v4265_v45 = vpop.permute.xlu1 %1274 }
 0x1d0   :  { %v4269_v58 = vsel %vm1585_vm10, %v2097_v39, 0.0  ;;  %vm1583_vm5 = vcmp.gt.f32.partialorder %v4265_v45, 0.0  ;;  %vm1590_vm10 = vcmp.gt.f32.partialorder %v4261_v59, 0.0 }
 0x1d1   :  { %v2461_v12 = vadd.f32 %v2460_v41, %v2333_v11  ;;  %v2595_v24 = vmax.f32 %v2591_v63, %v2334_v55  ;;  %v2339_v32 = vsel %vm1571_vm9, %v2083_v8, 0.0 }
 0x1d3   :  { %v2462_v7 = vadd.f32 %v2461_v12, %v2334_v55  ;;  %v2590_v47 = vmax.f32 %v4613_v19, %v2595_v24  ;;  %v1713_v12 = vrot.slane %v4183_v28, 7  ;;  %v2342_v55 = vsel %vm1574_vm13, %v2086_v43, 0.0 }
 0x1d4   :  { %v1717_v43 = vrot.slane %v4227_v38, 4 }
 0x1d5   :  { %v2463_v56 = vadd.f32 %v2462_v7, %v2335_v3  ;;  %v2594_v18 = vmax.f32 %v2590_v47, %v4246_v52  ;;  %v4287_v7 = vpop.permute.xlu0 %1372 }
 0x1d6   :  { %vm1597_vm9 = vcmp.gt.f32.partialorder %v4287_v7, 0.0 }
 0x1d7   :  { %v2464_v6 = vadd.f32 %v2463_v56, %v2336_v13  ;;  %v2598_v25 = vmax.f32 %v2594_v18, %v2343_v62  ;;  %v4289_v0 = vpop.permute.xlu2 %1344  ;;  %v1296_v9 = vpop.permute.xlu1 %1295 }
 0x1d8   :  { %vm1586_vm8 = vcmp.gt.f32.partialorder %v1296_v9, 0.0  ;;  %v2646_v9 = vld [vmem:[%s4560_s6] sm:$0xff]  ;;  %vm1593_vm13 = vcmp.gt.f32.partialorder %v4289_v0, 0.0 }
 0x1d9   :  { %v2465_v27 = vadd.f32 %v2464_v6, %v4191_v5  ;;  %v2593_v42 = vmax.f32 %v2332_v31, %v2598_v25  ;;  %v2085_v5 = vperm.slane %v1706_v15, 0  ;;  %v1708_v31 = vrot.slane %v4183_v28, 2  ;;  %2649 = vperm.xlu2 %3320, %v2646_v9  }
 0x1db   :  { %v2466_v29 = vadd.f32 %v2465_v27, %v4257_v4  ;;  %v2597_v49 = vmax.f32 %v2593_v42, %v2333_v11  ;;  %v1719_v11 = vrot.slane %v4227_v38, 6  ;;  %v4278_v2 = vsel %vm1573_vm12, %v2085_v5, 0.0 }
 0x1dc   :  { %v2088_v21 = vperm.slane %v1708_v31, 0 }
 0x1dd   :  { %v2467_v60 = vadd.f32 %v2466_v29, %v2339_v32  ;;  %v2601_v10 = vmax.f32 %v2597_v49, %v4269_v58  ;;  %v2100_v57 = vperm.slane %v1719_v11, 0  ;;  %v2096_v29 = vperm.slane %v1715_v37, 0  ;;  %v4314_v39 = vpop.permute.xlu0 %1393 }
 0x1de   :  { %v4295_v1 = vsel %vm1576_vm15, %v2088_v21, 0.0  ;;  %vm1600_vm12 = vcmp.gt.f32.partialorder %v4314_v39, 0.0 }
 0x1df   :  { %v2468_v41 = vadd.f32 %v2467_v60, %v4220_v26  ;;  %v2596_v33 = vmax.f32 %v2346_v36, %v2601_v10  ;;  %v4284_v26 = vmax.f32 %v551_v46, 0.0  ;;  %v4293_v56 = vsel %vm1588_vm14, %v2100_v57, 0.0  ;;  %v4317_v16 = vpop.permute.xlu2 %1365  ;;  %v1317_v49 = vpop.permute.xlu1 %1316 }
 0x1e0   :  { %v553_v46 = vpop.f32.mrf.mxu3  ;;  %vm1589_vm11 = vcmp.gt.f32.partialorder %v1317_v49, 0.0 }
 0x1e1   :  { %v2469_v63 = vadd.f32 %v2468_v41, %v4278_v2  ;;  %v2600_v24 = vmax.f32 %v2596_v33, %v2335_v3  ;;  %v2093_v3 = vperm.slane %v1713_v12, 0  ;;  %v1721_v6 = vrot.slane %v4284_v26, 1 }
 0x1e2   :  { %v1724_v30 = vrot.slane %v4284_v26, 4  ;;  %v1727_v21 = vrot.slane %v4284_v26, 7  ;;  %v1722_v59 = vrot.slane %v4284_v26, 2  ;;  %v1725_v0 = vrot.slane %v4284_v26, 5 }
 0x1e3   :  { %v2470_v53 = vadd.f32 %v2469_v63, %v2342_v55  ;;  %v2604_v19 = vmax.f32 %v2600_v24, %v2336_v13  ;;  %v2349_v18 = vsel %vm1581_vm0, %v2093_v3, 0.0  ;;  %v4300_v13 = vsel %vm1577_vm1, %v2089_v35, 0.0 }
 0x1e4   :  { %v2103_v27 = vperm.slane %v1721_v6, 0  ;;  %v554_v63 = vadd.f32 %v4145_v14, %v553_v46  ;;  %v1720_v35 = vrot.slane %v4227_v38, 7  ;;  %v2104_v49 = vperm.slane %v1722_v59, 0 }
 0x1e5   :  { %v2471_v47 = vadd.f32 %v2470_v53, %v2343_v62  ;;  %v2599_v61 = vmax.f32 %v4293_v56, %v2604_v19  ;;  %v4337_v24 = vpop.permute.xlu0 %1414  ;;  %v2098_v53 = vperm.slane %v1717_v43, 0  ;;  %vm1596_vm0 = vcmp.gt.f32.partialorder %v4317_v16, 0.0 }
 0x1e6   :  { %v4310_v28 = vsel %vm1591_vm2, %v2103_v27, 0.0  ;;  %vm1603_vm15 = vcmp.gt.f32.partialorder %v4337_v24, 0.0 }
 0x1e7   :  { %v2472_v20 = vadd.f32 %v2471_v47, %v4295_v1  ;;  %v2603_v62 = vmax.f32 %v2599_v61, %v2349_v18  ;;  %v1338_v19 = vpop.permute.xlu1 %1337  ;;  %v4342_v47 = vmax.f32 %v554_v63, 0.0  ;;  %v4344_v3 = vsel %vm1586_vm8, %v2098_v53, 0.0 }
 0x1e8   :  { %vm1592_vm14 = vcmp.gt.f32.partialorder %v1338_v19, 0.0  ;;  %v2107_v63 = vperm.slane %v1725_v0, 0  ;;  %v3274_v0 = vld [vmem:[%s4561_s9 + $0x68] sm:$0xff] }
 0x1e9   :  { %v2473_v22 = vadd.f32 %v2472_v20, %v4300_v13  ;;  %v2607_v15 = vmax.f32 %v2603_v62, %v4257_v4  ;;  %v1714_v4 = vrot.slane %v4227_v38, 1  ;;  %v2102_v38 = vperm.slane %v4284_v26, 0 }
 0x1ea   :  { %v1729_v62 = vrot.slane %v4342_v47, 2  ;;  %v1728_v16 = vrot.slane %v4342_v47, 1 }
 0x1eb   :  { %v2474_v25 = vadd.f32 %v2473_v22, %v2346_v36  ;;  %v2602_v8 = vmax.f32 %v2339_v32, %v2607_v15  ;;  %v2352_v32 = vsel %vm1584_vm4, %v2096_v29, 0.0  ;;  %v2095_v31 = vperm.slane %v1714_v4, 0 }
 0x1ec   :  { %v2106_v36 = vperm.slane %v1724_v30, 0  ;;  %v2101_v22 = vperm.slane %v1720_v35, 0  ;;  %v2358_v37 = vsel %vm1590_vm10, %v2102_v38, 0.0  ;;  %v1723_v15 = vrot.slane %v4284_v26, 3 }
 0x1ed   :  { %v2475_v42 = vadd.f32 %v2474_v25, %v4215_v17  ;;  %v2606_v50 = vmax.f32 %v2602_v8, %v4310_v28  ;;  %v4327_v11 = vsel %vm1583_vm5, %v2095_v31, 0.0  ;;  %v1436_v29 = vpop.permute.xlu0 %1435  ;;  %v1732_v30 = vrot.slane %v4342_v47, 5 }
 0x1ee   :  { %v4333_v12 = vsel %vm1594_vm6, %v2106_v36, 0.0  ;;  %v4362_v25 = vsel %vm1589_vm11, %v2101_v22, 0.0  ;;  %v1726_v31 = vrot.slane %v4284_v26, 6  ;;  %vm1606_vm2 = vcmp.gt.f32.partialorder %v1436_v29, 0.0 }
 0x1ef   :  { %v2476_v5 = vadd.f32 %v2475_v42, %v4312_v54  ;;  %v2610_v17 = vmax.f32 %v2606_v50, %v2352_v32  ;;  %v1359_v8 = vpop.permute.xlu1 %1358  ;;  %v2112_v42 = vperm.slane %v1729_v62, 0  ;;  %v2111_v9 = vperm.slane %v1728_v16, 0 }
 0x1f0   :  { %vm1595_vm1 = vcmp.gt.f32.partialorder %v1359_v8, 0.0  ;;  %v1731_v38 = vrot.slane %v4342_v47, 4  ;;  %v2110_v62 = vperm.slane %v4342_v47, 0 }
 0x1f1   :  { %v2477_v60 = vadd.f32 %v2476_v5, %v2349_v18  ;;  %v2605_v10 = vmax.f32 %v4278_v2, %v2610_v17  ;;  %v2109_v18 = vperm.slane %v1727_v21, 0  ;;  %v4371_v5 = vsel %vm1600_vm12, %v2112_v42, 0.0 }
 0x1f2   :  { %v4395_v21 = vsel %vm1595_vm1, %v2107_v63, 0.0  ;;  %v2114_v59 = vperm.slane %v1731_v38, 0 }
 0x1f3   :  { %v2478_v41 = vadd.f32 %v2477_v60, %v4246_v52  ;;  %v2609_v33 = vmax.f32 %v2605_v10, %v2342_v55  ;;  %v2355_v52 = vsel %vm1587_vm7, %v2099_v40, 0.0  ;;  %v4339_v55 = vpop.permute.xlu2 %1386  ;;  %v4355_v51 = vsel %vm1597_vm9, %v2109_v18, 0.0 }
 0x1f4   :  { %vm1599_vm3 = vcmp.gt.f32.partialorder %v4339_v55, 0.0 }
 0x1f5   :  { %v2479_v45 = vadd.f32 %v2478_v41, %v4327_v11  ;;  %v2613_v2 = vmax.f32 %v2609_v33, %v4333_v12  ;;  %v2115_v41 = vperm.slane %v1732_v30, 0 }
 0x1f7   :  { %v2480_v23 = vadd.f32 %v2479_v45, %v2352_v32  ;;  %v2608_v48 = vmax.f32 %v2355_v52, %v2613_v2  ;;  %v2105_v32 = vperm.slane %v1723_v15, 0  ;;  %v4387_v33 = vsel %vm1603_vm15, %v2115_v41, 0.0  ;;  %v3268_v2 = vld [vmem:[%s4561_s9 + $0x38] sm:$0xff]  ;;  %v3265_v15 = vld [vmem:[%s4561_s9 + $0x20] sm:$0xff] }
 0x1f8   :  { %v2108_v45 = vperm.slane %v1726_v31, 0  ;;  %2808 = vmatpush.bf16.msrb.mxu3 %v3268_v2 }
 0x1f9   :  { %v2481_v57 = vadd.f32 %v2480_v23, %v4269_v58  ;;  %v2612_v61 = vmax.f32 %v2608_v48, %v4295_v1  ;;  %v2361_v44 = vsel %vm1593_vm13, %v2105_v32, 0.0  ;;  %v1457_v23 = vpop.permute.xlu0 %1456  ;;  %v3264_v32 = vld [vmem:[%s4561_s9 + $0x18] sm:$0xff] }
 0x1fa   :  { %vm1609_vm5 = vcmp.gt.f32.partialorder %v1457_v23, 0.0 }
 0x1fb   :  { %v2482_v20 = vadd.f32 %v2481_v57, %v4344_v3  ;;  %v2616_v58 = vmax.f32 %v2612_v61, %v4300_v13  ;;  %v555_v13 = vpop.f32.mrf.mxu3  ;;  %v4367_v4 = vpop.permute.xlu2 %1407 }
 0x1fc   :  { %v556_v39 = vadd.f32 %v4145_v14, %v555_v13  ;;  %vm1602_vm6 = vcmp.gt.f32.partialorder %v4367_v4, 0.0  ;;  %v1734_v4 = vrot.slane %v4342_v47, 7 }
 0x1fd   :  { %v2483_v6 = vadd.f32 %v2482_v20, %v2355_v52  ;;  %v2611_v1 = vmax.f32 %v4355_v51, %v2616_v58  ;;  %v3266_v58 = vld [vmem:[%s4561_s9 + $0x28] sm:$0xff]  ;;  %v2370_v29 = vsel %vm1602_vm6, %v2114_v59, 0.0  ;;  %v2653_v59 = vld [vmem:[%s4562_s7] sm:$0xff] }
 0x1fe   :  { %v4385_v43 = vmax.f32 %v556_v39, 0.0 }
 0x1ff   :  { %v2484_v7 = vadd.f32 %v2483_v6, %v4293_v56  ;;  %v2615_v27 = vmax.f32 %v2611_v1, %v2358_v37  ;;  %v2367_v6 = vsel %vm1599_vm3, %v2111_v9, 0.0  ;;  %v3276_v1 = vld [vmem:[%s4561_s9 + $0x78] sm:$0xff] }
 0x200   :  { %v2118_v48 = vperm.slane %v4385_v43, 0  ;;  %v1737_v61 = vrot.slane %v4385_v43, 3  ;;  %2747 = vmatpush.bf16.msrb.mxu2 %v3276_v1  ;;  %v1736_v31 = vrot.slane %v4385_v43, 2  ;;  %v1735_v9 = vrot.slane %v4385_v43, 1 }
 0x201   :  { %v2485_v34 = vadd.f32 %v2484_v7, %v4362_v25  ;;  %v2619_v56 = vmax.f32 %v2615_v27, %v4312_v54  ;;  %v4378_v54 = vsel %vm1592_vm14, %v2104_v49, 0.0  ;;  %v1478_v13 = vpop.permute.xlu0 %1477  ;;  %v1740_v27 = vrot.slane %v4385_v43, 6 }
 0x202   :  { %v4404_v35 = vsel %vm1606_vm2, %v2118_v48, 0.0  ;;  %v2121_v22 = vperm.slane %v1737_v61, 0  ;;  %vm1612_vm7 = vcmp.gt.f32.partialorder %v1478_v13, 0.0  ;;  %v3261_v48 = vld [vmem:[%s4561_s9] sm:$0xff]  ;;  %v3271_v61 = vld [vmem:[%s4561_s9 + $0x50] sm:$0xff] }
 0x203   :  { %v2486_v50 = vadd.f32 %v2485_v34, %v2358_v37  ;;  %v2614_v17 = vmax.f32 %v4371_v5, %v2619_v56  ;;  %v1429_v52 = vpop.permute.xlu2 %1428  ;;  %v2124_v30 = vperm.slane %v1740_v27, 0 }
 0x204   :  { %vm1605_vm8 = vcmp.gt.f32.partialorder %v1429_v52, 0.0  ;;  %v3272_v52 = vld [vmem:[%s4561_s9 + $0x58] sm:$0xff] }
 0x205   :  { %v2487_v60 = vadd.f32 %v2486_v50, %v4310_v28  ;;  %v2618_v46 = vmax.f32 %v2614_v17, %v2361_v44  ;;  %v1380_v28 = vpop.permute.xlu1 %1379  ;;  %v1730_v17 = vrot.slane %v4342_v47, 3 }
 0x206   :  { %vm1598_vm4 = vcmp.gt.f32.partialorder %v1380_v28, 0.0 }
 0x207   :  { %v2488_v10 = vadd.f32 %v2487_v60, %v4378_v54  ;;  %v2622_v36 = vmax.f32 %v2618_v46, %v4327_v11  ;;  %v2364_v11 = vsel %vm1596_vm0, %v2108_v45, 0.0  ;;  %v2366_v37 = vsel %vm1598_vm4, %v2110_v62, 0.0  ;;  %v3270_v62 = vld [vmem:[%s4561_s9 + $0x48] sm:$0xff] }
 0x208   :  { %v4435_v60 = vsel %vm1612_vm7, %v2124_v30, 0.0  ;;  %v2113_v28 = vperm.slane %v1730_v17, 0  ;;  %v2120_v45 = vperm.slane %v1736_v31, 0 }
 0x209   :  { %v2489_v14 = vadd.f32 %v2488_v10, %v2361_v44  ;;  %v2617_v26 = vmax.f32 %v4387_v33, %v2622_v36  ;;  %v2117_v44 = vperm.slane %v1734_v4, 0  ;;  %v3263_v10 = vld [vmem:[%s4561_s9 + $0x10] sm:$0xff]  ;;  %v3273_v36 = vld [vmem:[%s4561_s9 + $0x60] sm:$0xff] }
 0x20b   :  { %v2490_v40 = vadd.f32 %v2489_v14, %v4333_v12  ;;  %v2621_v24 = vmax.f32 %v2617_v26, %v2364_v11  ;;  %v3267_v12 = vld [vmem:[%s4561_s9 + $0x30] sm:$0xff]  ;;  %v1450_v34 = vpop.permute.xlu2 %1449  ;;  %v1739_v26 = vrot.slane %v4385_v43, 5 }
 0x20c   :  { %2809 = vmatpush.bf16.msrb.mxu3 %v3267_v12  ;;  %vm1608_vm10 = vcmp.gt.f32.partialorder %v1450_v34, 0.0  ;;  %v1733_v12 = vrot.slane %v4342_v47, 6 }
 0x20d   :  { %v2491_v53 = vadd.f32 %v2490_v40, %v4395_v21  ;;  %v2625_v57 = vmax.f32 %v2621_v24, %v4344_v3  ;;  %v1401_v18 = vpop.permute.xlu1 %1400  ;;  %v2376_v16 = vsel %vm1608_vm10, %v2120_v45, 0.0 }
 0x20e   :  { %vm1601_vm9 = vcmp.gt.f32.partialorder %v1401_v18, 0.0  ;;  %v2116_v18 = vperm.slane %v1733_v12, 0  ;;  %v3277_v12 = vld [vmem:[%s4566_s11] sm:$0xff] }
 0x20f   :  { %v2492_v19 = vadd.f32 %v2491_v53, %v2364_v11  ;;  %v2620_v20 = vmax.f32 %v4404_v35, %v2625_v57  ;;  %v2369_v2 = vsel %vm1601_vm9, %v2113_v28, 0.0  ;;  %v2123_v53 = vperm.slane %v1739_v26, 0 }
 0x210   :  { %2810 = vmatpush.bf16.msrb.mxu3 %v3266_v58 }
 0x211   :  { %v2493_v55 = vadd.f32 %v2492_v19, %v4355_v51  ;;  %v2624_v3 = vmax.f32 %v2620_v20, %v2367_v6  ;;  %v4422_v51 = vsel %vm1609_vm5, %v2121_v22, 0.0 }
 0x213   :  { %v2628_v7 = vmax.f32 %v2624_v3, %v4362_v25  ;;  %v2494_v8 = vadd.f32 %v2493_v55, %v2366_v37  ;;  %v3275_v25 = vld [vmem:[%s4561_s9 + $0x70] sm:$0xff]  ;;  %v1471_v63 = vpop.permute.xlu2 %1470  ;;  %v2119_v3 = vperm.slane %v1735_v9, 0  ;;  %v3288_v9 = vld [vmem:[%s4567_s13 + $0x18] sm:$0xff] }
 0x214   :  { %2811 = vmatpush.bf16.msrb.mxu3 %v3265_v15  ;;  %2748 = vmatpush.bf16.msrb.mxu2 %v3275_v25  ;;  %vm1611_vm11 = vcmp.gt.f32.partialorder %v1471_v63, 0.0  ;;  %v1741_v15 = vrot.slane %v4385_v43, 7 }
 0x215   :  { %v2623_v42 = vmax.f32 %v4422_v51, %v2628_v7  ;;  %v1422_v50 = vpop.permute.xlu1 %1421  ;;  %v2495_v49 = vadd.f32 %v2494_v8, %v2367_v6  ;;  %v2379_v57 = vsel %vm1611_vm11, %v2123_v53, 0.0  ;;  %v1738_v6 = vrot.slane %v4385_v43, 4 }
 0x216   :  { %vm1604_vm12 = vcmp.gt.f32.partialorder %v1422_v50, 0.0  ;;  %v2657_v8 = vmax.f32 %v2653_v59, 0.0 }
 0x217   :  { %v2627_v56 = vmax.f32 %v2623_v42, %v2370_v29  ;;  %v2496_v41 = vadd.f32 %v2495_v49, %v4371_v5  ;;  %v3262_v5 = vld [vmem:[%s4561_s9 + $0x8] sm:$0xff]  ;;  %v2372_v38 = vsel %vm1604_vm12, %v2116_v18, 0.0 }
 0x218   :  { %2812 = vmatpush.bf16.msrb.mxu3 %v3264_v32  ;;  %2749 = vmatpush.bf16.msrb.mxu2 %v3274_v0 }
 0x219   :  { %v2631_v39 = vmax.f32 %v2627_v56, %v4378_v54  ;;  %v4445_v54 = vsel %vm1605_vm8, %v2117_v44, 0.0  ;;  %v2497_v23 = vadd.f32 %v2496_v41, %v2369_v2  ;;  %v3269_v44 = vld [vmem:[%s4561_s9 + $0x40] sm:$0xff] }
 0x21b   :  { %v2626_v46 = vmax.f32 %v4435_v60, %v2631_v39  ;;  %v2498_v19 = vadd.f32 %v2497_v23, %v2370_v29  ;;  %v2125_v29 = vperm.slane %v1741_v15, 0  ;;  %v3279_v23 = vld [vmem:[%s4566_s11 + $0x10] sm:$0xff] }
 0x21c   :  { %2813 = vmatpush.bf16.msrb.mxu3 %v3263_v10  ;;  %2750 = vmatpush.bf16.msrb.mxu2 %v3273_v36 }
 0x21d   :  { %v2630_v14 = vmax.f32 %v2626_v46, %v4445_v54  ;;  %v1443_v11 = vpop.permute.xlu1 %1442  ;;  %v2499_v55 = vadd.f32 %v2498_v19, %v4387_v33  ;;  %v2655_v33 = vld [vmem:[%s4563_s8] sm:$0xff] }
 0x21e   :  { %vm1607_vm13 = vcmp.gt.f32.partialorder %v1443_v11, 0.0  ;;  %v2658_v25 = vmax.f32 %v2655_v33, 0.0  ;;  %v3283_v11 = vld [vmem:[%s4566_s11 + $0x30] sm:$0xff]  ;;  %v3289_v19 = vld [vmem:[%s4567_s13 + $0x20] sm:$0xff]  ;;  %v4614_v33 = vlaneseq }
 0x21f   :  { %v2634_v40 = vmax.f32 %v2630_v14, %v4395_v21  ;;  %v2375_v1 = vsel %vm1607_vm13, %v2119_v3, 0.0  ;;  %v2500_v13 = vadd.f32 %v2499_v55, %v2372_v38  ;;  %v3286_v3 = vld [vmem:[%s4567_s13 + $0x8] sm:$0xff] }
 0x220   :  { %2814 = vmatpush.bf16.msrb.mxu3 %v3262_v5  ;;  %2751 = vmatpush.bf16.msrb.mxu2 %v3272_v52  ;;  %v2659_v50 = vadd.f32 %v2658_v25, %v2657_v8  ;;  %v3281_v5 = vld [vmem:[%s4566_s11 + $0x20] sm:$0xff] }
 0x221   :  { %v2629_v24 = vmax.f32 %v2376_v16, %v2634_v40  ;;  %v2501_v4 = vadd.f32 %v2500_v13, %v4445_v54  ;;  %v2654_v54 = vld [vmem:[%s4562_s7 + $0x8] sm:$0xff]  ;;  %v2993_v13 = vand.u32 127, %v4614_v33 }
 0x222   :  { %v2661_v36 = vmax.f32 %v2654_v54, 0.0 }
 0x223   :  { %v2633_v21 = vmax.f32 %v2629_v24, %v2366_v37  ;;  %v2122_v37 = vperm.slane %v1738_v6, 0  ;;  %v2502_v32 = vadd.f32 %v2501_v4, %v4404_v35  ;;  %v2656_v35 = vld [vmem:[%s4563_s8 + $0x8] sm:$0xff]  ;;  %vm2994_vm0 = vcmp.lt.s32.totalorder %v2993_v13, 4 }
 0x224   :  { %2815 = vmatpush.bf16.msrb.mxu3 %v3261_v48  ;;  %2752 = vmatpush.bf16.msrb.mxu2 %v3271_v61  ;;  %v2662_v14 = vmax.f32 %v2656_v35, 0.0  ;;  %v3278_v24 = vld [vmem:[%s4566_s11 + $0x8] sm:$0xff]  ;;  %v3291_v48 = vld [vmem:[%s4567_s13 + $0x30] sm:$0xff] }
 0x225   :  { %v2637_v20 = vmax.f32 %v2633_v21, %v2379_v57  ;;  %v1464_v47 = vpop.permute.xlu1 %1463  ;;  %v2503_v39 = vadd.f32 %v2502_v32, %v2375_v1  ;;  %v3292_v21 = vld [vmem:[%s4567_s13 + $0x38] sm:$0xff]  ;;  %v3287_v61 = vld [vmem:[%s4567_s13 + $0x10] sm:$0xff] }
 0x226   :  { %vm1610_vm14 = vcmp.gt.f32.partialorder %v1464_v47, 0.0  ;;  %v2663_v45 = vadd.f32 %v2662_v14, %v2661_v36 }
 0x227   :  { %v2632_v58 = vmax.f32 %v2369_v2, %v2637_v20  ;;  %v2378_v27 = vsel %vm1610_vm14, %v2122_v37, 0.0  ;;  %v2504_v31 = vadd.f32 %v2503_v39, %v2376_v16  ;;  %v3284_v2 = vld [vmem:[%s4566_s11 + $0x38] sm:$0xff]  ;;  %v3323_v20 = vld [vmem:[%s4564_s10] ss:$0 sm:$0xff] }
 0x228   :  { %2753 = vmatpush.bf16.msrb.mxu2 %v3270_v62  ;;  %v3280_v16 = vld [vmem:[%s4566_s11 + $0x18] sm:$0xff]  ;;  %2979 = vmatpush.bf16.msra.mxu3 %v3292_v21  ;;  %v3285_v62 = vld [vmem:[%s4567_s13] sm:$0xff] }
 0x229   :  { %v2635_v22 = vmax.f32 %v2372_v38, %v2632_v58  ;;  %v2505_v0 = vadd.f32 %v2504_v31, %v4422_v51 }
 0x22b   :  { %v2636_v7 = vmax.f32 %v2375_v1, %v2635_v22  ;;  %v2506_v46 = vadd.f32 %v2505_v0, %v2378_v27  ;;  %v3324_v22 = vld [vmem:[%s4565_s12] ss:$0 sm:$0xff] }
 0x22c   :  { %2754 = vmatpush.bf16.msrb.mxu2 %v3269_v44  ;;  %2980 = vmatpush.bf16.msra.mxu3 %v3291_v48 }
 0x22d   :  { %v2638_v34 = vmax.f32 %v2378_v27, %v2636_v7  ;;  %v1485_v42 = vpop.permute.xlu1 %1484  ;;  %v2507_v10 = vadd.f32 %v2506_v46, %v2379_v57  ;;  %v3290_v57 = vld [vmem:[%s4567_s13 + $0x28] sm:$0xff]  ;;  %v3325_v27 = vld [vmem:[%s4568_s14] ss:$0 sm:$0xff] }
 0x22e   :  { %vm1613_vm15 = vcmp.gt.f32.partialorder %v1485_v42, 0.0 }
 0x22f   :  { %v2381_v43 = vsel %vm1613_vm15, %v2125_v29, 0.0  ;;  %v2508_v41 = vadd.f32 %v2507_v10, %v4435_v60  ;;  %v3282_v60 = vld [vmem:[%s4566_s11 + $0x28] sm:$0xff] }
 0x230   :  { %v2639_v56 = vmax.f32 %v2381_v43, %v2638_v34  ;;  %2896 = vmatpush.bf16.msra.mxu2 %v3284_v2  ;;  %2981 = vmatpush.bf16.msra.mxu3 %v3290_v57 }
 0x231   :  { %v2509_v28 = vadd.f32 %v2508_v41, %v2381_v43 }
 0x232   :  { %v2640_v30 = vmax.f32 %v2639_v56, 0.0 }
 0x233   :  { %v2650_v63 = vpop.permute.xlu2 %2649 }
 0x234   :  { %v2660_v49 = vadd.f32 %v2659_v50, %v2640_v30  ;;  %v2652_v26 = vmul.f32 %v2650_v63, %v2509_v28  ;;  %2897 = vmatpush.bf16.msra.mxu2 %v3283_v11  ;;  %2982 = vmatpush.bf16.msra.mxu3 %v3289_v19 }
 0x236   :  { %v2665_v17 = vpack.c.bf16 %v2660_v49, %v2660_v49  ;;  %v2664_v40 = vadd.f32 %v2663_v45, %v2652_v26 }
 0x238   :  { %2816 = vmatmul.bf16.vlgmr.msrb.gmra.mxu3 %v2665_v17  ;;  %v2682_v51 = vpack.c.bf16 %v2664_v40, %v2664_v40  ;;  %2898 = vmatpush.bf16.msra.mxu2 %v3282_v60 }
 0x239   :  { %2983 = vmatpush.bf16.msra.mxu3 %v3288_v9 }
 0x23a   :  { %2755 = vmatmul.bf16.vlgmr.msrb.gmra.mxu2 %v2682_v51 }
 0x23c   :  { %2899 = vmatpush.bf16.msra.mxu2 %v3281_v5 }
 0x23d   :  { %2984 = vmatpush.bf16.msra.mxu3 %v3287_v61 }
 0x240   :  { %2900 = vmatpush.bf16.msra.mxu2 %v3280_v16 }
 0x241   :  { %2985 = vmatpush.bf16.msra.mxu3 %v3286_v3 }
 0x244   :  { %2901 = vmatpush.bf16.msra.mxu2 %v3279_v23 }
 0x245   :  { %2986 = vmatpush.bf16.msra.mxu3 %v3285_v62 }
 0x248   :  { %2902 = vmatpush.bf16.msra.mxu2 %v3278_v24 }
 0x24c   :  { %2903 = vmatpush.bf16.msra.mxu2 %v3277_v12 }
 0x2bb   :  { %v2817_v52 = vpop.f32.mrf.mxu3 }
 0x2bd   :  { %v2756_v18 = vpop.f32.mrf.mxu2 }
 0x2be   :  { %v2818_v58 = vadd.f32 %v2817_v52, %v2756_v18 }
 0x2c0   :  { %v2825_v47 = vadd.f32 %v3323_v20, %v2818_v58 }
 0x2c2   :  { %v2826_v6 = vmax.f32 %v2825_v47, 0.0 }
 0x2c3   :  { %v2819_v53 = vpop.f32.mrf.mxu3 }
 0x2c4   :  { %v2827_v38 = vpack.c.bf16 %v2826_v6, %v2826_v6 }
 0x2c5   :  { %v2758_v55 = vpop.f32.mrf.mxu2 }
 0x2c6   :  { %2904 = vmatmul.bf16.vlgmr.msra.gmra.mxu2 %v2827_v38 }
 0x349   :  { %v2905_v1 = vpop.f32.mrf.mxu2 }
 0x34a   :  { %v2906_v7 = vadd.f32 %v3324_v22, %v2905_v1 }
 0x34c   :  { %v2909_v37 = vmax.f32 %v2906_v7, 0.0 }
 0x34e   :  { %v2910_v15 = vpack.c.bf16 %v2909_v37, %v2909_v37 }
 0x350   :  { %2987 = vmatmul.bf16.vlgmr.msra.gmra.mxu3 %v2910_v15 }
 0x351   :  { %v2907_v59 = vpop.f32.mrf.mxu2 }
 0x3d3   :  { %v2988_v34 = vpop.f32.mrf.mxu3 }
 0x3d4   :  { %v2989_v8 = vadd.f32 %v3325_v27, %v2988_v34 }
 0x3d6   :  { %v2995_v25 = vsel %vm2994_vm0, %v2989_v8, -3e+38 }
 0x3d7   :  { %2996 = vmax.xlane.f32.xlu0 %v2995_v25 }
 0x3db   :  { %v2990_v42 = vpop.f32.mrf.mxu3 }
 0x44a   :  { %v2997_v29 = vpop.xlane.xlu0 %2996 }
 0x44b   :  { %v2998_v4 = vsub.f32 %v2995_v25, %v2997_v29 }
 0x44d   :  { %v2999_v43 = vmul.f32 1.442695, %v2998_v4 }
 0x44f   :  { %3326 = vpow2.f32 %v2999_v43 }
 0x455   :  { %v3327_v56 = vpop.eup %3326 }
 0x456   :  { %v3001_v50 = vsel %vm2994_vm0, %v3327_v56, 0.0 }
 0x457   :  { %3002 = vadd.xlane.f32.xlu1 %v3001_v50 }
 0x4ca   :  { %v3003_v32 = vpop.xlane.xlu1 %3002 }
 0x4cb   :  { %3328 = vlog2.f32 %v3003_v32 }
 0x4d1   :  { %v3329_v30 = vpop.eup %3328 }
 0x4d2   :  { %v3005_v49 = vmul.f32 0.6931472, %v3329_v30 }
 0x4d4   :  { %v3006_v39 = vadd.f32 %v3005_v49, %v2997_v29 }
 0x4d6   :  { %v3007_v17 = vsub.f32 %v2995_v25, %v3006_v39 }
 0x4d8   :  { %3008 = vst [vmem:[%s4569_s15] sm:$0xff] %v3007_v17 }

</bundles_post_ra>
